<compile_context>
chip_gen: v7x
topology: tpu7x:2x2x1
jax: 0.10.0
libtpu: 0.0.40
codegen_flags: <defaults>
</compile_context>

<pallas_src>
import functools

import jax
import jax.numpy as jnp
from jax.experimental import pallas as pl
from jax.experimental.pallas import tpu as pltpu

EPS = 1e-5


def _round_up(v, m):
    return (v + m - 1) // m * m


def _sae_kernel(k, d_real, x_ref, wenc_ref, wdec_ref, preb_ref, encb_ref,
                recon_ref, hsp_ref):
    x = x_ref[...]                                            # (TM, Dp) f32
    dp = x.shape[-1]

    # --- LayerNorm over the real D columns only (torch LN: unbiased std,
    #     divide by (std + eps)).  Padded columns are zero on input and are
    #     masked out of the centered value, so they contribute nothing. ---
    mu = jnp.sum(x, axis=-1, keepdims=True) * (1.0 / d_real)
    xc = x - mu
    if d_real != dp:
        valid = jax.lax.broadcasted_iota(jnp.int32, (1, dp), 1) < d_real
        xc = jnp.where(valid, xc, 0.0)
    var = jnp.sum(xc * xc, axis=-1, keepdims=True) * (1.0 / (d_real - 1))
    std = jnp.sqrt(var)                                       # (TM, 1)
    x_ln = xc * (1.0 / (std + EPS))                           # pad cols stay 0

    # --- encode: bf16 MXU inputs, f32 accumulation.  pre_bias is already
    #     folded into encb (= latent_bias - pre_bias @ W_enc^T). ---
    wenc = wenc_ref[...]                                      # (Dp, Hp) bf16
    h = jnp.dot(x_ln.astype(wenc.dtype), wenc,
                preferred_element_type=jnp.float32) + encb_ref[...]
    h = jnp.maximum(h, 0.0)                                   # ReLU, (TM, Hp)

    # --- top-k sparsity: threshold = k-th largest value per row (k static).
    # Like the reference `h * (h >= threshold)`, all values tied at the
    # threshold are kept; the iterative max/mask relaxes exact-tie
    # multiplicity (identical for continuous activations; ties at 0 after
    # ReLU behave exactly like torch).
    # TODO(synk): the reviewer's two-stage (per-128-lane-segment) threshold
    # search changes which value is selected when the top-k straddles lanes;
    # the exact full-row reduction is kept to preserve module semantics.
    work = h
    thr = jnp.zeros_like(h[:, :1])
    for _ in range(k):
        thr = jnp.max(work, axis=-1, keepdims=True)
        work = jnp.where(work >= thr, -jnp.inf, work)
    h_sparse = jnp.where(h >= thr, h, 0.0)
    hsp_ref[...] = h_sparse

    # --- decode + de-normalize ---
    wdec = wdec_ref[...]                                      # (Hp, Dp) bf16
    recon = jnp.dot(h_sparse.astype(wdec.dtype), wdec,
                    preferred_element_type=jnp.float32) + preb_ref[...]
    recon_ref[...] = recon * std + mu


def sae_forward(x, w_enc, w_dec, pre_bias, latent_bias, *, k, tm=128,
                matmul_dtype=jnp.bfloat16):
    """Fused SAE forward.  w_enc: (H, D), w_dec: (D, H) (nn.Linear.weight)."""
    input_shape = x.shape
    d = int(x.shape[-1])
    h_dim = int(w_enc.shape[0])
    assert 1 <= k <= h_dim

    xf = x.reshape(-1, d).astype(jnp.float32)
    n = xf.shape[0]

    # Lane-align feature dims; tile rows at tm (clamped for tiny inputs).
    dp = _round_up(d, 128)
    hp = _round_up(h_dim, 128)
    tm = max(8, min(tm, _round_up(n, 8)))
    n_pad = _round_up(n, tm)

    x_p = jnp.zeros((n_pad, dp), jnp.float32).at[:n, :d].set(xf)

    w_enc32 = jnp.asarray(w_enc, jnp.float32)                 # (H, D)
    w_dec32 = jnp.asarray(w_dec, jnp.float32)                 # (D, H)
    pre_b32 = jnp.asarray(pre_bias, jnp.float32)              # (D,)
    lat_b32 = jnp.asarray(latent_bias, jnp.float32)           # (H,)

    # Fold pre_bias into the encoder bias (exact, done once in f32).
    enc_b32 = lat_b32 - w_enc32 @ pre_b32                     # (H,)

    wenc_t = jnp.zeros((dp, hp), matmul_dtype).at[:d, :h_dim].set(
        w_enc32.T.astype(matmul_dtype))                       # (Dp, Hp)
    wdec_t = jnp.zeros((hp, dp), matmul_dtype).at[:h_dim, :d].set(
        w_dec32.T.astype(matmul_dtype))                       # (Hp, Dp)
    preb = jnp.zeros((1, dp), jnp.float32).at[0, :d].set(pre_b32)
    encb = jnp.zeros((1, hp), jnp.float32).at[0, :h_dim].set(enc_b32)

    # Explicit VMEM budget: (double-buffered) resident bf16 weights +
    # 2x-buffered row tiles + in-kernel temporaries, with 2x headroom.
    wbytes = jnp.dtype(matmul_dtype).itemsize
    vmem_est = (2 * 2 * dp * hp * wbytes                # W_enc^T + W_dec^T
                + 2 * tm * dp * 4                       # x tiles
                + 2 * (tm * dp * 4 + tm * hp * 4)       # recon / h_sparse tiles
                + 2 * (dp + hp) * 4                     # biases
                + 8 * tm * hp * 4 + 4 * tm * dp * 4)    # kernel temporaries
    vmem_limit = int(min(128 * 2**20, max(32 * 2**20, 2 * vmem_est)))
    # TODO(synk): for SAEs whose bf16 weights exceed ~half of v7x's 64 MiB
    # VMEM, add a D-axis grid dimension with a (TM, Hp) f32 accumulator
    # (pl.when init/finalize, axis "arbitrary") instead of full residency.

    recon_p, hsp_p = pl.pallas_call(
        functools.partial(_sae_kernel, k, d),
        out_shape=(jax.ShapeDtypeStruct((n_pad, dp), jnp.float32),
                   jax.ShapeDtypeStruct((n_pad, hp), jnp.float32)),
        grid_spec=pltpu.PrefetchScalarGridSpec(
            num_scalar_prefetch=0,
            grid=(n_pad // tm,),
            in_specs=[
                pl.BlockSpec((tm, dp), lambda i: (i, 0)),     # x rows
                pl.BlockSpec((dp, hp), lambda i: (0, 0)),     # W_enc^T (resident)
                pl.BlockSpec((hp, dp), lambda i: (0, 0)),     # W_dec^T (resident)
                pl.BlockSpec((1, dp), lambda i: (0, 0)),      # pre_bias
                pl.BlockSpec((1, hp), lambda i: (0, 0)),      # folded enc bias
            ],
            out_specs=[
                pl.BlockSpec((tm, dp), lambda i: (i, 0)),     # recon
                pl.BlockSpec((tm, hp), lambda i: (i, 0)),     # h_sparse
            ],
        ),
        compiler_params=pltpu.CompilerParams(
            dimension_semantics=("parallel",),
            vmem_limit_bytes=vmem_limit),
    )(x_p, wenc_t, wdec_t, preb, encb)

    recon = recon_p[:n, :d].reshape(input_shape)
    h_sparse = hsp_p[:n, :h_dim]

    # Metrics: cheap scalar reductions over kernel output (plain-JAX glue).
    absh = jnp.abs(h_sparse)
    metrics = {
        "sparsity_ratio": jnp.mean((h_sparse == 0).astype(jnp.float32)),
        "mean_activation": jnp.mean(absh),
        "std_activation": jnp.std(absh, ddof=1),   # torch.std is unbiased
    }
    return recon, h_sparse, metrics


if __name__ == "__main__":
    # Small shapes consistent with the module: x of shape (B, S, input_dim).
    # D=64 exercises the lane-padding path (64 -> 128); 256 rows give a
    # 2-step parallel row grid at TM=128.
    B, S = 2, 128
    INPUT_DIM, HIDDEN_DIM, K = 64, 256, 8

    key = jax.random.PRNGKey(0)
    kx, ke, kd = jax.random.split(key, 3)
    x = jax.random.normal(kx, (B, S, INPUT_DIM), dtype=jnp.float32)

    # Deterministic synthetic parameters (nn.Linear weight shapes; biases zero
    # as in the module's __init__).
    w_enc = 0.05 * jax.random.normal(ke, (HIDDEN_DIM, INPUT_DIM), jnp.float32)
    w_dec = 0.05 * jax.random.normal(kd, (INPUT_DIM, HIDDEN_DIM), jnp.float32)
    pre_bias = jnp.zeros((INPUT_DIM,), jnp.float32)
    latent_bias = jnp.zeros((HIDDEN_DIM,), jnp.float32)

    x_recon, h_sparse, metrics = sae_forward(
        x, w_enc, w_dec, pre_bias, latent_bias, k=K, tm=128)

    jax.block_until_ready((x_recon, h_sparse, metrics["sparsity_ratio"],
                           metrics["mean_activation"],
                           metrics["std_activation"]))

    assert x_recon.shape == x.shape
    assert h_sparse.shape == (B * S, HIDDEN_DIM)
    print("KERNEL_OK")
</pallas_src>

<mosaic_0001>
module attributes {stable_mosaic.version = 11 : i64} {
  func.func @_sae_kernel(%arg0: i32, %arg1: memref<128x128xf32, #tpu.memory_space<vmem>>, %arg2: memref<128x256xbf16, #tpu.memory_space<vmem>>, %arg3: memref<256x128xbf16, #tpu.memory_space<vmem>>, %arg4: memref<1x128xf32, #tpu.memory_space<vmem>>, %arg5: memref<1x256xf32, #tpu.memory_space<vmem>>, %arg6: memref<128x128xf32, #tpu.memory_space<vmem>>, %arg7: memref<128x256xf32, #tpu.memory_space<vmem>>) attributes {dimension_semantics = [#tpu.dimension_semantics<parallel>], iteration_bounds = array<i64: 2>, scalar_prefetch = 0 : i64, scratch_operands = 0 : i64, tpu.core_type = #tpu.core_type<tc>, window_params = [{transform_indices = @transform_0, window_bounds = array<i64: 128, 128>}, {pipeline_mode = #tpu.pipeline_mode<synchronous>, transform_indices = @transform_1, window_bounds = array<i64: 128, 256>}, {pipeline_mode = #tpu.pipeline_mode<synchronous>, transform_indices = @transform_2, window_bounds = array<i64: 256, 128>}, {pipeline_mode = #tpu.pipeline_mode<synchronous>, transform_indices = @transform_3, window_bounds = array<i64: 1, 128>}, {pipeline_mode = #tpu.pipeline_mode<synchronous>, transform_indices = @transform_4, window_bounds = array<i64: 1, 256>}, {transform_indices = @transform_5, window_bounds = array<i64: 128, 128>}, {transform_indices = @transform_6, window_bounds = array<i64: 128, 256>}]} {
    %c0 = arith.constant 0 : index
    %c0_0 = arith.constant 0 : index
    %0 = vector.load %arg1[%c0, %c0_0] : memref<128x128xf32, #tpu.memory_space<vmem>>, vector<128x128xf32>
    %cst = arith.constant dense<0.000000e+00> : vector<128xf32>
    %1 = vector.multi_reduction <add>, %0, %cst [1] : vector<128x128xf32> to vector<128xf32>
    %2 = vector.shape_cast %1 : vector<128xf32> to vector<128x1xf32>
    %cst_1 = arith.constant 1.562500e-02 : f32
    %3 = vector.broadcast %cst_1 : f32 to vector<128x1xf32>
    %4 = arith.mulf %2, %3 : vector<128x1xf32>
    %5 = vector.broadcast %4 : vector<128x1xf32> to vector<128x128xf32>
    %6 = arith.subf %0, %5 : vector<128x128xf32>
    %7 = tpu.iota {dimensions = array<i32: 1>} : vector<1x128xi32>
    %c64_i32 = arith.constant 64 : i32
    %8 = vector.broadcast %c64_i32 : i32 to vector<1x128xi32>
    %9 = arith.cmpi slt, %7, %8 : vector<1x128xi32>
    %cst_2 = arith.constant 0.000000e+00 : f32
    %10 = vector.shape_cast %9 : vector<1x128xi1> to vector<1x128xi1>
    %11 = vector.broadcast %10 : vector<1x128xi1> to vector<128x128xi1>
    %12 = vector.broadcast %cst_2 : f32 to vector<128x128xf32>
    %13 = arith.select %11, %6, %12 : vector<128x128xi1>, vector<128x128xf32>
    %14 = arith.mulf %13, %13 : vector<128x128xf32>
    %cst_3 = arith.constant dense<0.000000e+00> : vector<128xf32>
    %15 = vector.multi_reduction <add>, %14, %cst_3 [1] : vector<128x128xf32> to vector<128xf32>
    %16 = vector.shape_cast %15 : vector<128xf32> to vector<128x1xf32>
    %cst_4 = arith.constant 0.0158730168 : f32
    %17 = vector.broadcast %cst_4 : f32 to vector<128x1xf32>
    %18 = arith.mulf %16, %17 : vector<128x1xf32>
    %19 = math.sqrt %18 : vector<128x1xf32>
    %cst_5 = arith.constant 9.99999974E-6 : f32
    %20 = vector.broadcast %cst_5 : f32 to vector<128x1xf32>
    %21 = arith.addf %19, %20 : vector<128x1xf32>
    %cst_6 = arith.constant 1.000000e+00 : f32
    %22 = vector.broadcast %cst_6 : f32 to vector<128x1xf32>
    %23 = arith.divf %22, %21 : vector<128x1xf32>
    %24 = vector.broadcast %23 : vector<128x1xf32> to vector<128x128xf32>
    %25 = arith.mulf %13, %24 : vector<128x128xf32>
    %c0_7 = arith.constant 0 : index
    %c0_8 = arith.constant 0 : index
    %26 = vector.load %arg2[%c0_7, %c0_8] : memref<128x256xbf16, #tpu.memory_space<vmem>>, vector<128x256xbf16>
    %27 = arith.truncf %25 : vector<128x128xf32> to vector<128x128xbf16>
    %cst_9 = arith.constant dense<0.000000e+00> : vector<128x256xf32>
    %28 = tpu.matmul %27, %26, %cst_9 {dimension_numbers = #tpu.dot_dimension_numbers<[1], [0], [0], [1], [0, 0, 1, 1], [], []>} : vector<128x128xbf16>, vector<128x256xbf16>, vector<128x256xf32> -> vector<128x256xf32>
    %c0_10 = arith.constant 0 : index
    %c0_11 = arith.constant 0 : index
    %29 = vector.load %arg5[%c0_10, %c0_11] : memref<1x256xf32, #tpu.memory_space<vmem>>, vector<1x256xf32>
    %30 = vector.broadcast %29 : vector<1x256xf32> to vector<128x256xf32>
    %31 = arith.addf %28, %30 : vector<128x256xf32>
    %cst_12 = arith.constant 0.000000e+00 : f32
    %32 = vector.broadcast %cst_12 : f32 to vector<128x256xf32>
    %33 = arith.maximumf %31, %32 : vector<128x256xf32>
    %cst_13 = arith.constant dense<0xFF800000> : vector<128xf32>
    %34 = vector.multi_reduction <maximumf>, %33, %cst_13 [1] : vector<128x256xf32> to vector<128xf32>
    %35 = vector.shape_cast %34 : vector<128xf32> to vector<128x1xf32>
    %36 = vector.broadcast %35 : vector<128x1xf32> to vector<128x256xf32>
    %37 = arith.cmpf oge, %33, %36 : vector<128x256xf32>
    %cst_14 = arith.constant 0xFF800000 : f32
    %38 = vector.broadcast %cst_14 : f32 to vector<128x256xf32>
    %39 = arith.select %37, %38, %33 : vector<128x256xi1>, vector<128x256xf32>
    %cst_15 = arith.constant dense<0xFF800000> : vector<128xf32>
    %40 = vector.multi_reduction <maximumf>, %39, %cst_15 [1] : vector<128x256xf32> to vector<128xf32>
    %41 = vector.shape_cast %40 : vector<128xf32> to vector<128x1xf32>
    %42 = vector.broadcast %41 : vector<128x1xf32> to vector<128x256xf32>
    %43 = arith.cmpf oge, %39, %42 : vector<128x256xf32>
    %cst_16 = arith.constant 0xFF800000 : f32
    %44 = vector.broadcast %cst_16 : f32 to vector<128x256xf32>
    %45 = arith.select %43, %44, %39 : vector<128x256xi1>, vector<128x256xf32>
    %cst_17 = arith.constant dense<0xFF800000> : vector<128xf32>
    %46 = vector.multi_reduction <maximumf>, %45, %cst_17 [1] : vector<128x256xf32> to vector<128xf32>
    %47 = vector.shape_cast %46 : vector<128xf32> to vector<128x1xf32>
    %48 = vector.broadcast %47 : vector<128x1xf32> to vector<128x256xf32>
    %49 = arith.cmpf oge, %45, %48 : vector<128x256xf32>
    %cst_18 = arith.constant 0xFF800000 : f32
    %50 = vector.broadcast %cst_18 : f32 to vector<128x256xf32>
    %51 = arith.select %49, %50, %45 : vector<128x256xi1>, vector<128x256xf32>
    %cst_19 = arith.constant dense<0xFF800000> : vector<128xf32>
    %52 = vector.multi_reduction <maximumf>, %51, %cst_19 [1] : vector<128x256xf32> to vector<128xf32>
    %53 = vector.shape_cast %52 : vector<128xf32> to vector<128x1xf32>
    %54 = vector.broadcast %53 : vector<128x1xf32> to vector<128x256xf32>
    %55 = arith.cmpf oge, %51, %54 : vector<128x256xf32>
    %cst_20 = arith.constant 0xFF800000 : f32
    %56 = vector.broadcast %cst_20 : f32 to vector<128x256xf32>
    %57 = arith.select %55, %56, %51 : vector<128x256xi1>, vector<128x256xf32>
    %cst_21 = arith.constant dense<0xFF800000> : vector<128xf32>
    %58 = vector.multi_reduction <maximumf>, %57, %cst_21 [1] : vector<128x256xf32> to vector<128xf32>
    %59 = vector.shape_cast %58 : vector<128xf32> to vector<128x1xf32>
    %60 = vector.broadcast %59 : vector<128x1xf32> to vector<128x256xf32>
    %61 = arith.cmpf oge, %57, %60 : vector<128x256xf32>
    %cst_22 = arith.constant 0xFF800000 : f32
    %62 = vector.broadcast %cst_22 : f32 to vector<128x256xf32>
    %63 = arith.select %61, %62, %57 : vector<128x256xi1>, vector<128x256xf32>
    %cst_23 = arith.constant dense<0xFF800000> : vector<128xf32>
    %64 = vector.multi_reduction <maximumf>, %63, %cst_23 [1] : vector<128x256xf32> to vector<128xf32>
    %65 = vector.shape_cast %64 : vector<128xf32> to vector<128x1xf32>
    %66 = vector.broadcast %65 : vector<128x1xf32> to vector<128x256xf32>
    %67 = arith.cmpf oge, %63, %66 : vector<128x256xf32>
    %cst_24 = arith.constant 0xFF800000 : f32
    %68 = vector.broadcast %cst_24 : f32 to vector<128x256xf32>
    %69 = arith.select %67, %68, %63 : vector<128x256xi1>, vector<128x256xf32>
    %cst_25 = arith.constant dense<0xFF800000> : vector<128xf32>
    %70 = vector.multi_reduction <maximumf>, %69, %cst_25 [1] : vector<128x256xf32> to vector<128xf32>
    %71 = vector.shape_cast %70 : vector<128xf32> to vector<128x1xf32>
    %72 = vector.broadcast %71 : vector<128x1xf32> to vector<128x256xf32>
    %73 = arith.cmpf oge, %69, %72 : vector<128x256xf32>
    %cst_26 = arith.constant 0xFF800000 : f32
    %74 = vector.broadcast %cst_26 : f32 to vector<128x256xf32>
    %75 = arith.select %73, %74, %69 : vector<128x256xi1>, vector<128x256xf32>
    %cst_27 = arith.constant dense<0xFF800000> : vector<128xf32>
    %76 = vector.multi_reduction <maximumf>, %75, %cst_27 [1] : vector<128x256xf32> to vector<128xf32>
    %77 = vector.shape_cast %76 : vector<128xf32> to vector<128x1xf32>
    %78 = vector.broadcast %77 : vector<128x1xf32> to vector<128x256xf32>
    %79 = arith.cmpf oge, %33, %78 : vector<128x256xf32>
    %cst_28 = arith.constant 0.000000e+00 : f32
    %80 = vector.broadcast %cst_28 : f32 to vector<128x256xf32>
    %81 = arith.select %79, %33, %80 : vector<128x256xi1>, vector<128x256xf32>
    %c0_29 = arith.constant 0 : index
    %c0_30 = arith.constant 0 : index
    %82 = vector.load %arg7[%c0_29, %c0_30] : memref<128x256xf32, #tpu.memory_space<vmem>>, vector<128x256xf32>
    tpu.vector_store %arg7[%c0_29, %c0_30], %81 {strides = array<i32>} : memref<128x256xf32, #tpu.memory_space<vmem>>, vector<128x256xf32>,
    %c0_31 = arith.constant 0 : index
    %c0_32 = arith.constant 0 : index
    %83 = vector.load %arg3[%c0_31, %c0_32] : memref<256x128xbf16, #tpu.memory_space<vmem>>, vector<256x128xbf16>
    %84 = arith.truncf %81 : vector<128x256xf32> to vector<128x256xbf16>
    %cst_33 = arith.constant dense<0.000000e+00> : vector<128x128xf32>
    %85 = tpu.matmul %84, %83, %cst_33 {dimension_numbers = #tpu.dot_dimension_numbers<[1], [0], [0], [1], [0, 0, 1, 1], [], []>} : vector<128x256xbf16>, vector<256x128xbf16>, vector<128x128xf32> -> vector<128x128xf32>
    %c0_34 = arith.constant 0 : index
    %c0_35 = arith.constant 0 : index
    %86 = vector.load %arg4[%c0_34, %c0_35] : memref<1x128xf32, #tpu.memory_space<vmem>>, vector<1x128xf32>
    %87 = vector.broadcast %86 : vector<1x128xf32> to vector<128x128xf32>
    %88 = arith.addf %85, %87 : vector<128x128xf32>
    %89 = vector.broadcast %19 : vector<128x1xf32> to vector<128x128xf32>
    %90 = arith.mulf %88, %89 : vector<128x128xf32>
    %91 = vector.broadcast %4 : vector<128x1xf32> to vector<128x128xf32>
    %92 = arith.addf %90, %91 : vector<128x128xf32>
    %c0_36 = arith.constant 0 : index
    %c0_37 = arith.constant 0 : index
    %93 = vector.load %arg6[%c0_36, %c0_37] : memref<128x128xf32, #tpu.memory_space<vmem>>, vector<128x128xf32>
    tpu.vector_store %arg6[%c0_36, %c0_37], %92 {strides = array<i32>} : memref<128x128xf32, #tpu.memory_space<vmem>>, vector<128x128xf32>,
    return
  }
  func.func @transform_0(%arg0: i32) -> (i32, i32) {
    %c0_i32 = arith.constant 0 : i32
    %c0_i32_0 = arith.constant 0 : i32
    return %arg0, %c0_i32 : i32, i32
  }
  func.func @transform_1(%arg0: i32) -> (i32, i32) {
    %c0_i32 = arith.constant 0 : i32
    %c0_i32_0 = arith.constant 0 : i32
    %c0_i32_1 = arith.constant 0 : i32
    return %c0_i32, %c0_i32_0 : i32, i32
  }
  func.func @transform_2(%arg0: i32) -> (i32, i32) {
    %c0_i32 = arith.constant 0 : i32
    %c0_i32_0 = arith.constant 0 : i32
    %c0_i32_1 = arith.constant 0 : i32
    return %c0_i32, %c0_i32_0 : i32, i32
  }
  func.func @transform_3(%arg0: i32) -> (i32, i32) {
    %c0_i32 = arith.constant 0 : i32
    %c0_i32_0 = arith.constant 0 : i32
    %c0_i32_1 = arith.constant 0 : i32
    return %c0_i32, %c0_i32_0 : i32, i32
  }
  func.func @transform_4(%arg0: i32) -> (i32, i32) {
    %c0_i32 = arith.constant 0 : i32
    %c0_i32_0 = arith.constant 0 : i32
    %c0_i32_1 = arith.constant 0 : i32
    return %c0_i32, %c0_i32_0 : i32, i32
  }
  func.func @transform_5(%arg0: i32) -> (i32, i32) {
    %c0_i32 = arith.constant 0 : i32
    %c0_i32_0 = arith.constant 0 : i32
    return %arg0, %c0_i32 : i32, i32
  }
  func.func @transform_6(%arg0: i32) -> (i32, i32) {
    %c0_i32 = arith.constant 0 : i32
    %c0_i32_0 = arith.constant 0 : i32
    return %arg0, %c0_i32 : i32, i32
  }
}

</mosaic_0001>

<bundles_post_ra>
// kernel: tpu_custom_call.1
= control target key start
LH: loop header
LB: loop body
LE: loop exit
PB: predicated region body
PF: predicated region fallthrough
CT: control target
= control target key end

     0   :  { %12 = vsyncpa [#allocation3], 0  ;;  %s4948_s0 = inlined_call_operand.hbm [shape: f32[256,128], index: 0, kind: input, shape index: {}]   ;;  %s4949_s1 = inlined_call_operand.hbm [shape: bf16[128,256], index: 1, kind: input, shape index: {}]   ;;  %s4950_s2 = inlined_call_operand.hbm [shape: bf16[256,128], index: 2, kind: input, shape index: {}]   ;;  %s4951_s3 = inlined_call_operand.vmem [shape: f32[1,128], index: 3, kind: input, shape index: {}]   ;;  %s4952_s4 = inlined_call_operand.vmem [shape: f32[1,256], index: 4, kind: input, shape index: {}]   ;;  %s4953_s5 = inlined_call_operand.hbm [shape: f32[256,128], index: 5, kind: output, shape index: {0}]   ;;  %s4954_s6 = inlined_call_operand.hbm [shape: f32[256,256], index: 6, kind: output, shape index: {1}]  }
   0x1   :  { %14 = vsyncpa [#allocation3 + $0x1], 0 }
   0x2   :  { %15 = vsyncpa [#allocation6], 0 }
   0x3   :  { %16 = vsyncpa [#allocation4], 0 }
   0x4   :  { %18 = vsyncpa [#allocation4 + $0x1], 0 }
   0x5   :  { %19 = vsyncpa [#allocation10], 0 }
   0x6   :  { %21 = vsyncpa [#allocation10 + $0x1], 0  ;;  %s2896_s21 = smov 0   ;;  %s2898_s22 = smov 0  }
   0x7   :  { %s2900_s23 = smov 0   ;;  %s2902_s24 = smov 0  }
   0x8 LB: > { %s2917_s25 = sadd.s32 4294967295, %s2845_s24   ;;  %s2300_s26 = sadd.s32 4294967294, %s2845_s24   ;;  %s2845_s24 = sphi %s2902_s24, %s5118_s24   ;;  %s2841_s23 = sphi %s2900_s23, %s5117_s23   ;;  %s2837_s22 = sphi %s2898_s22, %s5116_s22   ;;  %s2833_s21 = sphi %s2896_s21, %s5115_s21  }
   0x9   : > { %p47_p0 = scmp.ne.s32.totalorder %s2837_s22, %s2833_s21  ;;  %p4955_p1 = scmp.eq.s32.totalorder %s2917_s25, 0 }
   0xa   : > { %p161_p3 = scmp.eq.s32.totalorder %s2300_s26, 1  ;;  %p2301_p5 = scmp.ge.s32.totalorder %s2845_s24, 1 }
   0xb   : > { %p2926_p4 = por %p4955_p1, %p47_p0  ;;  %p194_p7 = scmp.lt.s32.totalorder %s2845_s24, 3 }
   0xc   : > { %p2931_p6 = por %p161_p3, %p47_p0  ;;  %s2847_s30 = smov [#allocation5]  }
   0xd   : > { %s5014_s27 = scalar_select %p2926_p4, 1, 0 }
   0xe   : > { %s5015_s28 = scalar_select %p2931_p6, 1, 0 }
   0xf   : > { %p2936_p8 = pnand %p2301_p5, %p194_p7  ;;  %s206_s7 = sshll.u32 %s2847_s30, 4  ;;  %s2940_s7 = int_to_ptr.vmem [resolvable:$true] %s206_s7 }
  0x10   : > { %s2848_s9 = smov [#allocation7]   ;;  %s2657_s13 = scalar_lea.hbm %s4949_s1, 2048 }
  0x11   : > { %p2486_p9 = pneg %p2936_p8  ;;  %s219_s10 = sshll.u32 %s2848_s9, 4  ;;  %s2951_s10 = int_to_ptr.vmem [resolvable:$true] %s219_s10 }
  0x12   : > { %p2658_p12 = scmp.ne.s32.totalorder %s4949_s1, %s2657_s13  ;;  %p2664_p5 = scmp.lt.u32.totalorder %s2657_s13, %s4949_s1 }
  0x13   : > { %p2947_p11 = pnand %p2486_p9, %p4955_p1 }
  0x15   : > { %p2659_p13 = pneg %p2947_p11 }
  0x17   : > { %p2660_p0 = pnand %p2659_p13, %p2658_p12 }
  0x19   : > { %p2661_p3 = pneg %p2660_p0 }
  0x1b   : > { %p2666_p7 = pnand %p2664_p5, %p2661_p3 }
  0x1d   : > { %2669 = shalt.err (!%p2666_p7)
}
  0x1e   : > { %s2670_s18 = scalar_lea.vmem %s2940_s7, 2048  ;;  %p2678_p2 = scmp.lt.s32.totalorder %s2940_s7, %s2940_s7 }
  0x1f   : > { %p2671_p9 = scmp.ne.s32.totalorder %s2940_s7, %s2670_s18  ;;  %p2679_p12 = scmp.lt.s32.totalorder %s2670_s18, %s2670_s18 }
  0x21   : > { %p2673_p10 = pnand %p2671_p9, %p2659_p13  ;;  %p2680_p0 = por %p2679_p12, %p2678_p2 }
  0x23   : > { %p2674_p1 = pneg %p2673_p10 }
  0x25   : > { %p2681_p6 = pnand %p2680_p0, %p2674_p1 }
  0x27   : > { %2684 = shalt.err (!%p2681_p6)
}
  0x28   : > { %s2849_s19 = smov 128   ;;  %s2850_s20 = smov 8  }
  0x29   : > { %2489 = dma.hbm_to_vmem [thread:$0]  (!%p2947_p11), %s4949_s1, 2048, %s2940_s7, [#allocation6], %s2849_s19, %s2849_s19, %s2850_s20  }
  0x2a   : > { %s2685_s12 = scalar_lea.hbm %s4950_s2, 2048 }
  0x2b   : > { %p2686_p1 = scmp.ne.s32.totalorder %s4950_s2, %s2685_s12  ;;  %p2692_p10 = scmp.lt.u32.totalorder %s2685_s12, %s4950_s2 }
  0x2d   : > { %p2688_p2 = pnand %p2686_p1, %p2659_p13 }
  0x2f   : > { %p2689_p6 = pneg %p2688_p2 }
  0x31   : > { %p2694_p3 = pnand %p2692_p10, %p2689_p6 }
  0x33   : > { %2697 = shalt.err (!%p2694_p3)
}
  0x34   : > { %s2698_s7 = scalar_lea.vmem %s2951_s10, 2048  ;;  %p2706_p12 = scmp.lt.s32.totalorder %s2951_s10, %s2951_s10 }
  0x35   : > { %p2699_p5 = scmp.ne.s32.totalorder %s2951_s10, %s2698_s7  ;;  %p2707_p0 = scmp.lt.s32.totalorder %s2698_s7, %s2698_s7 }
  0x37   : > { %p2701_p7 = pnand %p2699_p5, %p2659_p13  ;;  %p2708_p1 = por %p2707_p0, %p2706_p12 }
  0x39   : > { %p2702_p9 = pneg %p2701_p7 }
  0x3b   : > { %p2709_p2 = pnand %p2708_p1, %p2702_p9 }
  0x3d   : > { %2712 = shalt.err (!%p2709_p2)
}
  0x3e   : > { %s2851_s17 = smov 64   ;;  %s2852_s18 = smov 4  }
  0x3f   : > { %2492 = dma.hbm_to_vmem [thread:$0]  (!%p2947_p11), %s4950_s2, 2048, %s2951_s10, [#allocation6], %s2851_s17, %s2851_s17, %s2852_s18  }
  0x40   : > { %s3009_s9 = sadd.s32 1, %s2845_s24   ;;  %s34_s12 = sadd.s32 1, %s2841_s23 }
  0x41   : > { %s31_s11 = ssub.s32 %s2845_s24, %s3009_s9  ;;  %p41_p6 = scmp.ne.s32.totalorder %s2841_s23, %s2837_s22 }
  0x42   : > { %p32_p13 = scmp.eq.s32.totalorder %s31_s11, 0  ;;  %p42_p10 = scmp.eq.s32.totalorder %s2845_s24, 0 }
  0x43   : > { %p5018_p5 = scmp.eq.s32.totalorder %s2917_s25, 1  ;;  %p2506_p9 = scmp.lt.s32.totalorder %s2845_s24, 2 }
  0x44   : > { %s3018_s13 = scalar_select %p32_p13, %s2841_s23, %s34_s12  }
  0x45   : > { %p43_p3 = por %p42_p10, %p41_p6  ;;  %p3022_p7 = por %p5018_p5, %p41_p6 }
  0x46   : > { %s239_s8 = sand.u32 1, %s2841_s23   ;;  %s2404_s10 = sshll.u32 %s2845_s24, 11 }
  0x47   : > { %s5019_s14 = scalar_select %p3022_p7, 1, 0 }
  0x48   : > { %s2305_s15 = sshll.u32 %s239_s8, 7  ;;  %s3032_s17 = scalar_lea.hbm %s4948_s0, %s2404_s10 }
  0x49   : > { %s243_s18 = scalar_lea.vmem [#allocation2], %s2305_s15  ;;  %p3036_p11 = pnand %p2506_p9, %p43_p3 }
  0x4a   : > { %s250_s26 = sshll.u32 %s243_s18, 4  ;;  %s3040_s11 = scalar_lea.sflag [#allocation3], %s239_s8  ;;  %s3034_s26 = int_to_ptr.vmem [resolvable:$true] %s250_s26 }
  0x4b   : > { %s2713_s12 = scalar_lea.hbm %s3032_s17, 2048  ;;  %p2715_p0 = pneg %p3036_p11 }
  0x4c   : > { %p2714_p12 = scmp.ne.s32.totalorder %s3032_s17, %s2713_s12  ;;  %s2718_s16 = scalar_lea.hbm %s4948_s0, 4096 }
  0x4d   : > { %p2719_p13 = scmp.lt.u32.totalorder %s3032_s17, %s4948_s0  ;;  %p2720_p6 = scmp.lt.u32.totalorder %s2718_s16, %s2713_s12 }
  0x4e   : > { %p2716_p1 = pnand %p2715_p0, %p2714_p12  ;;  %p2722_p3 = scmp.lt.u32.totalorder %s2713_s12, %s3032_s17 }
  0x4f   : > { %p2721_p10 = por %p2720_p6, %p2719_p13 }
  0x50   : > { %p2717_p2 = pneg %p2716_p1 }
  0x51   : > { %p2723_p5 = por %p2722_p3, %p2721_p10 }
  0x53   : > { %p2724_p9 = pnand %p2723_p5, %p2717_p2 }
  0x55   : > { %2727 = shalt.err (!%p2724_p9)
}
  0x56   : > { %s2728_s8 = scalar_lea.vmem %s3034_s26, 2048  ;;  %s2853_s15 = smov [#allocation2]  }
  0x57   : > { %p2729_p12 = scmp.ne.s32.totalorder %s3034_s26, %s2728_s8  ;;  %s2733_s10 = sshll.u32 %s2853_s15, 4  ;;  %s2734_s10 = int_to_ptr.vmem [resolvable:$false] %s2733_s10 }
  0x58   : > { %s2735_s7 = scalar_lea.vmem %s2734_s10, 4096  ;;  %p2736_p4 = scmp.lt.s32.totalorder %s3034_s26, %s2734_s10 }
  0x59   : > { %p2731_p1 = pnand %p2729_p12, %p2715_p0  ;;  %p2737_p13 = scmp.lt.s32.totalorder %s2735_s7, %s2728_s8 }
  0x5b   : > { %p2732_p7 = pneg %p2731_p1  ;;  %p2738_p6 = por %p2737_p13, %p2736_p4 }
  0x5d   : > { %p2739_p10 = pnand %p2738_p6, %p2732_p7 }
  0x5f   : > { %2742 = shalt.err (!%p2739_p10)
}
  0x60   : > { %2496 = dma.hbm_to_vmem [thread:$0]  (!%p3036_p11), %s3032_s17, 2048, %s3034_s26, %s3040_s11, %s2849_s19, %s2849_s19, %s2850_s20  }
  0x61   : > { %262 = sbr.rel (%p2936_p8) target bundleno = 2125 (0x84d), region = 40 }
  0x68   : > { %s3074_s12 = sand.u32 1, %s2837_s22   ;;  %p5021_p4 = scmp.ne.s32.totalorder %s5014_s27, 0 }
  0x69   : > { %s2309_s16 = sshll.u32 %s3074_s12, 7  ;;  %s265_s18 = scalar_lea.sflag [#allocation3], %s3074_s12 }
  0x6a   : > { %s3080_s30 = scalar_lea.vmem [#allocation2], %s2309_s16 }
  0x6b   : > { %2816 = dma.done.wait (%p5021_p4), %s265_s18, 2048  }
  0x6c   : > { %2818 = vsyncadd (%p5021_p4), %s265_s18, 4294965248  ;;  %p5022_p7 = scmp.eq.s32.totalorder %s2917_s25, 0 }
  0x6e   : > { %2820 = dma.done.wait (%p5022_p7), [#allocation6], 4096   ;;  %p5023_p8 = pmov %p5022_p7 }
  0x6f   : > { %v314_v0 = vld [vmem:[%s3080_s30] sm:$0xff]  ;;  %v316_v1 = vld [vmem:[%s3080_s30 + $0x10] sm:$0xff]  ;;  %v315_v2 = vld [vmem:[%s3080_s30 + $0x8] sm:$0xff]  ;;  %v394_v16 = vlaneseq  ;;  %s2313_s19 = sshll.u32 %s3074_s12, 8  ;;  %s2407_s17 = sshll.u32 %s2917_s25, 12 }
  0x70   : > { %2822 = vsyncadd (%p5023_p8), [#allocation6], 4294963200  ;;  %330 = vadd.xlane.f32.xlu0 %v314_v0  ;;  %334 = vadd.xlane.f32.xlu1 %v316_v1  ;;  %v317_v3 = vld [vmem:[%s3080_s30 + $0x18] sm:$0xff]  ;;  %v3095_v4 = vld [vmem:[%s3080_s30 + $0x20] sm:$0xff]  ;;  %s4635_s20 = scalar_lea.vmem [#allocation9], %s2313_s19  ;;  %s4796_s15 = scalar_lea.hbm %s4954_s6, %s2407_s17 }
  0x71   : > { %v319_v5 = vld [vmem:[%s3080_s30 + $0x28] sm:$0xff]  ;;  %v3099_v6 = vld [vmem:[%s3080_s30 + $0x30] sm:$0xff]  ;;  %v3102_v7 = vld [vmem:[%s3080_s30 + $0x38] sm:$0xff]  ;;  %v3140_v17 = vand.u32 127, %v394_v16  ;;  %s2176_s26 = sshll.u32 %s4635_s20, 4  ;;  %s2146_s10 = scalar_lea.sflag [#allocation10], %s3074_s12  ;;  %s4798_s26 = int_to_ptr.vmem [resolvable:$true] %s2176_s26 }
  0x72   : > { %v3106_v8 = vld [vmem:[%s3080_s30 + $0x40] sm:$0xff]  ;;  %v3109_v9 = vld [vmem:[%s3080_s30 + $0x48] sm:$0xff]  ;;  %v3114_v10 = vld [vmem:[%s3080_s30 + $0x50] sm:$0xff]  ;;  %s2743_s7 = scalar_lea.vmem %s4798_s26, 4096  ;;  %p5080_p0 = scmp.ne.s32.totalorder %s5019_s14, 0 }
  0x73   : > { %v3119_v11 = vld [vmem:[%s3080_s30 + $0x58] sm:$0xff]  ;;  %v3124_v12 = vld [vmem:[%s3080_s30 + $0x60] sm:$0xff]  ;;  %v3127_v13 = vld [vmem:[%s3080_s30 + $0x68] sm:$0xff]  ;;  %vm396_vm0 = vcmp.lt.s32.totalorder %v3140_v17, 64  ;;  %p2744_p11 = scmp.ne.s32.totalorder %s4798_s26, %s2743_s7  ;;  %s2855_s18 = smov [#allocation9]  }
  0x74   : > { %332 = vadd.xlane.f32.xlu0 %v315_v2  ;;  %336 = vadd.xlane.f32.xlu1 %v317_v3  ;;  %v3132_v14 = vld [vmem:[%s3080_s30 + $0x70] sm:$0xff]  ;;  %v3135_v15 = vld [vmem:[%s3080_s30 + $0x78] sm:$0xff]  ;;  %v2565_v17 = vld [vmem:[#allocation5 + $0x44] ss:$8 sps:$4 sm:$0xff]   ;;  %s2747_s30 = sshll.u32 %s2855_s18, 4  ;;  %s2748_s30 = int_to_ptr.vmem [resolvable:$false] %s2747_s30 }
  0x75   : > { %p2745_p2 = pnand %p2744_p11, %p5080_p0  ;;  %s2749_s27 = scalar_lea.vmem %s2748_s30, 8192 }
  0x76   : > { %p2750_p5 = scmp.lt.s32.totalorder %s4798_s26, %s2748_s30  ;;  %p2751_p9 = scmp.lt.s32.totalorder %s2749_s27, %s2743_s7 }
  0x77   : > { %p2746_p3 = pneg %p2745_p2 }
  0x78   : > { %338 = vadd.xlane.f32.xlu0 %v3095_v4  ;;  %340 = vadd.xlane.f32.xlu1 %v319_v5  ;;  %p2752_p12 = por %p2751_p9, %p2750_p5 }
  0x7a   : > { %p2753_p1 = pnand %p2752_p12, %p2746_p3 }
  0x7c   : > { %342 = vadd.xlane.f32.xlu0 %v3099_v6  ;;  %344 = vadd.xlane.f32.xlu1 %v3102_v7 }
  0x80   : > { %346 = vadd.xlane.f32.xlu0 %v3106_v8  ;;  %348 = vadd.xlane.f32.xlu1 %v3109_v9 }
  0x84   : > { %350 = vadd.xlane.f32.xlu0 %v3114_v10  ;;  %352 = vadd.xlane.f32.xlu1 %v3119_v11 }
  0x88   : > { %354 = vadd.xlane.f32.xlu0 %v3124_v12  ;;  %356 = vadd.xlane.f32.xlu1 %v3127_v13 }
  0x8c   : > { %358 = vadd.xlane.f32.xlu0 %v3132_v14  ;;  %360 = vadd.xlane.f32.xlu1 %v3135_v15 }
  0xfd   : > { %v331_v18 = vpop.xlane.xlu0 %330  ;;  %v335_v19 = vpop.xlane.xlu1 %334 }
  0xfe   : > { %v3142_v20 = vmul.f32 0.015625, %v331_v18  ;;  %v3144_v21 = vmul.f32 0.015625, %v335_v19 }
 0x100   : > { %5024 = vst [vmem:[#allocation15_spill] sm:$0xff] %v3142_v20  ;;  %5025 = vst [vmem:[#allocation16_spill] sm:$0xff] %v3144_v21  ;;  %v378_v22 = vsub.f32 %v314_v0, %v3142_v20  ;;  %v380_v23 = vsub.f32 %v316_v1, %v3144_v21 }
 0x101   : > { %v333_v24 = vpop.xlane.xlu0 %332  ;;  %v337_v25 = vpop.xlane.xlu1 %336 }
 0x102   : > { %v3149_v26 = vmul.f32 0.015625, %v333_v24  ;;  %v3151_v27 = vmul.f32 0.015625, %v337_v25  ;;  %v3155_v28 = vsel %vm396_vm0, %v378_v22, 0.0  ;;  %v3159_v29 = vsel %vm396_vm0, %v380_v23, 0.0 }
 0x103   : > { %v415_v30 = vmul.f32 %v3155_v28, %v3155_v28  ;;  %v417_v35 = vmul.f32 %v3159_v29, %v3159_v29 }
 0x104   : > { %5026 = vst [vmem:[#allocation17_spill] sm:$0xff] %v3149_v26  ;;  %5027 = vst [vmem:[#allocation18_spill] sm:$0xff] %v3151_v27  ;;  %v379_v31 = vsub.f32 %v315_v2, %v3149_v26  ;;  %v381_v32 = vsub.f32 %v317_v3, %v3151_v27 }
 0x105   : > { %431 = vadd.xlane.f32.xlu0 %v415_v30  ;;  %v339_v33 = vpop.xlane.xlu0 %338  ;;  %v341_v34 = vpop.xlane.xlu1 %340 }
 0x106   : > { %v3167_v36 = vmul.f32 0.015625, %v339_v33  ;;  %v3169_v37 = vmul.f32 0.015625, %v341_v34  ;;  %v3173_v38 = vsel %vm396_vm0, %v379_v31, 0.0  ;;  %v3177_v39 = vsel %vm396_vm0, %v381_v32, 0.0  ;;  %v2553_v31 = vld [vmem:[#allocation5 + $0x4] ss:$8 sps:$4 sm:$0xff]  }
 0x107   : > { %v416_v40 = vmul.f32 %v3173_v38, %v3173_v38  ;;  %v418_v45 = vmul.f32 %v3177_v39, %v3177_v39  ;;  %771 = vmatprep.subr.bf16.mxu0 %v2553_v31 }
 0x108   : > { %5028 = vst [vmem:[#allocation19_spill] sm:$0xff] %v3167_v36  ;;  %5029 = vst [vmem:[#allocation20_spill] sm:$0xff] %v3169_v37  ;;  %v382_v41 = vsub.f32 %v3095_v4, %v3167_v36  ;;  %v383_v42 = vsub.f32 %v319_v5, %v3169_v37 }
 0x109   : > { %435 = vadd.xlane.f32.xlu0 %v417_v35  ;;  %433 = vadd.xlane.f32.xlu1 %v416_v40  ;;  %v343_v43 = vpop.xlane.xlu0 %342  ;;  %v345_v44 = vpop.xlane.xlu1 %344  ;;  %v2555_v35 = vld [vmem:[#allocation5] ss:$8 sps:$4 sm:$0xff]  }
 0x10a   : > { %v3186_v46 = vmul.f32 0.015625, %v343_v43  ;;  %v3188_v47 = vmul.f32 0.015625, %v345_v44  ;;  %v3192_v48 = vsel %vm396_vm0, %v382_v41, 0.0  ;;  %v3196_v49 = vsel %vm396_vm0, %v383_v42, 0.0  ;;  %772 = vmatpush1.bf16.msra.mxu0 %v2555_v35 }
 0x10b   : > { %v419_v50 = vmul.f32 %v3192_v48, %v3192_v48  ;;  %v420_v55 = vmul.f32 %v3196_v49, %v3196_v49 }
 0x10c   : > { %5030 = vst [vmem:[#allocation21_spill] sm:$0xff] %v3186_v46  ;;  %5031 = vst [vmem:[#allocation22_spill] sm:$0xff] %v3188_v47  ;;  %v384_v51 = vsub.f32 %v3099_v6, %v3186_v46  ;;  %v385_v52 = vsub.f32 %v3102_v7, %v3188_v47 }
 0x10d   : > { %437 = vadd.xlane.f32.xlu1 %v418_v45  ;;  %439 = vadd.xlane.f32.xlu0 %v419_v50  ;;  %v347_v53 = vpop.xlane.xlu0 %346  ;;  %v349_v54 = vpop.xlane.xlu1 %348  ;;  %v2556_v45 = vld [vmem:[#allocation5 + $0x14] ss:$8 sps:$4 sm:$0xff]  }
 0x10e   : > { %v3206_v56 = vmul.f32 0.015625, %v347_v53  ;;  %v3208_v57 = vmul.f32 0.015625, %v349_v54  ;;  %v3212_v58 = vsel %vm396_vm0, %v384_v51, 0.0  ;;  %v3216_v59 = vsel %vm396_vm0, %v385_v52, 0.0  ;;  %v2558_v51 = vld [vmem:[#allocation5 + $0x10] ss:$8 sps:$4 sm:$0xff]   ;;  %773 = vmatprep.subr.bf16.mxu0 %v2556_v45 }
 0x10f   : > { %v421_v60 = vmul.f32 %v3212_v58, %v3212_v58  ;;  %v422_v1 = vmul.f32 %v3216_v59, %v3216_v59  ;;  %774 = vmatpush1.bf16.msra.mxu0 %v2558_v51 }
 0x110   : > { %5032 = vst [vmem:[#allocation23_spill] sm:$0xff] %v3206_v56  ;;  %5033 = vst [vmem:[#allocation24_spill] sm:$0xff] %v3208_v57  ;;  %v386_v61 = vsub.f32 %v3106_v8, %v3206_v56  ;;  %v387_v62 = vsub.f32 %v3109_v9, %v3208_v57 }
 0x111   : > { %441 = vadd.xlane.f32.xlu1 %v420_v55  ;;  %443 = vadd.xlane.f32.xlu0 %v421_v60  ;;  %v351_v63 = vpop.xlane.xlu0 %350  ;;  %v353_v0 = vpop.xlane.xlu1 %352  ;;  %v2561_v55 = vld [vmem:[#allocation5 + $0x20] ss:$8 sps:$4 sm:$0xff]   ;;  %v2562_v60 = vld [vmem:[#allocation5 + $0x34] ss:$8 sps:$4 sm:$0xff]  }
 0x112   : > { %v3226_v2 = vmul.f32 0.015625, %v351_v63  ;;  %v3228_v3 = vmul.f32 0.015625, %v353_v0  ;;  %v3232_v4 = vsel %vm396_vm0, %v386_v61, 0.0  ;;  %v3236_v5 = vsel %vm396_vm0, %v387_v62, 0.0  ;;  %v2564_v61 = vld [vmem:[#allocation5 + $0x30] ss:$8 sps:$4 sm:$0xff]  }
 0x113   : > { %v423_v6 = vmul.f32 %v3232_v4, %v3232_v4  ;;  %v424_v19 = vmul.f32 %v3236_v5, %v3236_v5  ;;  %v2567_v62 = vld [vmem:[#allocation5 + $0x40] ss:$8 sps:$4 sm:$0xff]   ;;  %v2568_v63 = vld [vmem:[#allocation5 + $0x54] ss:$8 sps:$4 sm:$0xff]   ;;  %v2570_v0 = vld [vmem:[#allocation5 + $0x50] ss:$8 sps:$4 sm:$0xff]  }
 0x114   : > { %5034 = vst [vmem:[#allocation25_spill] sm:$0xff] %v3226_v2  ;;  %5035 = vst [vmem:[#allocation26_spill] sm:$0xff] %v3228_v3  ;;  %v388_v7 = vsub.f32 %v3114_v10, %v3226_v2  ;;  %v389_v8 = vsub.f32 %v3119_v11, %v3228_v3 }
 0x115   : > { %445 = vadd.xlane.f32.xlu1 %v422_v1  ;;  %447 = vadd.xlane.f32.xlu0 %v423_v6  ;;  %v355_v9 = vpop.xlane.xlu0 %354  ;;  %v357_v18 = vpop.xlane.xlu1 %356  ;;  %v2571_v1 = vld [vmem:[#allocation5 + $0x64] ss:$8 sps:$4 sm:$0xff]   ;;  %v2573_v6 = vld [vmem:[#allocation5 + $0x60] ss:$8 sps:$4 sm:$0xff]  }
 0x116   : > { %v3246_v22 = vmul.f32 0.015625, %v355_v9  ;;  %v3248_v23 = vmul.f32 0.015625, %v357_v18  ;;  %v3252_v24 = vsel %vm396_vm0, %v388_v7, 0.0  ;;  %v3256_v10 = vsel %vm396_vm0, %v389_v8, 0.0  ;;  %v2574_v7 = vld [vmem:[#allocation5 + $0x74] ss:$8 sps:$4 sm:$0xff]  }
 0x117   : > { %v425_v11 = vmul.f32 %v3252_v24, %v3252_v24  ;;  %v426_v34 = vmul.f32 %v3256_v10, %v3256_v10  ;;  %v2576_v8 = vld [vmem:[#allocation5 + $0x70] ss:$8 sps:$4 sm:$0xff]   ;;  %v2854_v9 = vmov 0  }
 0x118   : > { %5036 = vst [vmem:[#allocation27_spill] sm:$0xff] %v3246_v22  ;;  %5037 = vst [vmem:[#allocation28_spill] sm:$0xff] %v3248_v23  ;;  %v390_v25 = vsub.f32 %v3124_v12, %v3246_v22  ;;  %v391_v30 = vsub.f32 %v3127_v13, %v3248_v23  ;;  %803 = vmatprep.mubr.bf16.mxu0 %v2854_v9 }
 0x119   : > { %449 = vadd.xlane.f32.xlu1 %v424_v19  ;;  %451 = vadd.xlane.f32.xlu0 %v425_v11  ;;  %v359_v32 = vpop.xlane.xlu0 %358  ;;  %v361_v33 = vpop.xlane.xlu1 %360 }
 0x11a   : > { %v3266_v40 = vmul.f32 0.015625, %v359_v32  ;;  %v3268_v41 = vmul.f32 0.015625, %v361_v33  ;;  %v3272_v42 = vsel %vm396_vm0, %v390_v25, 0.0  ;;  %v3276_v12 = vsel %vm396_vm0, %v391_v30, 0.0 }
 0x11b   : > { %v427_v13 = vmul.f32 %v3272_v42, %v3272_v42  ;;  %v428_v50 = vmul.f32 %v3276_v12, %v3276_v12 }
 0x11c   : > { %5038 = vst [vmem:[#allocation29_spill] sm:$0xff] %v3266_v40  ;;  %5039 = vst [vmem:[#allocation30_spill] sm:$0xff] %v3268_v41  ;;  %v392_v43 = vsub.f32 %v3132_v14, %v3266_v40  ;;  %v393_v44 = vsub.f32 %v3135_v15, %v3268_v41  ;;  %v2559_v15 = vld [vmem:[#allocation5 + $0x24] ss:$8 sps:$4 sm:$0xff]  }
 0x11d   : > { %453 = vadd.xlane.f32.xlu1 %v426_v34  ;;  %455 = vadd.xlane.f32.xlu0 %v427_v13 }
 0x11e   : > { %v3288_v52 = vsel %vm396_vm0, %v392_v43, 0.0  ;;  %v3292_v53 = vsel %vm396_vm0, %v393_v44, 0.0  ;;  %775 = vmatprep.subr.bf16.mxu0 %v2559_v15 }
 0x11f   : > { %v429_v14 = vmul.f32 %v3288_v52, %v3288_v52  ;;  %v430_v54 = vmul.f32 %v3292_v53, %v3292_v53  ;;  %776 = vmatpush1.bf16.msra.mxu0 %v2561_v55 }
 0x120   : > { %777 = vmatprep.subr.bf16.mxu0 %v2562_v60 }
 0x121   : > { %457 = vadd.xlane.f32.xlu1 %v428_v50  ;;  %459 = vadd.xlane.f32.xlu0 %v429_v14 }
 0x123   : > { %778 = vmatpush1.bf16.msra.mxu0 %v2564_v61 }
 0x124   : > { %779 = vmatprep.subr.bf16.mxu0 %v2565_v17 }
 0x125   : > { %461 = vadd.xlane.f32.xlu1 %v430_v54 }
 0x127   : > { %780 = vmatpush1.bf16.msra.mxu0 %v2567_v62 }
 0x128   : > { %781 = vmatprep.subr.bf16.mxu0 %v2568_v63 }
 0x12b   : > { %782 = vmatpush1.bf16.msra.mxu0 %v2570_v0 }
 0x12c   : > { %783 = vmatprep.subr.bf16.mxu0 %v2571_v1 }
 0x12f   : > { %784 = vmatpush1.bf16.msra.mxu0 %v2573_v6 }
 0x130   : > { %785 = vmatprep.subr.bf16.mxu0 %v2574_v7 }
 0x133   : > { %786 = vmatpush1.bf16.msra.mxu0 %v2576_v8 }
 0x192   : > { %v432_v18 = vpop.xlane.xlu0 %431 }
 0x193   : > { %v463_v19 = vmul.f32 0.015873017, %v432_v18 }
 0x195   : > { %2593 = vrsqrt.f32 %v463_v19  ;;  %vm481_vm1 = vcmp.eq.f32.partialorder %v463_v19, inf  ;;  %v484_v55 = vand.u32 2147483648, %v463_v19  ;;  %vm483_vm3 = vcmp.eq.f32.partialorder %v463_v19, 0.0 }
 0x196   : > { %v434_v11 = vpop.xlane.xlu1 %433  ;;  %v436_v25 = vpop.xlane.xlu0 %435 }
 0x197   : > { %v464_v30 = vmul.f32 0.015873017, %v434_v11  ;;  %v465_v31 = vmul.f32 0.015873017, %v436_v25 }
 0x199   : > { %2595 = vrsqrt.f32 %v464_v30  ;;  %vm488_vm2 = vcmp.eq.f32.partialorder %v464_v30, inf  ;;  %v491_v63 = vand.u32 2147483648, %v464_v30  ;;  %vm490_vm4 = vcmp.eq.f32.partialorder %v464_v30, 0.0 }
 0x19a   : > { %v438_v32 = vpop.xlane.xlu1 %437  ;;  %v440_v34 = vpop.xlane.xlu0 %439  ;;  %2597 = vrsqrt.f32 %v465_v31  ;;  %vm495_vm5 = vcmp.eq.f32.partialorder %v465_v31, inf  ;;  %vm497_vm7 = vcmp.eq.f32.partialorder %v465_v31, 0.0 }
 0x19b   : > { %v466_v33 = vmul.f32 0.015873017, %v438_v32  ;;  %v3299_v35 = vmul.f32 0.015873017, %v440_v34 }
 0x19d   : > { %2599 = vrsqrt.f32 %v466_v33  ;;  %vm502_vm6 = vcmp.eq.f32.partialorder %v466_v33, inf  ;;  %vm504_vm8 = vcmp.eq.f32.partialorder %v466_v33, 0.0  ;;  %vm509_vm9 = vcmp.eq.f32.partialorder %v3299_v35, inf }
 0x19e   : > { %v442_v13 = vpop.xlane.xlu1 %441  ;;  %2601 = vrsqrt.f32 %v3299_v35  ;;  %v444_v54 = vpop.xlane.xlu0 %443  ;;  %vm511_vm10 = vcmp.eq.f32.partialorder %v3299_v35, 0.0 }
 0x19f   : > { %v2594_v43 = vpop.eup %2593  ;;  %v3301_v44 = vmul.f32 0.015873017, %v442_v13  ;;  %v3307_v0 = vmul.f32 0.015873017, %v444_v54 }
 0x1a0   : > { %v480_v45 = vmul.f32 %v2594_v43, %v463_v19 }
 0x1a1   : > { %2603 = vrsqrt.f32 %v3301_v44  ;;  %vm516_vm11 = vcmp.eq.f32.partialorder %v3301_v44, inf  ;;  %vm518_vm12 = vcmp.eq.f32.partialorder %v3301_v44, 0.0  ;;  %vm523_vm14 = vcmp.eq.f32.partialorder %v3307_v0, inf }
 0x1a2   : > { %v446_v50 = vpop.xlane.xlu1 %445  ;;  %v482_v14 = vsel %vm481_vm1, %v463_v19, %v480_v45  ;;  %v448_v25 = vpop.xlane.xlu0 %447  ;;  %v498_v45 = vand.u32 2147483648, %v465_v31  ;;  %vm525_vm0 = vcmp.eq.f32.partialorder %v3307_v0, 0.0 }
 0x1a3   : > { %v2596_v51 = vpop.eup %2595  ;;  %v3305_v60 = vmul.f32 0.015873017, %v446_v50  ;;  %v3309_v1 = vsel %vm483_vm3, %v484_v55, %v482_v14  ;;  %v505_v50 = vand.u32 2147483648, %v466_v33 }
 0x1a4   : > { %v487_v15 = vmul.f32 %v2596_v51, %v464_v30  ;;  %v2598_v61 = vpop.eup %2597  ;;  %5040 = vst [vmem:[#allocation31_spill] sm:$0xff] %v3309_v1  ;;  %v591_v11 = vadd.f32 1e-05, %v3309_v1  ;;  %v3319_v51 = vmul.f32 0.015873017, %v448_v25 }
 0x1a5   : > { %2605 = vrsqrt.f32 %v3305_v60  ;;  %v494_v7 = vmul.f32 %v2598_v61, %v465_v31  ;;  %vm530_vm13 = vcmp.eq.f32.partialorder %v3305_v60, inf  ;;  %vm532_vm15 = vcmp.eq.f32.partialorder %v3305_v60, 0.0 }
 0x1a6   : > { %v489_v17 = vsel %vm488_vm2, %v464_v30, %v487_v15  ;;  %v450_v18 = vpop.xlane.xlu1 %449  ;;  %2607 = vrsqrt.f32 %v3307_v0  ;;  %vm537_vm2 = vcmp.eq.f32.partialorder %v3319_v51, inf }
 0x1a7   : > { %v2600_v62 = vpop.eup %2599  ;;  %v3312_v6 = vsel %vm490_vm4, %v491_v63, %v489_v17  ;;  %v3317_v13 = vmul.f32 0.015873017, %v450_v18  ;;  %v496_v30 = vsel %vm495_vm5, %v465_v31, %v494_v7  ;;  %2609 = vrcp.f32 %v591_v11  ;;  %v452_v63 = vpop.xlane.xlu0 %451 }
 0x1a8   : > { %5041 = vst [vmem:[#allocation32_spill] sm:$0xff] %v3312_v6  ;;  %v501_v8 = vmul.f32 %v2600_v62, %v466_v33  ;;  %v2602_v19 = vpop.eup %2601  ;;  %v592_v32 = vadd.f32 1e-05, %v3312_v6  ;;  %v3325_v54 = vsel %vm497_vm7, %v498_v45, %v496_v30  ;;  %v512_v31 = vand.u32 2147483648, %v3299_v35 }
 0x1a9   : > { %v508_v14 = vmul.f32 %v2602_v19, %v3299_v35  ;;  %5042 = vst [vmem:[#allocation33_spill] sm:$0xff] %v3325_v54  ;;  %v593_v7 = vadd.f32 1e-05, %v3325_v54  ;;  %v519_v11 = vand.u32 2147483648, %v3301_v44  ;;  %vm544_vm1 = vcmp.eq.f32.partialorder %v3317_v13, inf }
 0x1aa   : > { %v503_v43 = vsel %vm502_vm6, %v466_v33, %v501_v8  ;;  %2611 = vrcp.f32 %v592_v32  ;;  %v454_v61 = vpop.xlane.xlu1 %453  ;;  %v3343_v32 = vmul.f32 0.015873017, %v452_v63  ;;  %vm546_vm3 = vcmp.eq.f32.partialorder %v3317_v13, 0.0 }
 0x1ab   : > { %v2604_v34 = vpop.eup %2603  ;;  %2613 = vrsqrt.f32 %v3317_v13  ;;  %v3327_v55 = vsel %vm504_vm8, %v505_v50, %v503_v43  ;;  %v510_v33 = vsel %vm509_vm9, %v3299_v35, %v508_v14  ;;  %v3338_v19 = vmul.f32 0.015873017, %v454_v61 }
 0x1ac   : > { %v515_v15 = vmul.f32 %v2604_v34, %v3301_v44  ;;  %5043 = vst [vmem:[#allocation34_spill] sm:$0xff] %v3327_v55  ;;  %2615 = vrsqrt.f32 %v3319_v51  ;;  %v594_v8 = vadd.f32 1e-05, %v3327_v55  ;;  %v3347_v34 = vsel %vm511_vm10, %v512_v31, %v510_v33 }
 0x1ad   : > { %2617 = vrcp.f32 %v593_v7  ;;  %5044 = vst [vmem:[#allocation35_spill] sm:$0xff] %v3347_v34  ;;  %v595_v61 = vadd.f32 1e-05, %v3347_v34  ;;  %v526_v31 = vand.u32 2147483648, %v3307_v0  ;;  %v456_v7 = vpop.xlane.xlu0 %455  ;;  %vm539_vm4 = vcmp.eq.f32.partialorder %v3319_v51, 0.0 }
 0x1ae   : > { %v517_v62 = vsel %vm516_vm11, %v3301_v44, %v515_v15  ;;  %2619 = vrcp.f32 %v594_v8  ;;  %v533_v44 = vand.u32 2147483648, %v3305_v60  ;;  %v458_v35 = vpop.xlane.xlu1 %457  ;;  %vm558_vm5 = vcmp.eq.f32.partialorder %v3338_v19, inf }
 0x1af   : > { %v2606_v17 = vpop.eup %2605  ;;  %v3349_v30 = vsel %vm518_vm12, %v519_v11, %v517_v62  ;;  %2621 = vrsqrt.f32 %v3338_v19  ;;  %vm551_vm6 = vcmp.eq.f32.partialorder %v3343_v32, inf  ;;  %vm560_vm7 = vcmp.eq.f32.partialorder %v3338_v19, 0.0 }
 0x1b0   : > { %v2608_v18 = vpop.eup %2607  ;;  %v529_v25 = vmul.f32 %v2606_v17, %v3305_v60  ;;  %5045 = vst [vmem:[#allocation36_spill] sm:$0xff] %v3349_v30  ;;  %v596_v50 = vadd.f32 1e-05, %v3349_v30  ;;  %2623 = vrsqrt.f32 %v3343_v32  ;;  %vm553_vm8 = vcmp.eq.f32.partialorder %v3343_v32, 0.0 }
 0x1b1   : > { %v2610_v43 = vpop.eup %2609  ;;  %v522_v45 = vmul.f32 %v2608_v18, %v3307_v0 }
 0x1b2   : > { %v531_v15 = vsel %vm530_vm13, %v3305_v60, %v529_v25  ;;  %v639_v33 = vmul.f32 %v2610_v43, %v3155_v28  ;;  %2625 = vrcp.f32 %v596_v50  ;;  %v3365_v60 = vmul.f32 0.015873017, %v458_v35 }
 0x1b3   : > { %v524_v63 = vsel %vm523_vm14, %v3307_v0, %v522_v45  ;;  %v3367_v11 = vsel %vm532_vm15, %v533_v44, %v531_v15  ;;  %2627 = vrcp.f32 %v595_v61  ;;  %v3371_v28 = vmul.f32 0.015873017, %v456_v7  ;;  %v462_v15 = vpop.xlane.xlu1 %461 }
 0x1b4   : > { %v2612_v14 = vpop.eup %2611  ;;  %5046 = vst [vmem:[#allocation37_spill] sm:$0xff] %v3367_v11  ;;  %v598_v45 = vadd.f32 1e-05, %v3367_v11  ;;  %v547_v44 = vand.u32 2147483648, %v3317_v13  ;;  %2629 = vrsqrt.f32 %v3365_v60  ;;  %vm572_vm9 = vcmp.eq.f32.partialorder %v3365_v60, inf }
 0x1b5   : > { %v2614_v17 = vpop.eup %2613  ;;  %v640_v62 = vmul.f32 %v2612_v14, %v3173_v38  ;;  %v3373_v38 = vsel %vm525_vm0, %v526_v31, %v524_v63  ;;  %v540_v31 = vand.u32 2147483648, %v3319_v51  ;;  %2631 = vrsqrt.f32 %v3371_v28  ;;  %v460_v63 = vpop.xlane.xlu0 %459 }
 0x1b6   : > { %v2616_v8 = vpop.eup %2615  ;;  %v543_v25 = vmul.f32 %v2614_v17, %v3317_v13  ;;  %5047 = vst [vmem:[#allocation38_spill] sm:$0xff] %v3373_v38  ;;  %v597_v61 = vadd.f32 1e-05, %v3373_v38  ;;  %2633 = vrcp.f32 %v598_v45  ;;  %v561_v45 = vand.u32 2147483648, %v3338_v19 }
 0x1b7   : > { %v671_v18 = vpack.c.bf16 %v640_v62, %v639_v33  ;;  %v2618_v43 = vpop.eup %2617  ;;  %v536_v0 = vmul.f32 %v2616_v8, %v3319_v51  ;;  %vm565_vm10 = vcmp.eq.f32.partialorder %v3371_v28, inf  ;;  %vm574_vm11 = vcmp.eq.f32.partialorder %v3365_v60, 0.0 }
 0x1b8   : > { %v2620_v50 = vpop.eup %2619  ;;  %v545_v14 = vsel %vm544_vm1, %v3317_v13, %v543_v25  ;;  %v641_v33 = vmul.f32 %v2618_v43, %v3159_v29  ;;  %v3390_v13 = vmul.f32 0.015873017, %v462_v15  ;;  %2635 = vrcp.f32 %v597_v61 }
 0x1b9   : > { %804 = vmatmul.mubr.bf16.vlgmr.msra.gmra.mrb[0].mxu0 %v671_v18  ;;  %v642_v35 = vmul.f32 %v2620_v50, %v3177_v39  ;;  %v2622_v17 = vpop.eup %2621  ;;  %v538_v62 = vsel %vm537_vm2, %v3319_v51, %v536_v0  ;;  %v3392_v39 = vsel %vm546_vm3, %v547_v44, %v545_v14  ;;  %v3396_v50 = vmul.f32 0.015873017, %v460_v63 }
 0x1ba   : > { %813 = vmatprep.mubr.bf16.mxu0 %v2854_v9  ;;  %v2624_v7 = vpop.eup %2623  ;;  %5048 = vst [vmem:[#allocation39_spill] sm:$0xff] %v3392_v39  ;;  %v557_v25 = vmul.f32 %v2622_v17, %v3338_v19  ;;  %v3398_v29 = vsel %vm539_vm4, %v540_v31, %v538_v62  ;;  %v600_v0 = vadd.f32 1e-05, %v3392_v39  ;;  %2637 = vrsqrt.f32 %v3390_v13 }
 0x1bb   : > { %v672_v8 = vpack.c.bf16 %v642_v35, %v641_v33  ;;  %5049 = vst [vmem:[#allocation40_spill] sm:$0xff] %v3398_v29  ;;  %v550_v43 = vmul.f32 %v2624_v7, %v3343_v32  ;;  %v599_v15 = vadd.f32 1e-05, %v3398_v29  ;;  %v554_v61 = vand.u32 2147483648, %v3343_v32 }
 0x1bc   : > { %v2626_v18 = vpop.eup %2625  ;;  %v559_v14 = vsel %vm558_vm5, %v3338_v19, %v557_v25  ;;  %2639 = vrsqrt.f32 %v3396_v50  ;;  %vm567_vm12 = vcmp.eq.f32.partialorder %v3371_v28, 0.0  ;;  %vm586_vm13 = vcmp.eq.f32.partialorder %v3390_v13, inf }
 0x1bd   : > { %v2628_v51 = vpop.eup %2627  ;;  %v644_v44 = vmul.f32 %v2626_v18, %v3196_v49  ;;  %v552_v31 = vsel %vm551_vm6, %v3343_v32, %v550_v43  ;;  %2641 = vrcp.f32 %v600_v0  ;;  %v3415_v62 = vsel %vm560_vm7, %v561_v45, %v559_v14 }
 0x1be   : > { %v2630_v35 = vpop.eup %2629  ;;  %v643_v17 = vmul.f32 %v2628_v51, %v3192_v48  ;;  %5050 = vst [vmem:[#allocation41_spill] sm:$0xff] %v3415_v62  ;;  %2643 = vrcp.f32 %v599_v15  ;;  %v3419_v7 = vsel %vm553_vm8, %v554_v61, %v552_v31  ;;  %v602_v32 = vadd.f32 1e-05, %v3415_v62 }
 0x1bf   : > { %v2632_v33 = vpop.eup %2631  ;;  %v571_v19 = vmul.f32 %v2630_v35, %v3365_v60  ;;  %5051 = vst [vmem:[#allocation42_spill] sm:$0xff] %v3419_v7  ;;  %v575_v18 = vand.u32 2147483648, %v3365_v60  ;;  %v601_v43 = vadd.f32 1e-05, %v3419_v7  ;;  %v568_v45 = vand.u32 2147483648, %v3371_v28 }
 0x1c0   : > { %v673_v49 = vpack.c.bf16 %v644_v44, %v643_v17  ;;  %v2634_v63 = vpop.eup %2633  ;;  %v564_v48 = vmul.f32 %v2632_v33, %v3371_v28  ;;  %2645 = vrcp.f32 %v602_v32  ;;  %vm579_vm14 = vcmp.eq.f32.partialorder %v3396_v50, inf }
 0x1c1   : > { %814 = vmatmul.mubr.bf16.gmra.mrb[4].mxu0 %v672_v8  ;;  %v646_v25 = vmul.f32 %v2634_v63, %v3216_v59  ;;  %v573_v51 = vsel %vm572_vm9, %v3365_v60, %v571_v19  ;;  %2647 = vrcp.f32 %v601_v43  ;;  %v589_v33 = vand.u32 2147483648, %v3390_v13 }
 0x1c2   : > { %823 = vmatprep.mubr.bf16.mxu0 %v2854_v9  ;;  %v2636_v8 = vpop.eup %2635  ;;  %v566_v14 = vsel %vm565_vm10, %v3371_v28, %v564_v48  ;;  %v3434_v61 = vsel %vm574_vm11, %v575_v18, %v573_v51  ;;  %vm588_vm15 = vcmp.eq.f32.partialorder %v3390_v13, 0.0  ;;  %vm581_vm0 = vcmp.eq.f32.partialorder %v3396_v50, 0.0 }
 0x1c3   : > { %v645_v44 = vmul.f32 %v2636_v8, %v3212_v58  ;;  %5052 = vst [vmem:[#allocation43_spill] sm:$0xff] %v3434_v61  ;;  %v3438_v60 = vsel %vm567_vm12, %v568_v45, %v566_v14  ;;  %v604_v28 = vadd.f32 1e-05, %v3434_v61  ;;  %v582_v8 = vand.u32 2147483648, %v3396_v50 }
 0x1c4   : > { %v2638_v0 = vpop.eup %2637  ;;  %5053 = vst [vmem:[#allocation44_spill] sm:$0xff] %v3438_v60  ;;  %v603_v19 = vadd.f32 1e-05, %v3438_v60 }
 0x1c5   : > { %v674_v35 = vpack.c.bf16 %v646_v25, %v645_v44  ;;  %v585_v17 = vmul.f32 %v2638_v0, %v3390_v13  ;;  %2649 = vrcp.f32 %v604_v28  ;;  %v682_v28 = vshrl.u32 %v394_v16, 7 }
 0x1c6   : > { %v2640_v15 = vpop.eup %2639  ;;  %2651 = vrcp.f32 %v603_v19 }
 0x1c7   : > { %v2642_v59 = vpop.eup %2641  ;;  %v578_v58 = vmul.f32 %v2640_v15, %v3396_v50  ;;  %v587_v63 = vsel %vm586_vm13, %v3390_v13, %v585_v17 }
 0x1c8   : > { %v2644_v31 = vpop.eup %2643  ;;  %v3453_v25 = vsel %vm588_vm15, %v589_v33, %v587_v63  ;;  %v683_v33 = vsub.s32 0, %v682_v28 }
 0x1c9   : > { %824 = vmatmul.mubr.bf16.gmra.mrb[8].mxu0 %v673_v49  ;;  %v648_v49 = vmul.f32 %v2642_v59, %v3236_v5  ;;  %v647_v48 = vmul.f32 %v2644_v31, %v3232_v4  ;;  %v580_v32 = vsel %vm579_vm14, %v3396_v50, %v578_v58  ;;  %5054 = vst [vmem:[#allocation45_spill] sm:$0xff] %v3453_v25  ;;  %v606_v43 = vadd.f32 1e-05, %v3453_v25 }
 0x1ca   : > { %833 = vmatprep.mubr.bf16.mxu0 %v2854_v9  ;;  %v2646_v51 = vpop.eup %2645  ;;  %v3455_v5 = vsel %vm581_vm0, %v582_v8, %v580_v32 }
 0x1cb   : > { %v675_v18 = vpack.c.bf16 %v648_v49, %v647_v48  ;;  %5055 = vst [vmem:[#allocation46_spill] sm:$0xff] %v3455_v5  ;;  %v2648_v13 = vpop.eup %2647  ;;  %v650_v4 = vmul.f32 %v2646_v51, %v3256_v10  ;;  %v605_v0 = vadd.f32 1e-05, %v3455_v5  ;;  %2653 = vrcp.f32 %v606_v43 }
 0x1cc   : > { %v649_v50 = vmul.f32 %v2648_v13, %v3252_v24 }
 0x1cd   : > { %2655 = vrcp.f32 %v605_v0 }
 0x1ce   : > { %v676_v45 = vpack.c.bf16 %v650_v4, %v649_v50 }
 0x1cf   : > { %v2650_v44 = vpop.eup %2649 }
 0x1d0   : > { %v2652_v14 = vpop.eup %2651  ;;  %v652_v15 = vmul.f32 %v2650_v44, %v3276_v12  ;;  %v679_v12 = vld [vmem:[%s4952_s4] sm:$0x3] }
 0x1d1   : > { %834 = vmatmul.mubr.bf16.gmra.mrb[12].mxu0 %v674_v35  ;;  %v651_v35 = vmul.f32 %v2652_v14, %v3272_v42  ;;  %v687_v42 = vsub.s32 1, %v682_v28  ;;  %v3472_v49 = vrot.slane %v679_v12, %v683_v33 }
 0x1d2   : > { %843 = vmatprep.mubr.bf16.mxu0 %v2854_v9 }
 0x1d3   : > { %v677_v59 = vpack.c.bf16 %v652_v15, %v651_v35  ;;  %v3474_v63 = vrot.slane %v679_v12, %v687_v42 }
 0x1d5   : > { %v2654_v17 = vpop.eup %2653 }
 0x1d6   : > { %v654_v24 = vmul.f32 %v2654_v17, %v3292_v53 }
 0x1d7   : > { %v2656_v10 = vpop.eup %2655 }
 0x1d8   : > { %v653_v31 = vmul.f32 %v2656_v10, %v3288_v52 }
 0x1d9   : > { %844 = vmatmul.mubr.bf16.gmra.mrb[16].mxu0 %v675_v18 }
 0x1da   : > { %853 = vmatprep.mubr.bf16.mxu0 %v2854_v9  ;;  %v678_v58 = vpack.c.bf16 %v654_v24, %v653_v31 }
 0x1e1   : > { %854 = vmatmul.mubr.bf16.gmra.mrb[20].mxu0 %v676_v45 }
 0x1e2   : > { %863 = vmatprep.mubr.bf16.mxu0 %v2854_v9 }
 0x1e9   : > { %864 = vmatmul.mubr.bf16.gmra.mrb[24].mxu0 %v677_v59 }
 0x1ea   : > { %873 = vmatprep.mubr.bf16.mxu0 %v2854_v9 }
 0x1f1   : > { %874 = vmatmul.mubr.bf16.gmra.mrb[28].mxu0 %v678_v58 }
 0x28c   : > { %v805_v19 = vpop.f32.mrb[0].mxu0 }
 0x28d   : > { %v806_v9 = vadd.f32 %v805_v19, %v3472_v49  ;;  %v807_v53 = vpop.f32.mrb[1].mxu0 }
 0x28e   : > { %v808_v52 = vadd.f32 %v807_v53, %v3474_v63  ;;  %v809_v8 = vpop.f32.mrb[2].mxu0 }
 0x28f   : > { %v3478_v48 = vmax.f32 %v806_v9, 0.0  ;;  %v810_v16 = vadd.f32 %v809_v8, %v3472_v49  ;;  %v811_v32 = vpop.f32.mrb[3].mxu0 }
 0x290   : > { %v3481_v18 = vmax.f32 %v808_v52, 0.0  ;;  %v812_v51 = vadd.f32 %v811_v32, %v3474_v63 }
 0x291   : > { %v3484_v13 = vmax.f32 %v810_v16, 0.0 }
 0x292   : > { %v3486_v43 = vmax.f32 %v812_v51, 0.0  ;;  %v916_v4 = vmax.f32 %v3478_v48, %v3481_v18 }
 0x294   : > { %917 = vmax.xlane.f32.xlu0 %v916_v4  ;;  %v815_v0 = vpop.f32.mrb[4].mxu0  ;;  %v919_v50 = vmax.f32 %v3484_v13, %v3486_v43 }
 0x295   : > { %v816_v45 = vadd.f32 %v815_v0, %v3472_v49  ;;  %v817_v44 = vpop.f32.mrb[5].mxu0 }
 0x296   : > { %v818_v14 = vadd.f32 %v817_v44, %v3474_v63  ;;  %920 = vmax.xlane.f32.xlu1 %v919_v50  ;;  %v819_v15 = vpop.f32.mrb[6].mxu0 }
 0x297   : > { %v3494_v35 = vmax.f32 %v816_v45, 0.0  ;;  %v820_v59 = vadd.f32 %v819_v15, %v3472_v49  ;;  %v821_v17 = vpop.f32.mrb[7].mxu0 }
 0x298   : > { %v3497_v10 = vmax.f32 %v818_v14, 0.0  ;;  %v822_v24 = vadd.f32 %v821_v17, %v3474_v63 }
 0x299   : > { %v3500_v31 = vmax.f32 %v820_v59, 0.0 }
 0x29a   : > { %v3502_v58 = vmax.f32 %v822_v24, 0.0  ;;  %v922_v28 = vmax.f32 %v3494_v35, %v3497_v10 }
 0x29c   : > { %923 = vmax.xlane.f32.xlu0 %v922_v28  ;;  %v825_v33 = vpop.f32.mrb[8].mxu0  ;;  %v925_v12 = vmax.f32 %v3500_v31, %v3502_v58 }
 0x29d   : > { %v826_v42 = vadd.f32 %v825_v33, %v3472_v49  ;;  %v827_v19 = vpop.f32.mrb[9].mxu0 }
 0x29e   : > { %v828_v9 = vadd.f32 %v827_v19, %v3474_v63  ;;  %926 = vmax.xlane.f32.xlu1 %v925_v12  ;;  %v829_v53 = vpop.f32.mrb[10].mxu0 }
 0x29f   : > { %v3510_v52 = vmax.f32 %v826_v42, 0.0  ;;  %v830_v8 = vadd.f32 %v829_v53, %v3472_v49  ;;  %v831_v16 = vpop.f32.mrb[11].mxu0 }
 0x2a0   : > { %v3513_v32 = vmax.f32 %v828_v9, 0.0  ;;  %v832_v51 = vadd.f32 %v831_v16, %v3474_v63 }
 0x2a1   : > { %v3516_v4 = vmax.f32 %v830_v8, 0.0 }
 0x2a2   : > { %v3518_v0 = vmax.f32 %v832_v51, 0.0  ;;  %v928_v50 = vmax.f32 %v3510_v52, %v3513_v32 }
 0x2a4   : > { %929 = vmax.xlane.f32.xlu0 %v928_v50  ;;  %v835_v45 = vpop.f32.mrb[12].mxu0  ;;  %v931_v44 = vmax.f32 %v3516_v4, %v3518_v0 }
 0x2a5   : > { %v836_v14 = vadd.f32 %v835_v45, %v3472_v49  ;;  %v837_v15 = vpop.f32.mrb[13].mxu0 }
 0x2a6   : > { %v838_v59 = vadd.f32 %v837_v15, %v3474_v63  ;;  %932 = vmax.xlane.f32.xlu1 %v931_v44  ;;  %v839_v17 = vpop.f32.mrb[14].mxu0 }
 0x2a7   : > { %v3526_v24 = vmax.f32 %v836_v14, 0.0  ;;  %v840_v28 = vadd.f32 %v839_v17, %v3472_v49  ;;  %v841_v33 = vpop.f32.mrb[15].mxu0 }
 0x2a8   : > { %v3529_v12 = vmax.f32 %v838_v59, 0.0  ;;  %v842_v42 = vadd.f32 %v841_v33, %v3474_v63 }
 0x2a9   : > { %v3532_v19 = vmax.f32 %v840_v28, 0.0 }
 0x2aa   : > { %v3534_v9 = vmax.f32 %v842_v42, 0.0  ;;  %v934_v53 = vmax.f32 %v3526_v24, %v3529_v12 }
 0x2ac   : > { %935 = vmax.xlane.f32.xlu0 %v934_v53  ;;  %v845_v8 = vpop.f32.mrb[16].mxu0  ;;  %v937_v16 = vmax.f32 %v3532_v19, %v3534_v9 }
 0x2ad   : > { %v846_v51 = vadd.f32 %v845_v8, %v3472_v49  ;;  %v847_v50 = vpop.f32.mrb[17].mxu0 }
 0x2ae   : > { %v848_v45 = vadd.f32 %v847_v50, %v3474_v63  ;;  %938 = vmax.xlane.f32.xlu1 %v937_v16  ;;  %v849_v44 = vpop.f32.mrb[18].mxu0 }
 0x2af   : > { %v3542_v14 = vmax.f32 %v846_v51, 0.0  ;;  %v850_v15 = vadd.f32 %v849_v44, %v3472_v49  ;;  %v851_v59 = vpop.f32.mrb[19].mxu0 }
 0x2b0   : > { %v3545_v17 = vmax.f32 %v848_v45, 0.0  ;;  %v852_v28 = vadd.f32 %v851_v59, %v3474_v63 }
 0x2b1   : > { %v3548_v33 = vmax.f32 %v850_v15, 0.0 }
 0x2b2   : > { %v3550_v42 = vmax.f32 %v852_v28, 0.0  ;;  %v940_v53 = vmax.f32 %v3542_v14, %v3545_v17 }
 0x2b4   : > { %941 = vmax.xlane.f32.xlu0 %v940_v53  ;;  %v855_v8 = vpop.f32.mrb[20].mxu0  ;;  %v943_v16 = vmax.f32 %v3548_v33, %v3550_v42 }
 0x2b5   : > { %v856_v51 = vadd.f32 %v855_v8, %v3472_v49  ;;  %v857_v50 = vpop.f32.mrb[21].mxu0 }
 0x2b6   : > { %v858_v45 = vadd.f32 %v857_v50, %v3474_v63  ;;  %944 = vmax.xlane.f32.xlu1 %v943_v16  ;;  %v859_v44 = vpop.f32.mrb[22].mxu0 }
 0x2b7   : > { %v3558_v59 = vmax.f32 %v856_v51, 0.0  ;;  %v860_v15 = vadd.f32 %v859_v44, %v3472_v49  ;;  %v861_v28 = vpop.f32.mrb[23].mxu0 }
 0x2b8   : > { %v3561_v41 = vmax.f32 %v858_v45, 0.0  ;;  %v862_v53 = vadd.f32 %v861_v28, %v3474_v63 }
 0x2b9   : > { %5056 = vst [vmem:[#allocation47_spill] sm:$0xff] %v3558_v59  ;;  %v3564_v25 = vmax.f32 %v860_v15, 0.0 }
 0x2ba   : > { %5057 = vst [vmem:[#allocation48_spill] sm:$0xff] %v3561_v41  ;;  %v3566_v40 = vmax.f32 %v862_v53, 0.0  ;;  %v946_v8 = vmax.f32 %v3558_v59, %v3561_v41 }
 0x2bb   : > { %5058 = vst [vmem:[#allocation49_spill] sm:$0xff] %v3564_v25 }
 0x2bc   : > { %5059 = vst [vmem:[#allocation50_spill] sm:$0xff] %v3566_v40  ;;  %947 = vmax.xlane.f32.xlu0 %v946_v8  ;;  %v865_v50 = vpop.f32.mrb[24].mxu0  ;;  %v949_v16 = vmax.f32 %v3564_v25, %v3566_v40 }
 0x2bd   : > { %v866_v51 = vadd.f32 %v865_v50, %v3472_v49  ;;  %v867_v44 = vpop.f32.mrb[25].mxu0 }
 0x2be   : > { %v868_v45 = vadd.f32 %v867_v44, %v3474_v63  ;;  %950 = vmax.xlane.f32.xlu1 %v949_v16  ;;  %v869_v5 = vpop.f32.mrb[26].mxu0 }
 0x2bf   : > { %v3574_v28 = vmax.f32 %v866_v51, 0.0  ;;  %v870_v15 = vadd.f32 %v869_v5, %v3472_v49  ;;  %v871_v53 = vpop.f32.mrb[27].mxu0 }
 0x2c0   : > { %v3577_v23 = vmax.f32 %v868_v45, 0.0  ;;  %v872_v8 = vadd.f32 %v871_v53, %v3474_v63 }
 0x2c1   : > { %5060 = vst [vmem:[#allocation51_spill] sm:$0xff] %v3574_v28  ;;  %v3580_v61 = vmax.f32 %v870_v15, 0.0 }
 0x2c2   : > { %5061 = vst [vmem:[#allocation52_spill] sm:$0xff] %v3577_v23  ;;  %v3582_v22 = vmax.f32 %v872_v8, 0.0  ;;  %v952_v50 = vmax.f32 %v3574_v28, %v3577_v23 }
 0x2c3   : > { %5062 = vst [vmem:[#allocation53_spill] sm:$0xff] %v3580_v61 }
 0x2c4   : > { %5063 = vst [vmem:[#allocation54_spill] sm:$0xff] %v3582_v22  ;;  %953 = vmax.xlane.f32.xlu0 %v952_v50  ;;  %v875_v44 = vpop.f32.mrb[28].mxu0  ;;  %v955_v16 = vmax.f32 %v3580_v61, %v3582_v22 }
 0x2c5   : > { %v876_v51 = vadd.f32 %v875_v44, %v3472_v49  ;;  %v877_v5 = vpop.f32.mrb[29].mxu0 }
 0x2c6   : > { %v878_v45 = vadd.f32 %v877_v5, %v3474_v63  ;;  %956 = vmax.xlane.f32.xlu1 %v955_v16  ;;  %v879_v60 = vpop.f32.mrb[30].mxu0 }
 0x2c7   : > { %v3590_v53 = vmax.f32 %v876_v51, 0.0  ;;  %v880_v15 = vadd.f32 %v879_v60, %v3472_v49  ;;  %v881_v8 = vpop.f32.mrb[31].mxu0 }
 0x2c8   : > { %v3593_v3 = vmax.f32 %v878_v45, 0.0  ;;  %v882_v50 = vadd.f32 %v881_v8, %v3474_v63 }
 0x2c9   : > { %5064 = vst [vmem:[#allocation55_spill] sm:$0xff] %v3590_v53  ;;  %v3596_v62 = vmax.f32 %v880_v15, 0.0 }
 0x2ca   : > { %5065 = vst [vmem:[#allocation56_spill] sm:$0xff] %v3593_v3  ;;  %v3598_v2 = vmax.f32 %v882_v50, 0.0  ;;  %v958_v44 = vmax.f32 %v3590_v53, %v3593_v3 }
 0x2cb   : > { %5066 = vst [vmem:[#allocation57_spill] sm:$0xff] %v3596_v62 }
 0x2cc   : > { %5067 = vst [vmem:[#allocation58_spill] sm:$0xff] %v3598_v2  ;;  %959 = vmax.xlane.f32.xlu0 %v958_v44  ;;  %v961_v16 = vmax.f32 %v3596_v62, %v3598_v2 }
 0x2ce   : > { %962 = vmax.xlane.f32.xlu1 %v961_v16 }
 0x321   : > { %v918_v51 = vpop.xlane.xlu0 %917 }
 0x322   : > { %vm964_vm1 = vcmp.ge.f32.partialorder %v3478_v48, %v918_v51  ;;  %vm965_vm2 = vcmp.ge.f32.partialorder %v3481_v18, %v918_v51 }
 0x323   : > { %v921_v60 = vpop.xlane.xlu1 %920  ;;  %v3607_v49 = vsel %vm964_vm1, -inf, %v3478_v48  ;;  %v3610_v63 = vsel %vm965_vm2, -inf, %v3481_v18 }
 0x324   : > { %vm966_vm3 = vcmp.ge.f32.partialorder %v3484_v13, %v921_v60  ;;  %vm967_vm4 = vcmp.ge.f32.partialorder %v3486_v43, %v921_v60  ;;  %v1028_v5 = vmax.f32 %v3607_v49, %v3610_v63 }
 0x325   : > { %v3617_v45 = vsel %vm966_vm3, -inf, %v3484_v13  ;;  %v3620_v15 = vsel %vm967_vm4, -inf, %v3486_v43 }
 0x326   : > { %1029 = vmax.xlane.f32.xlu0 %v1028_v5  ;;  %v1031_v8 = vmax.f32 %v3617_v45, %v3620_v15 }
 0x328   : > { %1032 = vmax.xlane.f32.xlu1 %v1031_v8 }
 0x329   : > { %v924_v50 = vpop.xlane.xlu0 %923 }
 0x32a   : > { %vm968_vm5 = vcmp.ge.f32.partialorder %v3494_v35, %v924_v50  ;;  %vm969_vm6 = vcmp.ge.f32.partialorder %v3497_v10, %v924_v50 }
 0x32b   : > { %v927_v44 = vpop.xlane.xlu1 %926  ;;  %v3627_v16 = vsel %vm968_vm5, -inf, %v3494_v35  ;;  %v3630_v51 = vsel %vm969_vm6, -inf, %v3497_v10 }
 0x32c   : > { %vm970_vm7 = vcmp.ge.f32.partialorder %v3500_v31, %v927_v44  ;;  %vm971_vm8 = vcmp.ge.f32.partialorder %v3502_v58, %v927_v44  ;;  %v1034_v60 = vmax.f32 %v3627_v16, %v3630_v51 }
 0x32d   : > { %v3637_v5 = vsel %vm970_vm7, -inf, %v3500_v31  ;;  %v3640_v8 = vsel %vm971_vm8, -inf, %v3502_v58 }
 0x32e   : > { %1035 = vmax.xlane.f32.xlu0 %v1034_v60  ;;  %v1037_v50 = vmax.f32 %v3637_v5, %v3640_v8 }
 0x330   : > { %1038 = vmax.xlane.f32.xlu1 %v1037_v50 }
 0x331   : > { %v930_v7 = vpop.xlane.xlu0 %929 }
 0x332   : > { %vm972_vm9 = vcmp.ge.f32.partialorder %v3510_v52, %v930_v7  ;;  %vm973_vm10 = vcmp.ge.f32.partialorder %v3513_v32, %v930_v7 }
 0x333   : > { %v933_v44 = vpop.xlane.xlu1 %932  ;;  %v3647_v57 = vsel %vm972_vm9, -inf, %v3510_v52  ;;  %v3650_v39 = vsel %vm973_vm10, -inf, %v3513_v32 }
 0x334   : > { %vm974_vm11 = vcmp.ge.f32.partialorder %v3516_v4, %v933_v44  ;;  %vm975_vm12 = vcmp.ge.f32.partialorder %v3518_v0, %v933_v44  ;;  %v1040_v60 = vmax.f32 %v3647_v57, %v3650_v39 }
 0x335   : > { %v3657_v50 = vsel %vm974_vm11, -inf, %v3516_v4  ;;  %v3660_v56 = vsel %vm975_vm12, -inf, %v3518_v0 }
 0x336   : > { %1041 = vmax.xlane.f32.xlu0 %v1040_v60  ;;  %v1043_v7 = vmax.f32 %v3657_v50, %v3660_v56 }
 0x338   : > { %1044 = vmax.xlane.f32.xlu1 %v1043_v7 }
 0x339   : > { %v936_v29 = vpop.xlane.xlu0 %935 }
 0x33a   : > { %vm976_vm13 = vcmp.ge.f32.partialorder %v3526_v24, %v936_v29  ;;  %vm977_vm14 = vcmp.ge.f32.partialorder %v3529_v12, %v936_v29 }
 0x33b   : > { %v939_v44 = vpop.xlane.xlu1 %938  ;;  %v3667_v47 = vsel %vm976_vm13, -inf, %v3526_v24  ;;  %v3670_v11 = vsel %vm977_vm14, -inf, %v3529_v12 }
 0x33c   : > { %vm978_vm15 = vcmp.ge.f32.partialorder %v3532_v19, %v939_v44  ;;  %vm979_vm0 = vcmp.ge.f32.partialorder %v3534_v9, %v939_v44  ;;  %v1046_v60 = vmax.f32 %v3667_v47, %v3670_v11 }
 0x33d   : > { %v3677_v7 = vsel %vm978_vm15, -inf, %v3532_v19  ;;  %v3680_v46 = vsel %vm979_vm0, -inf, %v3534_v9 }
 0x33e   : > { %1047 = vmax.xlane.f32.xlu0 %v1046_v60  ;;  %v1049_v29 = vmax.f32 %v3677_v7, %v3680_v46 }
 0x340   : > { %1050 = vmax.xlane.f32.xlu1 %v1049_v29 }
 0x341   : > { %v942_v38 = vpop.xlane.xlu0 %941 }
 0x342   : > { %vm980_vm1 = vcmp.ge.f32.partialorder %v3542_v14, %v942_v38  ;;  %vm981_vm2 = vcmp.ge.f32.partialorder %v3545_v17, %v942_v38 }
 0x343   : > { %v945_v44 = vpop.xlane.xlu1 %944  ;;  %v3687_v37 = vsel %vm980_vm1, -inf, %v3542_v14  ;;  %v3690_v30 = vsel %vm981_vm2, -inf, %v3545_v17 }
 0x344   : > { %vm982_vm3 = vcmp.ge.f32.partialorder %v3548_v33, %v945_v44  ;;  %vm983_vm4 = vcmp.ge.f32.partialorder %v3550_v42, %v945_v44  ;;  %v1052_v60 = vmax.f32 %v3687_v37, %v3690_v30 }
 0x345   : > { %v3697_v29 = vsel %vm982_vm3, -inf, %v3548_v33  ;;  %v3700_v36 = vsel %vm983_vm4, -inf, %v3550_v42 }
 0x346   : > { %1053 = vmax.xlane.f32.xlu0 %v1052_v60  ;;  %v1055_v38 = vmax.f32 %v3697_v29, %v3700_v36 }
 0x348   : > { %1056 = vmax.xlane.f32.xlu1 %v1055_v38 }
 0x349   : > { %v948_v34 = vpop.xlane.xlu0 %947 }
 0x34a   : > { %vm984_vm5 = vcmp.ge.f32.partialorder %v3558_v59, %v948_v34  ;;  %vm985_vm6 = vcmp.ge.f32.partialorder %v3561_v41, %v948_v34 }
 0x34b   : > { %v951_v44 = vpop.xlane.xlu1 %950  ;;  %v3707_v27 = vsel %vm984_vm5, -inf, %v3558_v59  ;;  %v3710_v55 = vsel %vm985_vm6, -inf, %v3561_v41  ;;  %v2586_v41 = vld [vmem:[#allocation7 + $0x20] sm:$0xff]   ;;  %v2588_v59 = vld [vmem:[#allocation7 + $0x28] sm:$0xff]  }
 0x34c   : > { %vm986_vm7 = vcmp.ge.f32.partialorder %v3564_v25, %v951_v44  ;;  %vm987_vm8 = vcmp.ge.f32.partialorder %v3566_v40, %v951_v44  ;;  %v1058_v60 = vmax.f32 %v3707_v27, %v3710_v55 }
 0x34d   : > { %v3717_v38 = vsel %vm986_vm7, -inf, %v3564_v25  ;;  %v3720_v21 = vsel %vm987_vm8, -inf, %v3566_v40  ;;  %v2581_v40 = vld [vmem:[#allocation7 + $0x50] sm:$0xff]  }
 0x34e   : > { %1059 = vmax.xlane.f32.xlu0 %v1058_v60  ;;  %v1061_v34 = vmax.f32 %v3717_v38, %v3720_v21  ;;  %v2582_v25 = vld [vmem:[#allocation7 + $0x10] sm:$0xff]  }
 0x350   : > { %1062 = vmax.xlane.f32.xlu1 %v1061_v34 }
 0x351   : > { %v954_v54 = vpop.xlane.xlu0 %953 }
 0x352   : > { %vm988_vm9 = vcmp.ge.f32.partialorder %v3574_v28, %v954_v54  ;;  %vm989_vm10 = vcmp.ge.f32.partialorder %v3577_v23, %v954_v54 }
 0x353   : > { %v957_v44 = vpop.xlane.xlu1 %956  ;;  %v3727_v26 = vsel %vm988_vm9, -inf, %v3574_v28  ;;  %v3730_v6 = vsel %vm989_vm10, -inf, %v3577_v23  ;;  %v2579_v28 = vld [vmem:[#allocation7 + $0x48] sm:$0xff]  }
 0x354   : > { %vm990_vm11 = vcmp.ge.f32.partialorder %v3580_v61, %v957_v44  ;;  %vm991_vm12 = vcmp.ge.f32.partialorder %v3582_v22, %v957_v44  ;;  %v1064_v60 = vmax.f32 %v3727_v26, %v3730_v6 }
 0x355   : > { %v3737_v34 = vsel %vm990_vm11, -inf, %v3580_v61  ;;  %v3740_v20 = vsel %vm991_vm12, -inf, %v3582_v22 }
 0x356   : > { %1065 = vmax.xlane.f32.xlu0 %v1064_v60  ;;  %v1067_v54 = vmax.f32 %v3737_v34, %v3740_v20 }
 0x358   : > { %1068 = vmax.xlane.f32.xlu1 %v1067_v54 }
 0x359   : > { %v960_v1 = vpop.xlane.xlu0 %959 }
 0x35a   : > { %vm992_vm13 = vcmp.ge.f32.partialorder %v3590_v53, %v960_v1  ;;  %vm993_vm14 = vcmp.ge.f32.partialorder %v3593_v3, %v960_v1 }
 0x35b   : > { %v963_v44 = vpop.xlane.xlu1 %962  ;;  %v3747_v23 = vsel %vm992_vm13, -inf, %v3590_v53  ;;  %v3750_v61 = vsel %vm993_vm14, -inf, %v3593_v3 }
 0x35c   : > { %vm994_vm15 = vcmp.ge.f32.partialorder %v3596_v62, %v963_v44  ;;  %vm995_vm0 = vcmp.ge.f32.partialorder %v3598_v2, %v963_v44  ;;  %v1070_v60 = vmax.f32 %v3747_v23, %v3750_v61 }
 0x35d   : > { %v3757_v54 = vsel %vm994_vm15, -inf, %v3596_v62  ;;  %v3760_v22 = vsel %vm995_vm0, -inf, %v3598_v2 }
 0x35e   : > { %1071 = vmax.xlane.f32.xlu0 %v1070_v60  ;;  %v1073_v1 = vmax.f32 %v3757_v54, %v3760_v22 }
 0x360   : > { %1074 = vmax.xlane.f32.xlu1 %v1073_v1 }
 0x3b3   : > { %v1030_v3 = vpop.xlane.xlu0 %1029 }
 0x3b4   : > { %vm1076_vm1 = vcmp.ge.f32.partialorder %v3607_v49, %v1030_v3  ;;  %vm1077_vm2 = vcmp.ge.f32.partialorder %v3610_v63, %v1030_v3 }
 0x3b5   : > { %v1033_v44 = vpop.xlane.xlu1 %1032  ;;  %v3767_v53 = vsel %vm1076_vm1, -inf, %v3607_v49  ;;  %v3770_v62 = vsel %vm1077_vm2, -inf, %v3610_v63 }
 0x3b6   : > { %vm1078_vm3 = vcmp.ge.f32.partialorder %v3617_v45, %v1033_v44  ;;  %vm1079_vm4 = vcmp.ge.f32.partialorder %v3620_v15, %v1033_v44  ;;  %v1140_v60 = vmax.f32 %v3767_v53, %v3770_v62 }
 0x3b7   : > { %v3777_v1 = vsel %vm1078_vm3, -inf, %v3617_v45  ;;  %v3780_v2 = vsel %vm1079_vm4, -inf, %v3620_v15 }
 0x3b8   : > { %1141 = vmax.xlane.f32.xlu0 %v1140_v60  ;;  %v1143_v3 = vmax.f32 %v3777_v1, %v3780_v2 }
 0x3ba   : > { %1144 = vmax.xlane.f32.xlu1 %v1143_v3 }
 0x3bb   : > { %v1036_v49 = vpop.xlane.xlu0 %1035 }
 0x3bc   : > { %vm1080_vm5 = vcmp.ge.f32.partialorder %v3627_v16, %v1036_v49  ;;  %vm1081_vm6 = vcmp.ge.f32.partialorder %v3630_v51, %v1036_v49 }
 0x3bd   : > { %v1039_v63 = vpop.xlane.xlu1 %1038  ;;  %v3787_v44 = vsel %vm1080_vm5, -inf, %v3627_v16  ;;  %v3790_v45 = vsel %vm1081_vm6, -inf, %v3630_v51 }
 0x3be   : > { %vm1082_vm7 = vcmp.ge.f32.partialorder %v3637_v5, %v1039_v63  ;;  %vm1083_vm8 = vcmp.ge.f32.partialorder %v3640_v8, %v1039_v63  ;;  %v1146_v15 = vmax.f32 %v3787_v44, %v3790_v45 }
 0x3bf   : > { %v3797_v60 = vsel %vm1082_vm7, -inf, %v3637_v5  ;;  %v3800_v3 = vsel %vm1083_vm8, -inf, %v3640_v8 }
 0x3c0   : > { %1147 = vmax.xlane.f32.xlu0 %v1146_v15  ;;  %v1149_v16 = vmax.f32 %v3797_v60, %v3800_v3 }
 0x3c2   : > { %1150 = vmax.xlane.f32.xlu1 %v1149_v16 }
 0x3c3   : > { %v1042_v51 = vpop.xlane.xlu0 %1041 }
 0x3c4   : > { %vm1084_vm9 = vcmp.ge.f32.partialorder %v3647_v57, %v1042_v51  ;;  %vm1085_vm10 = vcmp.ge.f32.partialorder %v3650_v39, %v1042_v51 }
 0x3c5   : > { %v1045_v49 = vpop.xlane.xlu1 %1044  ;;  %v3807_v63 = vsel %vm1084_vm9, -inf, %v3647_v57  ;;  %v3810_v5 = vsel %vm1085_vm10, -inf, %v3650_v39 }
 0x3c6   : > { %vm1086_vm11 = vcmp.ge.f32.partialorder %v3657_v50, %v1045_v49  ;;  %vm1087_vm12 = vcmp.ge.f32.partialorder %v3660_v56, %v1045_v49  ;;  %v1152_v8 = vmax.f32 %v3807_v63, %v3810_v5 }
 0x3c7   : > { %v3817_v15 = vsel %vm1086_vm11, -inf, %v3657_v50  ;;  %v3820_v16 = vsel %vm1087_vm12, -inf, %v3660_v56 }
 0x3c8   : > { %1153 = vmax.xlane.f32.xlu0 %v1152_v8  ;;  %v1155_v57 = vmax.f32 %v3817_v15, %v3820_v16 }
 0x3ca   : > { %1156 = vmax.xlane.f32.xlu1 %v1155_v57 }
 0x3cb   : > { %v1048_v39 = vpop.xlane.xlu0 %1047 }
 0x3cc   : > { %vm1088_vm13 = vcmp.ge.f32.partialorder %v3667_v47, %v1048_v39  ;;  %vm1089_vm14 = vcmp.ge.f32.partialorder %v3670_v11, %v1048_v39 }
 0x3cd   : > { %v1051_v51 = vpop.xlane.xlu1 %1050  ;;  %v3827_v49 = vsel %vm1088_vm13, -inf, %v3667_v47  ;;  %v3830_v50 = vsel %vm1089_vm14, -inf, %v3670_v11 }
 0x3ce   : > { %vm1090_vm15 = vcmp.ge.f32.partialorder %v3677_v7, %v1051_v51  ;;  %vm1091_vm0 = vcmp.ge.f32.partialorder %v3680_v46, %v1051_v51  ;;  %v1158_v56 = vmax.f32 %v3827_v49, %v3830_v50 }
 0x3cf   : > { %v3837_v8 = vsel %vm1090_vm15, -inf, %v3677_v7  ;;  %v3840_v57 = vsel %vm1091_vm0, -inf, %v3680_v46 }
 0x3d0   : > { %1159 = vmax.xlane.f32.xlu0 %v1158_v56  ;;  %v1161_v47 = vmax.f32 %v3837_v8, %v3840_v57 }
 0x3d2   : > { %1162 = vmax.xlane.f32.xlu1 %v1161_v47 }
 0x3d3   : > { %v1054_v11 = vpop.xlane.xlu0 %1053 }
 0x3d4   : > { %vm1092_vm1 = vcmp.ge.f32.partialorder %v3687_v37, %v1054_v11  ;;  %vm1093_vm2 = vcmp.ge.f32.partialorder %v3690_v30, %v1054_v11 }
 0x3d5   : > { %v1057_v39 = vpop.xlane.xlu1 %1056  ;;  %v3847_v51 = vsel %vm1092_vm1, -inf, %v3687_v37  ;;  %v3850_v7 = vsel %vm1093_vm2, -inf, %v3690_v30 }
 0x3d6   : > { %vm1094_vm3 = vcmp.ge.f32.partialorder %v3697_v29, %v1057_v39  ;;  %vm1095_vm4 = vcmp.ge.f32.partialorder %v3700_v36, %v1057_v39  ;;  %v1164_v46 = vmax.f32 %v3847_v51, %v3850_v7 }
 0x3d7   : > { %v3857_v56 = vsel %vm1094_vm3, -inf, %v3697_v29  ;;  %v3860_v47 = vsel %vm1095_vm4, -inf, %v3700_v36 }
 0x3d8   : > { %1165 = vmax.xlane.f32.xlu0 %v1164_v46  ;;  %v1167_v37 = vmax.f32 %v3857_v56, %v3860_v47 }
 0x3da   : > { %1168 = vmax.xlane.f32.xlu1 %v1167_v37 }
 0x3db   : > { %v1060_v30 = vpop.xlane.xlu0 %1059 }
 0x3dc   : > { %vm1096_vm5 = vcmp.ge.f32.partialorder %v3707_v27, %v1060_v30  ;;  %vm1097_vm6 = vcmp.ge.f32.partialorder %v3710_v55, %v1060_v30 }
 0x3dd   : > { %v1063_v11 = vpop.xlane.xlu1 %1062  ;;  %v3867_v39 = vsel %vm1096_vm5, -inf, %v3707_v27  ;;  %v3870_v29 = vsel %vm1097_vm6, -inf, %v3710_v55 }
 0x3de   : > { %vm1098_vm7 = vcmp.ge.f32.partialorder %v3717_v38, %v1063_v11  ;;  %vm1099_vm8 = vcmp.ge.f32.partialorder %v3720_v21, %v1063_v11  ;;  %v1170_v36 = vmax.f32 %v3867_v39, %v3870_v29 }
 0x3df   : > { %v3877_v46 = vsel %vm1098_vm7, -inf, %v3717_v38  ;;  %v3880_v37 = vsel %vm1099_vm8, -inf, %v3720_v21 }
 0x3e0   : > { %1171 = vmax.xlane.f32.xlu0 %v1170_v36  ;;  %v1173_v27 = vmax.f32 %v3877_v46, %v3880_v37 }
 0x3e2   : > { %1174 = vmax.xlane.f32.xlu1 %v1173_v27 }
 0x3e3   : > { %v1066_v55 = vpop.xlane.xlu0 %1065 }
 0x3e4   : > { %vm1100_vm9 = vcmp.ge.f32.partialorder %v3727_v26, %v1066_v55  ;;  %vm1101_vm10 = vcmp.ge.f32.partialorder %v3730_v6, %v1066_v55 }
 0x3e5   : > { %v1069_v30 = vpop.xlane.xlu1 %1068  ;;  %v3887_v11 = vsel %vm1100_vm9, -inf, %v3727_v26  ;;  %v3890_v38 = vsel %vm1101_vm10, -inf, %v3730_v6 }
 0x3e6   : > { %vm1102_vm11 = vcmp.ge.f32.partialorder %v3737_v34, %v1069_v30  ;;  %vm1103_vm12 = vcmp.ge.f32.partialorder %v3740_v20, %v1069_v30  ;;  %v1176_v21 = vmax.f32 %v3887_v11, %v3890_v38 }
 0x3e7   : > { %v3897_v36 = vsel %vm1102_vm11, -inf, %v3737_v34  ;;  %v3900_v27 = vsel %vm1103_vm12, -inf, %v3740_v20 }
 0x3e8   : > { %1177 = vmax.xlane.f32.xlu0 %v1176_v21  ;;  %v1179_v26 = vmax.f32 %v3897_v36, %v3900_v27 }
 0x3ea   : > { %1180 = vmax.xlane.f32.xlu1 %v1179_v26 }
 0x3eb   : > { %v1072_v6 = vpop.xlane.xlu0 %1071 }
 0x3ec   : > { %vm1104_vm13 = vcmp.ge.f32.partialorder %v3747_v23, %v1072_v6  ;;  %vm1105_vm14 = vcmp.ge.f32.partialorder %v3750_v61, %v1072_v6 }
 0x3ed   : > { %v3907_v55 = vsel %vm1104_vm13, -inf, %v3747_v23  ;;  %v3910_v30 = vsel %vm1105_vm14, -inf, %v3750_v61  ;;  %v1075_v34 = vpop.xlane.xlu1 %1074 }
 0x3ee   : > { %vm1106_vm15 = vcmp.ge.f32.partialorder %v3757_v54, %v1075_v34  ;;  %vm1107_vm0 = vcmp.ge.f32.partialorder %v3760_v22, %v1075_v34  ;;  %v1182_v20 = vmax.f32 %v3907_v55, %v3910_v30 }
 0x3ef   : > { %v3917_v21 = vsel %vm1106_vm15, -inf, %v3757_v54  ;;  %v3920_v26 = vsel %vm1107_vm0, -inf, %v3760_v22 }
 0x3f0   : > { %1183 = vmax.xlane.f32.xlu0 %v1182_v20  ;;  %v1185_v23 = vmax.f32 %v3917_v21, %v3920_v26 }
 0x3f2   : > { %1186 = vmax.xlane.f32.xlu1 %v1185_v23 }
 0x445   : > { %v1142_v61 = vpop.xlane.xlu0 %1141 }
 0x446   : > { %vm1188_vm1 = vcmp.ge.f32.partialorder %v3767_v53, %v1142_v61  ;;  %vm1189_vm2 = vcmp.ge.f32.partialorder %v3770_v62, %v1142_v61 }
 0x447   : > { %v3927_v6 = vsel %vm1188_vm1, -inf, %v3767_v53  ;;  %v3930_v34 = vsel %vm1189_vm2, -inf, %v3770_v62  ;;  %v1145_v54 = vpop.xlane.xlu1 %1144 }
 0x448   : > { %vm1190_vm3 = vcmp.ge.f32.partialorder %v3777_v1, %v1145_v54  ;;  %vm1191_vm4 = vcmp.ge.f32.partialorder %v3780_v2, %v1145_v54  ;;  %v1252_v22 = vmax.f32 %v3927_v6, %v3930_v34 }
 0x449   : > { %v3937_v20 = vsel %vm1190_vm3, -inf, %v3777_v1  ;;  %v3940_v23 = vsel %vm1191_vm4, -inf, %v3780_v2 }
 0x44a   : > { %1253 = vmax.xlane.f32.xlu0 %v1252_v22  ;;  %v1255_v53 = vmax.f32 %v3937_v20, %v3940_v23 }
 0x44c   : > { %1256 = vmax.xlane.f32.xlu1 %v1255_v53 }
 0x44d   : > { %v1148_v62 = vpop.xlane.xlu0 %1147 }
 0x44e   : > { %vm1192_vm5 = vcmp.ge.f32.partialorder %v3787_v44, %v1148_v62  ;;  %vm1193_vm6 = vcmp.ge.f32.partialorder %v3790_v45, %v1148_v62 }
 0x44f   : > { %v3947_v61 = vsel %vm1192_vm5, -inf, %v3787_v44  ;;  %v3950_v54 = vsel %vm1193_vm6, -inf, %v3790_v45  ;;  %v1151_v1 = vpop.xlane.xlu1 %1150 }
 0x450   : > { %vm1194_vm7 = vcmp.ge.f32.partialorder %v3797_v60, %v1151_v1  ;;  %vm1195_vm8 = vcmp.ge.f32.partialorder %v3800_v3, %v1151_v1  ;;  %v1258_v2 = vmax.f32 %v3947_v61, %v3950_v54 }
 0x451   : > { %v3957_v22 = vsel %vm1194_vm7, -inf, %v3797_v60  ;;  %v3960_v53 = vsel %vm1195_vm8, -inf, %v3800_v3 }
 0x452   : > { %1259 = vmax.xlane.f32.xlu0 %v1258_v2  ;;  %v1261_v44 = vmax.f32 %v3957_v22, %v3960_v53 }
 0x454   : > { %1262 = vmax.xlane.f32.xlu1 %v1261_v44 }
 0x455   : > { %v1154_v45 = vpop.xlane.xlu0 %1153 }
 0x456   : > { %vm1196_vm9 = vcmp.ge.f32.partialorder %v3807_v63, %v1154_v45  ;;  %vm1197_vm10 = vcmp.ge.f32.partialorder %v3810_v5, %v1154_v45 }
 0x457   : > { %v3967_v62 = vsel %vm1196_vm9, -inf, %v3807_v63  ;;  %v3970_v1 = vsel %vm1197_vm10, -inf, %v3810_v5  ;;  %v1157_v60 = vpop.xlane.xlu1 %1156 }
 0x458   : > { %vm1198_vm11 = vcmp.ge.f32.partialorder %v3817_v15, %v1157_v60  ;;  %vm1199_vm12 = vcmp.ge.f32.partialorder %v3820_v16, %v1157_v60  ;;  %v1264_v3 = vmax.f32 %v3967_v62, %v3970_v1 }
 0x459   : > { %v3977_v2 = vsel %vm1198_vm11, -inf, %v3817_v15  ;;  %v3980_v44 = vsel %vm1199_vm12, -inf, %v3820_v16 }
 0x45a   : > { %1265 = vmax.xlane.f32.xlu0 %v1264_v3  ;;  %v1267_v63 = vmax.f32 %v3977_v2, %v3980_v44 }
 0x45c   : > { %1268 = vmax.xlane.f32.xlu1 %v1267_v63 }
 0x45d   : > { %v1160_v5 = vpop.xlane.xlu0 %1159 }
 0x45e   : > { %vm1200_vm13 = vcmp.ge.f32.partialorder %v3827_v49, %v1160_v5  ;;  %vm1201_vm14 = vcmp.ge.f32.partialorder %v3830_v50, %v1160_v5 }
 0x45f   : > { %v3987_v45 = vsel %vm1200_vm13, -inf, %v3827_v49  ;;  %v3990_v60 = vsel %vm1201_vm14, -inf, %v3830_v50  ;;  %v1163_v15 = vpop.xlane.xlu1 %1162 }
 0x460   : > { %vm1202_vm15 = vcmp.ge.f32.partialorder %v3837_v8, %v1163_v15  ;;  %vm1203_vm0 = vcmp.ge.f32.partialorder %v3840_v57, %v1163_v15  ;;  %v1270_v16 = vmax.f32 %v3987_v45, %v3990_v60 }
 0x461   : > { %v3997_v3 = vsel %vm1202_vm15, -inf, %v3837_v8  ;;  %v4000_v63 = vsel %vm1203_vm0, -inf, %v3840_v57 }
 0x462   : > { %1271 = vmax.xlane.f32.xlu0 %v1270_v16  ;;  %v1273_v49 = vmax.f32 %v3997_v3, %v4000_v63 }
 0x464   : > { %1274 = vmax.xlane.f32.xlu1 %v1273_v49 }
 0x465   : > { %v1166_v50 = vpop.xlane.xlu0 %1165 }
 0x466   : > { %vm1204_vm1 = vcmp.ge.f32.partialorder %v3847_v51, %v1166_v50  ;;  %vm1205_vm2 = vcmp.ge.f32.partialorder %v3850_v7, %v1166_v50 }
 0x467   : > { %v4007_v5 = vsel %vm1204_vm1, -inf, %v3847_v51  ;;  %v4010_v15 = vsel %vm1205_vm2, -inf, %v3850_v7  ;;  %v1169_v8 = vpop.xlane.xlu1 %1168 }
 0x468   : > { %vm1206_vm3 = vcmp.ge.f32.partialorder %v3857_v56, %v1169_v8  ;;  %vm1207_vm4 = vcmp.ge.f32.partialorder %v3860_v47, %v1169_v8  ;;  %v1276_v57 = vmax.f32 %v4007_v5, %v4010_v15 }
 0x469   : > { %v4017_v16 = vsel %vm1206_vm3, -inf, %v3857_v56  ;;  %v4020_v49 = vsel %vm1207_vm4, -inf, %v3860_v47 }
 0x46a   : > { %1277 = vmax.xlane.f32.xlu0 %v1276_v57  ;;  %v1279_v51 = vmax.f32 %v4017_v16, %v4020_v49 }
 0x46c   : > { %1280 = vmax.xlane.f32.xlu1 %v1279_v51 }
 0x46d   : > { %v1172_v7 = vpop.xlane.xlu0 %1171 }
 0x46e   : > { %vm1208_vm5 = vcmp.ge.f32.partialorder %v3867_v39, %v1172_v7  ;;  %vm1209_vm6 = vcmp.ge.f32.partialorder %v3870_v29, %v1172_v7 }
 0x46f   : > { %v4027_v50 = vsel %vm1208_vm5, -inf, %v3867_v39  ;;  %v4030_v8 = vsel %vm1209_vm6, -inf, %v3870_v29  ;;  %v1175_v56 = vpop.xlane.xlu1 %1174 }
 0x470   : > { %vm1210_vm7 = vcmp.ge.f32.partialorder %v3877_v46, %v1175_v56  ;;  %vm1211_vm8 = vcmp.ge.f32.partialorder %v3880_v37, %v1175_v56  ;;  %v1282_v47 = vmax.f32 %v4027_v50, %v4030_v8 }
 0x471   : > { %v4037_v57 = vsel %vm1210_vm7, -inf, %v3877_v46  ;;  %v4040_v51 = vsel %vm1211_vm8, -inf, %v3880_v37 }
 0x472   : > { %1283 = vmax.xlane.f32.xlu0 %v1282_v47  ;;  %v1285_v39 = vmax.f32 %v4037_v57, %v4040_v51 }
 0x474   : > { %1286 = vmax.xlane.f32.xlu1 %v1285_v39 }
 0x475   : > { %v1178_v29 = vpop.xlane.xlu0 %1177 }
 0x476   : > { %vm1212_vm9 = vcmp.ge.f32.partialorder %v3887_v11, %v1178_v29  ;;  %vm1213_vm10 = vcmp.ge.f32.partialorder %v3890_v38, %v1178_v29 }
 0x477   : > { %v4047_v7 = vsel %vm1212_vm9, -inf, %v3887_v11  ;;  %v4050_v56 = vsel %vm1213_vm10, -inf, %v3890_v38  ;;  %v1181_v46 = vpop.xlane.xlu1 %1180 }
 0x478   : > { %vm1214_vm11 = vcmp.ge.f32.partialorder %v3897_v36, %v1181_v46  ;;  %vm1215_vm12 = vcmp.ge.f32.partialorder %v3900_v27, %v1181_v46  ;;  %v1288_v37 = vmax.f32 %v4047_v7, %v4050_v56 }
 0x479   : > { %v4057_v47 = vsel %vm1214_vm11, -inf, %v3897_v36  ;;  %v4060_v39 = vsel %vm1215_vm12, -inf, %v3900_v27 }
 0x47a   : > { %1289 = vmax.xlane.f32.xlu0 %v1288_v37  ;;  %v1291_v11 = vmax.f32 %v4057_v47, %v4060_v39 }
 0x47c   : > { %1292 = vmax.xlane.f32.xlu1 %v1291_v11 }
 0x47d   : > { %v1184_v38 = vpop.xlane.xlu0 %1183 }
 0x47e   : > { %vm1216_vm13 = vcmp.ge.f32.partialorder %v3907_v55, %v1184_v38  ;;  %vm1217_vm14 = vcmp.ge.f32.partialorder %v3910_v30, %v1184_v38 }
 0x47f   : > { %v4067_v29 = vsel %vm1216_vm13, -inf, %v3907_v55  ;;  %v4070_v46 = vsel %vm1217_vm14, -inf, %v3910_v30  ;;  %v1187_v36 = vpop.xlane.xlu1 %1186 }
 0x480   : > { %vm1218_vm15 = vcmp.ge.f32.partialorder %v3917_v21, %v1187_v36  ;;  %vm1219_vm0 = vcmp.ge.f32.partialorder %v3920_v26, %v1187_v36  ;;  %v1294_v27 = vmax.f32 %v4067_v29, %v4070_v46 }
 0x481   : > { %v4077_v37 = vsel %vm1218_vm15, -inf, %v3917_v21  ;;  %v4080_v11 = vsel %vm1219_vm0, -inf, %v3920_v26 }
 0x482   : > { %1295 = vmax.xlane.f32.xlu0 %v1294_v27  ;;  %v1297_v55 = vmax.f32 %v4077_v37, %v4080_v11 }
 0x484   : > { %1298 = vmax.xlane.f32.xlu1 %v1297_v55 }
 0x4d7   : > { %v1254_v30 = vpop.xlane.xlu0 %1253 }
 0x4d8   : > { %vm1300_vm1 = vcmp.ge.f32.partialorder %v3927_v6, %v1254_v30  ;;  %vm1301_vm2 = vcmp.ge.f32.partialorder %v3930_v34, %v1254_v30 }
 0x4d9   : > { %v4087_v38 = vsel %vm1300_vm1, -inf, %v3927_v6  ;;  %v4090_v36 = vsel %vm1301_vm2, -inf, %v3930_v34  ;;  %v1257_v21 = vpop.xlane.xlu1 %1256 }
 0x4da   : > { %vm1302_vm3 = vcmp.ge.f32.partialorder %v3937_v20, %v1257_v21  ;;  %vm1303_vm4 = vcmp.ge.f32.partialorder %v3940_v23, %v1257_v21  ;;  %v1364_v26 = vmax.f32 %v4087_v38, %v4090_v36 }
 0x4db   : > { %v4097_v27 = vsel %vm1302_vm3, -inf, %v3937_v20  ;;  %v4100_v55 = vsel %vm1303_vm4, -inf, %v3940_v23 }
 0x4dc   : > { %1365 = vmax.xlane.f32.xlu0 %v1364_v26  ;;  %v1367_v6 = vmax.f32 %v4097_v27, %v4100_v55 }
 0x4de   : > { %1368 = vmax.xlane.f32.xlu1 %v1367_v6 }
 0x4df   : > { %v1260_v34 = vpop.xlane.xlu0 %1259 }
 0x4e0   : > { %vm1304_vm5 = vcmp.ge.f32.partialorder %v3947_v61, %v1260_v34  ;;  %vm1305_vm6 = vcmp.ge.f32.partialorder %v3950_v54, %v1260_v34 }
 0x4e1   : > { %v4107_v30 = vsel %vm1304_vm5, -inf, %v3947_v61  ;;  %v4110_v21 = vsel %vm1305_vm6, -inf, %v3950_v54  ;;  %v1263_v20 = vpop.xlane.xlu1 %1262 }
 0x4e2   : > { %vm1306_vm7 = vcmp.ge.f32.partialorder %v3957_v22, %v1263_v20  ;;  %vm1307_vm8 = vcmp.ge.f32.partialorder %v3960_v53, %v1263_v20  ;;  %v1370_v23 = vmax.f32 %v4107_v30, %v4110_v21 }
 0x4e3   : > { %v4117_v26 = vsel %vm1306_vm7, -inf, %v3957_v22  ;;  %v4120_v6 = vsel %vm1307_vm8, -inf, %v3960_v53 }
 0x4e4   : > { %1371 = vmax.xlane.f32.xlu0 %v1370_v23  ;;  %v1373_v61 = vmax.f32 %v4117_v26, %v4120_v6 }
 0x4e6   : > { %1374 = vmax.xlane.f32.xlu1 %v1373_v61 }
 0x4e7   : > { %v1266_v54 = vpop.xlane.xlu0 %1265 }
 0x4e8   : > { %vm1308_vm9 = vcmp.ge.f32.partialorder %v3967_v62, %v1266_v54  ;;  %vm1309_vm10 = vcmp.ge.f32.partialorder %v3970_v1, %v1266_v54 }
 0x4e9   : > { %v4127_v34 = vsel %vm1308_vm9, -inf, %v3967_v62  ;;  %v4130_v20 = vsel %vm1309_vm10, -inf, %v3970_v1  ;;  %v1269_v22 = vpop.xlane.xlu1 %1268 }
 0x4ea   : > { %vm1310_vm11 = vcmp.ge.f32.partialorder %v3977_v2, %v1269_v22  ;;  %vm1311_vm12 = vcmp.ge.f32.partialorder %v3980_v44, %v1269_v22  ;;  %v1376_v53 = vmax.f32 %v4127_v34, %v4130_v20 }
 0x4eb   : > { %v4137_v23 = vsel %vm1310_vm11, -inf, %v3977_v2  ;;  %v4140_v61 = vsel %vm1311_vm12, -inf, %v3980_v44 }
 0x4ec   : > { %1377 = vmax.xlane.f32.xlu0 %v1376_v53  ;;  %v1379_v62 = vmax.f32 %v4137_v23, %v4140_v61 }
 0x4ee   : > { %1380 = vmax.xlane.f32.xlu1 %v1379_v62 }
 0x4ef   : > { %v1272_v1 = vpop.xlane.xlu0 %1271 }
 0x4f0   : > { %vm1312_vm13 = vcmp.ge.f32.partialorder %v3987_v45, %v1272_v1  ;;  %vm1313_vm14 = vcmp.ge.f32.partialorder %v3990_v60, %v1272_v1 }
 0x4f1   : > { %v4147_v54 = vsel %vm1312_vm13, -inf, %v3987_v45  ;;  %v4150_v22 = vsel %vm1313_vm14, -inf, %v3990_v60  ;;  %v1275_v2 = vpop.xlane.xlu1 %1274 }
 0x4f2   : > { %vm1314_vm15 = vcmp.ge.f32.partialorder %v3997_v3, %v1275_v2  ;;  %vm1315_vm0 = vcmp.ge.f32.partialorder %v4000_v63, %v1275_v2  ;;  %v1382_v44 = vmax.f32 %v4147_v54, %v4150_v22 }
 0x4f3   : > { %v4157_v53 = vsel %vm1314_vm15, -inf, %v3997_v3  ;;  %v4160_v62 = vsel %vm1315_vm0, -inf, %v4000_v63 }
 0x4f4   : > { %1383 = vmax.xlane.f32.xlu0 %v1382_v44  ;;  %v1385_v45 = vmax.f32 %v4157_v53, %v4160_v62 }
 0x4f6   : > { %1386 = vmax.xlane.f32.xlu1 %v1385_v45 }
 0x4f7   : > { %v1278_v60 = vpop.xlane.xlu0 %1277 }
 0x4f8   : > { %vm1316_vm1 = vcmp.ge.f32.partialorder %v4007_v5, %v1278_v60  ;;  %vm1317_vm2 = vcmp.ge.f32.partialorder %v4010_v15, %v1278_v60 }
 0x4f9   : > { %v4167_v1 = vsel %vm1316_vm1, -inf, %v4007_v5  ;;  %v4170_v2 = vsel %vm1317_vm2, -inf, %v4010_v15  ;;  %v1281_v3 = vpop.xlane.xlu1 %1280 }
 0x4fa   : > { %vm1318_vm3 = vcmp.ge.f32.partialorder %v4017_v16, %v1281_v3  ;;  %vm1319_vm4 = vcmp.ge.f32.partialorder %v4020_v49, %v1281_v3  ;;  %v1388_v63 = vmax.f32 %v4167_v1, %v4170_v2 }
 0x4fb   : > { %v4177_v44 = vsel %vm1318_vm3, -inf, %v4017_v16  ;;  %v4180_v45 = vsel %vm1319_vm4, -inf, %v4020_v49 }
 0x4fc   : > { %1389 = vmax.xlane.f32.xlu0 %v1388_v63  ;;  %v1391_v5 = vmax.f32 %v4177_v44, %v4180_v45 }
 0x4fe   : > { %1392 = vmax.xlane.f32.xlu1 %v1391_v5 }
 0x4ff   : > { %v1284_v15 = vpop.xlane.xlu0 %1283 }
 0x500   : > { %vm1320_vm5 = vcmp.ge.f32.partialorder %v4027_v50, %v1284_v15  ;;  %vm1321_vm6 = vcmp.ge.f32.partialorder %v4030_v8, %v1284_v15 }
 0x501   : > { %v4187_v60 = vsel %vm1320_vm5, -inf, %v4027_v50  ;;  %v4190_v3 = vsel %vm1321_vm6, -inf, %v4030_v8  ;;  %v1287_v16 = vpop.xlane.xlu1 %1286 }
 0x502   : > { %vm1322_vm7 = vcmp.ge.f32.partialorder %v4037_v57, %v1287_v16  ;;  %vm1323_vm8 = vcmp.ge.f32.partialorder %v4040_v51, %v1287_v16  ;;  %v1394_v49 = vmax.f32 %v4187_v60, %v4190_v3 }
 0x503   : > { %v4197_v63 = vsel %vm1322_vm7, -inf, %v4037_v57  ;;  %v4200_v5 = vsel %vm1323_vm8, -inf, %v4040_v51 }
 0x504   : > { %1395 = vmax.xlane.f32.xlu0 %v1394_v49  ;;  %v1397_v50 = vmax.f32 %v4197_v63, %v4200_v5 }
 0x506   : > { %1398 = vmax.xlane.f32.xlu1 %v1397_v50 }
 0x507   : > { %v1290_v8 = vpop.xlane.xlu0 %1289 }
 0x508   : > { %vm1324_vm9 = vcmp.ge.f32.partialorder %v4047_v7, %v1290_v8  ;;  %vm1325_vm10 = vcmp.ge.f32.partialorder %v4050_v56, %v1290_v8 }
 0x509   : > { %v4207_v15 = vsel %vm1324_vm9, -inf, %v4047_v7  ;;  %v4210_v16 = vsel %vm1325_vm10, -inf, %v4050_v56  ;;  %v1293_v57 = vpop.xlane.xlu1 %1292 }
 0x50a   : > { %vm1326_vm11 = vcmp.ge.f32.partialorder %v4057_v47, %v1293_v57  ;;  %vm1327_vm12 = vcmp.ge.f32.partialorder %v4060_v39, %v1293_v57  ;;  %v1400_v51 = vmax.f32 %v4207_v15, %v4210_v16 }
 0x50b   : > { %v4217_v49 = vsel %vm1326_vm11, -inf, %v4057_v47  ;;  %v4220_v50 = vsel %vm1327_vm12, -inf, %v4060_v39 }
 0x50c   : > { %1401 = vmax.xlane.f32.xlu0 %v1400_v51  ;;  %v1403_v7 = vmax.f32 %v4217_v49, %v4220_v50 }
 0x50e   : > { %1404 = vmax.xlane.f32.xlu1 %v1403_v7 }
 0x50f   : > { %v1296_v56 = vpop.xlane.xlu0 %1295 }
 0x510   : > { %vm1328_vm13 = vcmp.ge.f32.partialorder %v4067_v29, %v1296_v56  ;;  %vm1329_vm14 = vcmp.ge.f32.partialorder %v4070_v46, %v1296_v56 }
 0x511   : > { %v4227_v8 = vsel %vm1328_vm13, -inf, %v4067_v29  ;;  %v4230_v57 = vsel %vm1329_vm14, -inf, %v4070_v46  ;;  %v1299_v47 = vpop.xlane.xlu1 %1298 }
 0x512   : > { %vm1330_vm15 = vcmp.ge.f32.partialorder %v4077_v37, %v1299_v47  ;;  %vm1331_vm0 = vcmp.ge.f32.partialorder %v4080_v11, %v1299_v47  ;;  %v1406_v39 = vmax.f32 %v4227_v8, %v4230_v57 }
 0x513   : > { %v4237_v51 = vsel %vm1330_vm15, -inf, %v4077_v37  ;;  %v4240_v7 = vsel %vm1331_vm0, -inf, %v4080_v11 }
 0x514   : > { %1407 = vmax.xlane.f32.xlu0 %v1406_v39  ;;  %v1409_v29 = vmax.f32 %v4237_v51, %v4240_v7 }
 0x516   : > { %1410 = vmax.xlane.f32.xlu1 %v1409_v29 }
 0x569   : > { %v1366_v46 = vpop.xlane.xlu0 %1365 }
 0x56a   : > { %vm1412_vm1 = vcmp.ge.f32.partialorder %v4087_v38, %v1366_v46  ;;  %vm1413_vm2 = vcmp.ge.f32.partialorder %v4090_v36, %v1366_v46 }
 0x56b   : > { %v4247_v56 = vsel %vm1412_vm1, -inf, %v4087_v38  ;;  %v4250_v47 = vsel %vm1413_vm2, -inf, %v4090_v36  ;;  %v1369_v37 = vpop.xlane.xlu1 %1368 }
 0x56c   : > { %vm1414_vm3 = vcmp.ge.f32.partialorder %v4097_v27, %v1369_v37  ;;  %vm1415_vm4 = vcmp.ge.f32.partialorder %v4100_v55, %v1369_v37  ;;  %v1476_v11 = vmax.f32 %v4247_v56, %v4250_v47 }
 0x56d   : > { %v4257_v39 = vsel %vm1414_vm3, -inf, %v4097_v27  ;;  %v4260_v29 = vsel %vm1415_vm4, -inf, %v4100_v55 }
 0x56e   : > { %1477 = vmax.xlane.f32.xlu0 %v1476_v11  ;;  %v1479_v38 = vmax.f32 %v4257_v39, %v4260_v29 }
 0x570   : > { %1480 = vmax.xlane.f32.xlu1 %v1479_v38 }
 0x571   : > { %v1372_v36 = vpop.xlane.xlu0 %1371 }
 0x572   : > { %vm1416_vm5 = vcmp.ge.f32.partialorder %v4107_v30, %v1372_v36  ;;  %vm1417_vm6 = vcmp.ge.f32.partialorder %v4110_v21, %v1372_v36 }
 0x573   : > { %v4267_v46 = vsel %vm1416_vm5, -inf, %v4107_v30  ;;  %v4270_v37 = vsel %vm1417_vm6, -inf, %v4110_v21  ;;  %v1375_v27 = vpop.xlane.xlu1 %1374 }
 0x574   : > { %vm1418_vm7 = vcmp.ge.f32.partialorder %v4117_v26, %v1375_v27  ;;  %vm1419_vm8 = vcmp.ge.f32.partialorder %v4120_v6, %v1375_v27  ;;  %v1482_v55 = vmax.f32 %v4267_v46, %v4270_v37 }
 0x575   : > { %v4277_v11 = vsel %vm1418_vm7, -inf, %v4117_v26  ;;  %v4280_v38 = vsel %vm1419_vm8, -inf, %v4120_v6 }
 0x576   : > { %1483 = vmax.xlane.f32.xlu0 %v1482_v55  ;;  %v1485_v30 = vmax.f32 %v4277_v11, %v4280_v38 }
 0x578   : > { %1486 = vmax.xlane.f32.xlu1 %v1485_v30 }
 0x579   : > { %v1378_v21 = vpop.xlane.xlu0 %1377 }
 0x57a   : > { %vm1420_vm9 = vcmp.ge.f32.partialorder %v4127_v34, %v1378_v21  ;;  %vm1421_vm10 = vcmp.ge.f32.partialorder %v4130_v20, %v1378_v21 }
 0x57b   : > { %v4287_v36 = vsel %vm1420_vm9, -inf, %v4127_v34  ;;  %v4290_v27 = vsel %vm1421_vm10, -inf, %v4130_v20  ;;  %v1381_v26 = vpop.xlane.xlu1 %1380 }
 0x57c   : > { %vm1422_vm11 = vcmp.ge.f32.partialorder %v4137_v23, %v1381_v26  ;;  %vm1423_vm12 = vcmp.ge.f32.partialorder %v4140_v61, %v1381_v26  ;;  %v1488_v6 = vmax.f32 %v4287_v36, %v4290_v27 }
 0x57d   : > { %v4297_v55 = vsel %vm1422_vm11, -inf, %v4137_v23  ;;  %v4300_v30 = vsel %vm1423_vm12, -inf, %v4140_v61 }
 0x57e   : > { %1489 = vmax.xlane.f32.xlu0 %v1488_v6  ;;  %v1491_v34 = vmax.f32 %v4297_v55, %v4300_v30 }
 0x580   : > { %1492 = vmax.xlane.f32.xlu1 %v1491_v34 }
 0x581   : > { %v1384_v20 = vpop.xlane.xlu0 %1383 }
 0x582   : > { %vm1424_vm13 = vcmp.ge.f32.partialorder %v4147_v54, %v1384_v20  ;;  %vm1425_vm14 = vcmp.ge.f32.partialorder %v4150_v22, %v1384_v20 }
 0x583   : > { %v4307_v21 = vsel %vm1424_vm13, -inf, %v4147_v54  ;;  %v4310_v26 = vsel %vm1425_vm14, -inf, %v4150_v22  ;;  %v1387_v23 = vpop.xlane.xlu1 %1386 }
 0x584   : > { %vm1426_vm15 = vcmp.ge.f32.partialorder %v4157_v53, %v1387_v23  ;;  %vm1427_vm0 = vcmp.ge.f32.partialorder %v4160_v62, %v1387_v23  ;;  %v1494_v61 = vmax.f32 %v4307_v21, %v4310_v26 }
 0x585   : > { %v4317_v6 = vsel %vm1426_vm15, -inf, %v4157_v53  ;;  %v4320_v34 = vsel %vm1427_vm0, -inf, %v4160_v62 }
 0x586   : > { %1495 = vmax.xlane.f32.xlu0 %v1494_v61  ;;  %v1497_v54 = vmax.f32 %v4317_v6, %v4320_v34 }
 0x588   : > { %1498 = vmax.xlane.f32.xlu1 %v1497_v54 }
 0x589   : > { %v1390_v22 = vpop.xlane.xlu0 %1389 }
 0x58a   : > { %vm1428_vm1 = vcmp.ge.f32.partialorder %v4167_v1, %v1390_v22  ;;  %vm1429_vm2 = vcmp.ge.f32.partialorder %v4170_v2, %v1390_v22 }
 0x58b   : > { %v4327_v20 = vsel %vm1428_vm1, -inf, %v4167_v1  ;;  %v4330_v23 = vsel %vm1429_vm2, -inf, %v4170_v2  ;;  %v1393_v53 = vpop.xlane.xlu1 %1392 }
 0x58c   : > { %vm1430_vm3 = vcmp.ge.f32.partialorder %v4177_v44, %v1393_v53  ;;  %vm1431_vm4 = vcmp.ge.f32.partialorder %v4180_v45, %v1393_v53  ;;  %v1500_v62 = vmax.f32 %v4327_v20, %v4330_v23 }
 0x58d   : > { %v4337_v61 = vsel %vm1430_vm3, -inf, %v4177_v44  ;;  %v4340_v54 = vsel %vm1431_vm4, -inf, %v4180_v45 }
 0x58e   : > { %1501 = vmax.xlane.f32.xlu0 %v1500_v62  ;;  %v1503_v1 = vmax.f32 %v4337_v61, %v4340_v54 }
 0x590   : > { %1504 = vmax.xlane.f32.xlu1 %v1503_v1 }
 0x591   : > { %v1396_v2 = vpop.xlane.xlu0 %1395 }
 0x592   : > { %vm1432_vm5 = vcmp.ge.f32.partialorder %v4187_v60, %v1396_v2  ;;  %vm1433_vm6 = vcmp.ge.f32.partialorder %v4190_v3, %v1396_v2 }
 0x593   : > { %v4347_v22 = vsel %vm1432_vm5, -inf, %v4187_v60  ;;  %v4350_v53 = vsel %vm1433_vm6, -inf, %v4190_v3  ;;  %v1399_v44 = vpop.xlane.xlu1 %1398 }
 0x594   : > { %vm1434_vm7 = vcmp.ge.f32.partialorder %v4197_v63, %v1399_v44  ;;  %vm1435_vm8 = vcmp.ge.f32.partialorder %v4200_v5, %v1399_v44  ;;  %v1506_v45 = vmax.f32 %v4347_v22, %v4350_v53 }
 0x595   : > { %v4357_v62 = vsel %vm1434_vm7, -inf, %v4197_v63  ;;  %v4360_v1 = vsel %vm1435_vm8, -inf, %v4200_v5 }
 0x596   : > { %1507 = vmax.xlane.f32.xlu0 %v1506_v45  ;;  %v1509_v60 = vmax.f32 %v4357_v62, %v4360_v1 }
 0x598   : > { %1510 = vmax.xlane.f32.xlu1 %v1509_v60 }
 0x599   : > { %v1402_v3 = vpop.xlane.xlu0 %1401 }
 0x59a   : > { %vm1436_vm9 = vcmp.ge.f32.partialorder %v4207_v15, %v1402_v3  ;;  %vm1437_vm10 = vcmp.ge.f32.partialorder %v4210_v16, %v1402_v3 }
 0x59b   : > { %v4367_v2 = vsel %vm1436_vm9, -inf, %v4207_v15  ;;  %v4370_v44 = vsel %vm1437_vm10, -inf, %v4210_v16  ;;  %v1405_v63 = vpop.xlane.xlu1 %1404 }
 0x59c   : > { %vm1438_vm11 = vcmp.ge.f32.partialorder %v4217_v49, %v1405_v63  ;;  %vm1439_vm12 = vcmp.ge.f32.partialorder %v4220_v50, %v1405_v63  ;;  %v1512_v5 = vmax.f32 %v4367_v2, %v4370_v44 }
 0x59d   : > { %v4377_v45 = vsel %vm1438_vm11, -inf, %v4217_v49  ;;  %v4380_v60 = vsel %vm1439_vm12, -inf, %v4220_v50 }
 0x59e   : > { %1513 = vmax.xlane.f32.xlu0 %v1512_v5  ;;  %v1515_v15 = vmax.f32 %v4377_v45, %v4380_v60 }
 0x5a0   : > { %1516 = vmax.xlane.f32.xlu1 %v1515_v15 }
 0x5a1   : > { %v1408_v16 = vpop.xlane.xlu0 %1407 }
 0x5a2   : > { %vm1440_vm13 = vcmp.ge.f32.partialorder %v4227_v8, %v1408_v16  ;;  %vm1441_vm14 = vcmp.ge.f32.partialorder %v4230_v57, %v1408_v16 }
 0x5a3   : > { %v4387_v3 = vsel %vm1440_vm13, -inf, %v4227_v8  ;;  %v4390_v63 = vsel %vm1441_vm14, -inf, %v4230_v57  ;;  %v1411_v49 = vpop.xlane.xlu1 %1410 }
 0x5a4   : > { %vm1442_vm15 = vcmp.ge.f32.partialorder %v4237_v51, %v1411_v49  ;;  %vm1443_vm0 = vcmp.ge.f32.partialorder %v4240_v7, %v1411_v49  ;;  %v1518_v50 = vmax.f32 %v4387_v3, %v4390_v63 }
 0x5a5   : > { %v4397_v5 = vsel %vm1442_vm15, -inf, %v4237_v51  ;;  %v4400_v15 = vsel %vm1443_vm0, -inf, %v4240_v7 }
 0x5a6   : > { %1519 = vmax.xlane.f32.xlu0 %v1518_v50  ;;  %v1521_v8 = vmax.f32 %v4397_v5, %v4400_v15 }
 0x5a8   : > { %1522 = vmax.xlane.f32.xlu1 %v1521_v8 }
 0x5fb   : > { %v1478_v57 = vpop.xlane.xlu0 %1477 }
 0x5fc   : > { %vm1524_vm1 = vcmp.ge.f32.partialorder %v4247_v56, %v1478_v57  ;;  %vm1525_vm2 = vcmp.ge.f32.partialorder %v4250_v47, %v1478_v57 }
 0x5fd   : > { %v4407_v16 = vsel %vm1524_vm1, -inf, %v4247_v56  ;;  %v4410_v49 = vsel %vm1525_vm2, -inf, %v4250_v47  ;;  %v1481_v51 = vpop.xlane.xlu1 %1480 }
 0x5fe   : > { %vm1526_vm3 = vcmp.ge.f32.partialorder %v4257_v39, %v1481_v51  ;;  %vm1527_vm4 = vcmp.ge.f32.partialorder %v4260_v29, %v1481_v51  ;;  %v1588_v7 = vmax.f32 %v4407_v16, %v4410_v49 }
 0x5ff   : > { %v4417_v50 = vsel %vm1526_vm3, -inf, %v4257_v39  ;;  %v4420_v8 = vsel %vm1527_vm4, -inf, %v4260_v29 }
 0x600   : > { %1589 = vmax.xlane.f32.xlu0 %v1588_v7  ;;  %v1591_v56 = vmax.f32 %v4417_v50, %v4420_v8 }
 0x602   : > { %1592 = vmax.xlane.f32.xlu1 %v1591_v56 }
 0x603   : > { %v1484_v47 = vpop.xlane.xlu0 %1483 }
 0x604   : > { %vm1528_vm5 = vcmp.ge.f32.partialorder %v4267_v46, %v1484_v47  ;;  %vm1529_vm6 = vcmp.ge.f32.partialorder %v4270_v37, %v1484_v47 }
 0x605   : > { %v4427_v57 = vsel %vm1528_vm5, -inf, %v4267_v46  ;;  %v4430_v51 = vsel %vm1529_vm6, -inf, %v4270_v37  ;;  %v1487_v39 = vpop.xlane.xlu1 %1486 }
 0x606   : > { %vm1530_vm7 = vcmp.ge.f32.partialorder %v4277_v11, %v1487_v39  ;;  %vm1531_vm8 = vcmp.ge.f32.partialorder %v4280_v38, %v1487_v39  ;;  %v1594_v29 = vmax.f32 %v4427_v57, %v4430_v51 }
 0x607   : > { %v4437_v7 = vsel %vm1530_vm7, -inf, %v4277_v11  ;;  %v4440_v56 = vsel %vm1531_vm8, -inf, %v4280_v38 }
 0x608   : > { %1595 = vmax.xlane.f32.xlu0 %v1594_v29  ;;  %v1597_v46 = vmax.f32 %v4437_v7, %v4440_v56 }
 0x60a   : > { %1598 = vmax.xlane.f32.xlu1 %v1597_v46 }
 0x60b   : > { %v1490_v37 = vpop.xlane.xlu0 %1489 }
 0x60c   : > { %vm1532_vm9 = vcmp.ge.f32.partialorder %v4287_v36, %v1490_v37  ;;  %vm1533_vm10 = vcmp.ge.f32.partialorder %v4290_v27, %v1490_v37 }
 0x60d   : > { %v4447_v47 = vsel %vm1532_vm9, -inf, %v4287_v36  ;;  %v4450_v39 = vsel %vm1533_vm10, -inf, %v4290_v27  ;;  %v1493_v11 = vpop.xlane.xlu1 %1492 }
 0x60e   : > { %vm1534_vm11 = vcmp.ge.f32.partialorder %v4297_v55, %v1493_v11  ;;  %vm1535_vm12 = vcmp.ge.f32.partialorder %v4300_v30, %v1493_v11  ;;  %v1600_v38 = vmax.f32 %v4447_v47, %v4450_v39 }
 0x60f   : > { %v4457_v29 = vsel %vm1534_vm11, -inf, %v4297_v55  ;;  %v4460_v46 = vsel %vm1535_vm12, -inf, %v4300_v30 }
 0x610   : > { %1601 = vmax.xlane.f32.xlu0 %v1600_v38  ;;  %v1603_v36 = vmax.f32 %v4457_v29, %v4460_v46 }
 0x612   : > { %1604 = vmax.xlane.f32.xlu1 %v1603_v36 }
 0x613   : > { %v1496_v27 = vpop.xlane.xlu0 %1495 }
 0x614   : > { %vm1536_vm13 = vcmp.ge.f32.partialorder %v4307_v21, %v1496_v27  ;;  %vm1537_vm14 = vcmp.ge.f32.partialorder %v4310_v26, %v1496_v27 }
 0x615   : > { %v4467_v37 = vsel %vm1536_vm13, -inf, %v4307_v21  ;;  %v4470_v11 = vsel %vm1537_vm14, -inf, %v4310_v26  ;;  %v1499_v55 = vpop.xlane.xlu1 %1498 }
 0x616   : > { %vm1538_vm15 = vcmp.ge.f32.partialorder %v4317_v6, %v1499_v55  ;;  %vm1539_vm0 = vcmp.ge.f32.partialorder %v4320_v34, %v1499_v55  ;;  %v1606_v30 = vmax.f32 %v4467_v37, %v4470_v11 }
 0x617   : > { %v4477_v38 = vsel %vm1538_vm15, -inf, %v4317_v6  ;;  %v4480_v36 = vsel %vm1539_vm0, -inf, %v4320_v34 }
 0x618   : > { %1607 = vmax.xlane.f32.xlu0 %v1606_v30  ;;  %v1609_v21 = vmax.f32 %v4477_v38, %v4480_v36 }
 0x61a   : > { %1610 = vmax.xlane.f32.xlu1 %v1609_v21 }
 0x61b   : > { %v1502_v26 = vpop.xlane.xlu0 %1501 }
 0x61c   : > { %vm1540_vm1 = vcmp.ge.f32.partialorder %v4327_v20, %v1502_v26  ;;  %vm1541_vm2 = vcmp.ge.f32.partialorder %v4330_v23, %v1502_v26 }
 0x61d   : > { %v4487_v27 = vsel %vm1540_vm1, -inf, %v4327_v20  ;;  %v4490_v55 = vsel %vm1541_vm2, -inf, %v4330_v23  ;;  %v1505_v6 = vpop.xlane.xlu1 %1504 }
 0x61e   : > { %vm1542_vm3 = vcmp.ge.f32.partialorder %v4337_v61, %v1505_v6  ;;  %vm1543_vm4 = vcmp.ge.f32.partialorder %v4340_v54, %v1505_v6  ;;  %v1612_v34 = vmax.f32 %v4487_v27, %v4490_v55 }
 0x61f   : > { %v4497_v30 = vsel %vm1542_vm3, -inf, %v4337_v61  ;;  %v4500_v21 = vsel %vm1543_vm4, -inf, %v4340_v54 }
 0x620   : > { %1613 = vmax.xlane.f32.xlu0 %v1612_v34  ;;  %v1615_v20 = vmax.f32 %v4497_v30, %v4500_v21 }
 0x622   : > { %1616 = vmax.xlane.f32.xlu1 %v1615_v20 }
 0x623   : > { %v1508_v23 = vpop.xlane.xlu0 %1507 }
 0x624   : > { %vm1544_vm5 = vcmp.ge.f32.partialorder %v4347_v22, %v1508_v23  ;;  %vm1545_vm6 = vcmp.ge.f32.partialorder %v4350_v53, %v1508_v23 }
 0x625   : > { %v4507_v26 = vsel %vm1544_vm5, -inf, %v4347_v22  ;;  %v4510_v6 = vsel %vm1545_vm6, -inf, %v4350_v53  ;;  %v1511_v61 = vpop.xlane.xlu1 %1510 }
 0x626   : > { %vm1546_vm7 = vcmp.ge.f32.partialorder %v4357_v62, %v1511_v61  ;;  %vm1547_vm8 = vcmp.ge.f32.partialorder %v4360_v1, %v1511_v61  ;;  %v1618_v54 = vmax.f32 %v4507_v26, %v4510_v6 }
 0x627   : > { %v4517_v34 = vsel %vm1546_vm7, -inf, %v4357_v62  ;;  %v4520_v20 = vsel %vm1547_vm8, -inf, %v4360_v1 }
 0x628   : > { %1619 = vmax.xlane.f32.xlu0 %v1618_v54  ;;  %v1621_v22 = vmax.f32 %v4517_v34, %v4520_v20 }
 0x62a   : > { %1622 = vmax.xlane.f32.xlu1 %v1621_v22 }
 0x62b   : > { %v1514_v53 = vpop.xlane.xlu0 %1513 }
 0x62c   : > { %vm1548_vm9 = vcmp.ge.f32.partialorder %v4367_v2, %v1514_v53  ;;  %vm1549_vm10 = vcmp.ge.f32.partialorder %v4370_v44, %v1514_v53 }
 0x62d   : > { %v4527_v23 = vsel %vm1548_vm9, -inf, %v4367_v2  ;;  %v4530_v61 = vsel %vm1549_vm10, -inf, %v4370_v44  ;;  %v1517_v62 = vpop.xlane.xlu1 %1516 }
 0x62e   : > { %vm1550_vm11 = vcmp.ge.f32.partialorder %v4377_v45, %v1517_v62  ;;  %vm1551_vm12 = vcmp.ge.f32.partialorder %v4380_v60, %v1517_v62  ;;  %v1624_v1 = vmax.f32 %v4527_v23, %v4530_v61 }
 0x62f   : > { %v4537_v54 = vsel %vm1550_vm11, -inf, %v4377_v45  ;;  %v4540_v22 = vsel %vm1551_vm12, -inf, %v4380_v60 }
 0x630   : > { %1625 = vmax.xlane.f32.xlu0 %v1624_v1  ;;  %v1627_v2 = vmax.f32 %v4537_v54, %v4540_v22 }
 0x632   : > { %1628 = vmax.xlane.f32.xlu1 %v1627_v2 }
 0x633   : > { %v1520_v44 = vpop.xlane.xlu0 %1519 }
 0x634   : > { %vm1552_vm13 = vcmp.ge.f32.partialorder %v4387_v3, %v1520_v44  ;;  %vm1553_vm14 = vcmp.ge.f32.partialorder %v4390_v63, %v1520_v44  ;;  %v2578_v44 = vld [vmem:[#allocation7] sm:$0xff]  }
 0x635   : > { %v4547_v53 = vsel %vm1552_vm13, -inf, %v4387_v3  ;;  %v4550_v62 = vsel %vm1553_vm14, -inf, %v4390_v63  ;;  %v1523_v45 = vpop.xlane.xlu1 %1522  ;;  %v2577_v63 = vld [vmem:[#allocation7 + $0x40] sm:$0xff]  }
 0x636   : > { %vm1554_vm15 = vcmp.ge.f32.partialorder %v4397_v5, %v1523_v45  ;;  %vm1555_vm0 = vcmp.ge.f32.partialorder %v4400_v15, %v1523_v45  ;;  %v1630_v60 = vmax.f32 %v4547_v53, %v4550_v62  ;;  %2408 = vmatprep.subr.bf16.mxu1 %v2577_v63  ;;  %v2580_v45 = vld [vmem:[#allocation7 + $0x8] sm:$0xff]   ;;  %v2589_v63 = vld [vmem:[#allocation7 + $0x70] sm:$0xff]  }
 0x637   : > { %v4557_v1 = vsel %vm1554_vm15, -inf, %v4397_v5  ;;  %v4560_v2 = vsel %vm1555_vm0, -inf, %v4400_v15  ;;  %2409 = vmatpush3.bf16.msra.mxu1 %v2578_v44  ;;  %v2583_v5 = vld [vmem:[#allocation7 + $0x58] sm:$0xff]   ;;  %v2590_v44 = vld [vmem:[#allocation7 + $0x30] sm:$0xff]  }
 0x638   : > { %1631 = vmax.xlane.f32.xlu0 %v1630_v60  ;;  %v1633_v3 = vmax.f32 %v4557_v1, %v4560_v2  ;;  %2410 = vmatprep.subr.bf16.mxu1 %v2579_v28  ;;  %v2584_v15 = vld [vmem:[#allocation7 + $0x18] sm:$0xff]   ;;  %v2585_v60 = vld [vmem:[#allocation7 + $0x60] sm:$0xff]  }
 0x63a   : > { %1634 = vmax.xlane.f32.xlu1 %v1633_v3  ;;  %v2587_v3 = vld [vmem:[#allocation7 + $0x68] sm:$0xff]  }
 0x63b   : > { %2411 = vmatpush3.bf16.msra.mxu1 %v2580_v45 }
 0x63c   : > { %2412 = vmatprep.subr.bf16.mxu1 %v2581_v40 }
 0x63f   : > { %2413 = vmatpush3.bf16.msra.mxu1 %v2582_v25 }
 0x640   : > { %2414 = vmatprep.subr.bf16.mxu1 %v2583_v5 }
 0x643   : > { %2415 = vmatpush3.bf16.msra.mxu1 %v2584_v15 }
 0x644   : > { %2416 = vmatprep.subr.bf16.mxu1 %v2585_v60 }
 0x647   : > { %2417 = vmatpush3.bf16.msra.mxu1 %v2586_v41 }
 0x648   : > { %2418 = vmatprep.subr.bf16.mxu1 %v2587_v3 }
 0x64b   : > { %2419 = vmatpush3.bf16.msra.mxu1 %v2588_v59 }
 0x64c   : > { %2420 = vmatprep.subr.bf16.mxu1 %v2589_v63 }
 0x64f   : > { %2421 = vmatpush3.bf16.msra.mxu1 %v2590_v44 }
 0x68d   : > { %v1590_v28 = vpop.xlane.xlu0 %1589 }
 0x68e   : > { %vm1636_vm1 = vcmp.ge.f32.partialorder %v4407_v16, %v1590_v28  ;;  %vm1637_vm2 = vcmp.ge.f32.partialorder %v4410_v49, %v1590_v28 }
 0x68f   : > { %v1668_v40 = vsel %vm1636_vm1, -inf, %v4407_v16  ;;  %v1669_v25 = vsel %vm1637_vm2, -inf, %v4410_v49  ;;  %v1593_v45 = vpop.xlane.xlu1 %1592 }
 0x690   : > { %v1700_v5 = vmax.f32 %v1668_v40, %v1669_v25  ;;  %vm1638_vm3 = vcmp.ge.f32.partialorder %v4417_v50, %v1593_v45  ;;  %vm1639_vm4 = vcmp.ge.f32.partialorder %v4420_v8, %v1593_v45 }
 0x691   : > { %v1670_v41 = vsel %vm1638_vm3, -inf, %v4417_v50  ;;  %v1671_v59 = vsel %vm1639_vm4, -inf, %v4420_v8 }
 0x692   : > { %v1703_v15 = vmax.f32 %v1670_v41, %v1671_v59  ;;  %1701 = vmax.xlane.f32.xlu0 %v1700_v5  ;;  %v2591_v5 = vld [vmem:[#allocation7 + $0x78] sm:$0xff]  }
 0x693   : > { %2422 = vmatprep.subr.bf16.mxu1 %v2591_v5  ;;  %v2592_v41 = vld [vmem:[#allocation7 + $0x38] sm:$0xff]  }
 0x694   : > { %1704 = vmax.xlane.f32.xlu1 %v1703_v15  ;;  %2423 = vmatpush3.bf16.msra.mxu1 %v2592_v41 }
 0x695   : > { %v1596_v60 = vpop.xlane.xlu0 %1595 }
 0x696   : > { %vm1640_vm5 = vcmp.ge.f32.partialorder %v4427_v57, %v1596_v60  ;;  %vm1641_vm6 = vcmp.ge.f32.partialorder %v4430_v51, %v1596_v60 }
 0x697   : > { %v1672_v16 = vsel %vm1640_vm5, -inf, %v4427_v57  ;;  %v1673_v49 = vsel %vm1641_vm6, -inf, %v4430_v51  ;;  %v1599_v3 = vpop.xlane.xlu1 %1598 }
 0x698   : > { %v1706_v63 = vmax.f32 %v1672_v16, %v1673_v49  ;;  %vm1642_vm7 = vcmp.ge.f32.partialorder %v4437_v7, %v1599_v3  ;;  %vm1643_vm8 = vcmp.ge.f32.partialorder %v4440_v56, %v1599_v3 }
 0x699   : > { %v1674_v50 = vsel %vm1642_vm7, -inf, %v4437_v7  ;;  %v1675_v8 = vsel %vm1643_vm8, -inf, %v4440_v56 }
 0x69a   : > { %v1709_v44 = vmax.f32 %v1674_v50, %v1675_v8  ;;  %1707 = vmax.xlane.f32.xlu0 %v1706_v63 }
 0x69c   : > { %1710 = vmax.xlane.f32.xlu1 %v1709_v44 }
 0x69d   : > { %v1602_v28 = vpop.xlane.xlu0 %1601 }
 0x69e   : > { %vm1644_vm9 = vcmp.ge.f32.partialorder %v4447_v47, %v1602_v28  ;;  %vm1645_vm10 = vcmp.ge.f32.partialorder %v4450_v39, %v1602_v28 }
 0x69f   : > { %v1676_v57 = vsel %vm1644_vm9, -inf, %v4447_v47  ;;  %v1677_v51 = vsel %vm1645_vm10, -inf, %v4450_v39  ;;  %v1605_v40 = vpop.xlane.xlu1 %1604 }
 0x6a0   : > { %v1712_v25 = vmax.f32 %v1676_v57, %v1677_v51  ;;  %vm1646_vm11 = vcmp.ge.f32.partialorder %v4457_v29, %v1605_v40  ;;  %vm1647_vm12 = vcmp.ge.f32.partialorder %v4460_v46, %v1605_v40 }
 0x6a1   : > { %v1678_v7 = vsel %vm1646_vm11, -inf, %v4457_v29  ;;  %v1679_v56 = vsel %vm1647_vm12, -inf, %v4460_v46 }
 0x6a2   : > { %v1715_v45 = vmax.f32 %v1678_v7, %v1679_v56  ;;  %1713 = vmax.xlane.f32.xlu0 %v1712_v25 }
 0x6a4   : > { %1716 = vmax.xlane.f32.xlu1 %v1715_v45 }
 0x6a5   : > { %v1608_v59 = vpop.xlane.xlu0 %1607 }
 0x6a6   : > { %vm1648_vm13 = vcmp.ge.f32.partialorder %v4467_v37, %v1608_v59  ;;  %vm1649_vm14 = vcmp.ge.f32.partialorder %v4470_v11, %v1608_v59 }
 0x6a7   : > { %v1680_v47 = vsel %vm1648_vm13, -inf, %v4467_v37  ;;  %v1681_v39 = vsel %vm1649_vm14, -inf, %v4470_v11  ;;  %v1611_v15 = vpop.xlane.xlu1 %1610 }
 0x6a8   : > { %v1718_v29 = vmax.f32 %v1680_v47, %v1681_v39  ;;  %vm1650_vm15 = vcmp.ge.f32.partialorder %v4477_v38, %v1611_v15  ;;  %vm1651_vm0 = vcmp.ge.f32.partialorder %v4480_v36, %v1611_v15  ;;  %v2348_v39 = vpack.c.bf16 %v3486_v43, %v3481_v18 }
 0x6a9   : > { %v1682_v46 = vsel %vm1650_vm15, -inf, %v4477_v38  ;;  %v1683_v60 = vsel %vm1651_vm0, -inf, %v4480_v36  ;;  %v2351_v15 = vpack.c.bf16 %v3484_v13, %v3478_v48 }
 0x6aa   : > { %v1721_v16 = vmax.f32 %v1682_v46, %v1683_v60  ;;  %1719 = vmax.xlane.f32.xlu0 %v1718_v29 }
 0x6ac   : > { %1722 = vmax.xlane.f32.xlu1 %v1721_v16  ;;  %v2357_v16 = vpack.c.bf16 %v3500_v31, %v3494_v35 }
 0x6ad   : > { %v1614_v49 = vpop.xlane.xlu0 %1613 }
 0x6ae   : > { %vm1652_vm1 = vcmp.ge.f32.partialorder %v4487_v27, %v1614_v49  ;;  %vm1653_vm2 = vcmp.ge.f32.partialorder %v4490_v55, %v1614_v49 }
 0x6af   : > { %v1684_v37 = vsel %vm1652_vm1, -inf, %v4487_v27  ;;  %v1685_v11 = vsel %vm1653_vm2, -inf, %v4490_v55  ;;  %v1617_v3 = vpop.xlane.xlu1 %1616 }
 0x6b0   : > { %v1724_v63 = vmax.f32 %v1684_v37, %v1685_v11  ;;  %vm1654_vm3 = vcmp.ge.f32.partialorder %v4497_v30, %v1617_v3  ;;  %vm1655_vm4 = vcmp.ge.f32.partialorder %v4500_v21, %v1617_v3  ;;  %v2363_v3 = vpack.c.bf16 %v3516_v4, %v3510_v52 }
 0x6b1   : > { %v1686_v38 = vsel %vm1654_vm3, -inf, %v4497_v30  ;;  %v1687_v36 = vsel %vm1655_vm4, -inf, %v4500_v21 }
 0x6b2   : > { %v1727_v50 = vmax.f32 %v1686_v38, %v1687_v36  ;;  %1725 = vmax.xlane.f32.xlu0 %v1724_v63 }
 0x6b4   : > { %1728 = vmax.xlane.f32.xlu1 %v1727_v50  ;;  %v2369_v50 = vpack.c.bf16 %v3532_v19, %v3526_v24 }
 0x6b5   : > { %v1620_v8 = vpop.xlane.xlu0 %1619 }
 0x6b6   : > { %vm1656_vm5 = vcmp.ge.f32.partialorder %v4507_v26, %v1620_v8  ;;  %vm1657_vm6 = vcmp.ge.f32.partialorder %v4510_v6, %v1620_v8 }
 0x6b7   : > { %v1688_v27 = vsel %vm1656_vm5, -inf, %v4507_v26  ;;  %v1689_v55 = vsel %vm1657_vm6, -inf, %v4510_v6  ;;  %v1623_v44 = vpop.xlane.xlu1 %1622 }
 0x6b8   : > { %v1730_v28 = vmax.f32 %v1688_v27, %v1689_v55  ;;  %vm1658_vm7 = vcmp.ge.f32.partialorder %v4517_v34, %v1623_v44  ;;  %vm1659_vm8 = vcmp.ge.f32.partialorder %v4520_v20, %v1623_v44  ;;  %v2375_v44 = vpack.c.bf16 %v3548_v33, %v3542_v14 }
 0x6b9   : > { %v1690_v30 = vsel %vm1658_vm7, -inf, %v4517_v34  ;;  %v1691_v21 = vsel %vm1659_vm8, -inf, %v4520_v20 }
 0x6ba   : > { %v1733_v57 = vmax.f32 %v1690_v30, %v1691_v21  ;;  %1731 = vmax.xlane.f32.xlu0 %v1730_v28  ;;  %v5068_v28 = vld [vmem:[#allocation47_spill] sm:$0xff]  ;;  %v5069_v30 = vld [vmem:[#allocation48_spill] sm:$0xff] }
 0x6bc   : > { %1734 = vmax.xlane.f32.xlu1 %v1733_v57 }
 0x6bd   : > { %v1626_v51 = vpop.xlane.xlu0 %1625 }
 0x6be   : > { %vm1660_vm9 = vcmp.ge.f32.partialorder %v4527_v23, %v1626_v51  ;;  %vm1661_vm10 = vcmp.ge.f32.partialorder %v4530_v61, %v1626_v51  ;;  %v5070_v51 = vld [vmem:[#allocation49_spill] sm:$0xff] }
 0x6bf   : > { %v1692_v26 = vsel %vm1660_vm9, -inf, %v4527_v23  ;;  %v1693_v6 = vsel %vm1661_vm10, -inf, %v4530_v61  ;;  %v1629_v40 = vpop.xlane.xlu1 %1628 }
 0x6c0   : > { %v1736_v25 = vmax.f32 %v1692_v26, %v1693_v6  ;;  %vm1662_vm11 = vcmp.ge.f32.partialorder %v4537_v54, %v1629_v40  ;;  %vm1663_vm12 = vcmp.ge.f32.partialorder %v4540_v22, %v1629_v40  ;;  %v2381_v40 = vpack.c.bf16 %v5070_v51, %v5068_v28 }
 0x6c1   : > { %v1694_v34 = vsel %vm1662_vm11, -inf, %v4537_v54  ;;  %v1695_v20 = vsel %vm1663_vm12, -inf, %v4540_v22 }
 0x6c2   : > { %v1739_v7 = vmax.f32 %v1694_v34, %v1695_v20  ;;  %1737 = vmax.xlane.f32.xlu0 %v1736_v25  ;;  %v5072_v34 = vld [vmem:[#allocation51_spill] sm:$0xff]  ;;  %v5073_v20 = vld [vmem:[#allocation52_spill] sm:$0xff] }
 0x6c4   : > { %1740 = vmax.xlane.f32.xlu1 %v1739_v7 }
 0x6c5   : > { %v1632_v56 = vpop.xlane.xlu0 %1631 }
 0x6c6   : > { %vm1664_vm13 = vcmp.ge.f32.partialorder %v4547_v53, %v1632_v56  ;;  %vm1665_vm14 = vcmp.ge.f32.partialorder %v4550_v62, %v1632_v56 }
 0x6c7   : > { %v1696_v23 = vsel %vm1664_vm13, -inf, %v4547_v53  ;;  %v1697_v61 = vsel %vm1665_vm14, -inf, %v4550_v62  ;;  %v1635_v45 = vpop.xlane.xlu1 %1634 }
 0x6c8   : > { %v1742_v5 = vmax.f32 %v1696_v23, %v1697_v61  ;;  %vm1666_vm15 = vcmp.ge.f32.partialorder %v4557_v1, %v1635_v45  ;;  %vm1667_vm0 = vcmp.ge.f32.partialorder %v4560_v2, %v1635_v45  ;;  %v5074_v61 = vld [vmem:[#allocation53_spill] sm:$0xff]  ;;  %v5075_v45 = vld [vmem:[#allocation54_spill] sm:$0xff] }
 0x6c9   : > { %v1698_v54 = vsel %vm1666_vm15, -inf, %v4557_v1  ;;  %v1699_v22 = vsel %vm1667_vm0, -inf, %v4560_v2 }
 0x6ca   : > { %v1745_v41 = vmax.f32 %v1698_v54, %v1699_v22  ;;  %1743 = vmax.xlane.f32.xlu0 %v1742_v5  ;;  %v2384_v5 = vpack.c.bf16 %v5075_v45, %v5073_v20 }
 0x6cc   : > { %1746 = vmax.xlane.f32.xlu1 %v1745_v41  ;;  %v2387_v41 = vpack.c.bf16 %v5074_v61, %v5072_v34 }
 0x71f   : > { %v1702_v59 = vpop.xlane.xlu0 %1701 }
 0x720   : > { %vm1748_vm1 = vcmp.ge.f32.partialorder %v3478_v48, %v1702_v59  ;;  %vm1749_vm2 = vcmp.ge.f32.partialorder %v3481_v18, %v1702_v59 }
 0x721   : > { %v1780_v53 = vsel %vm1748_vm1, %v3478_v48, 0.0  ;;  %v1705_v62 = vpop.xlane.xlu1 %1704  ;;  %v1781_v47 = vsel %vm1749_vm2, %v3481_v18, 0.0  ;;  %v2354_v48 = vpack.c.bf16 %v3502_v58, %v3497_v10 }
 0x722   : > { %1812 = vst [vmem:[%s4635_s20] sm:$0xff] %v1780_v53  ;;  %vm1750_vm3 = vcmp.ge.f32.partialorder %v3484_v13, %v1705_v62  ;;  %vm1751_vm4 = vcmp.ge.f32.partialorder %v3486_v43, %v1705_v62  ;;  %1813 = vst [vmem:[%s4635_s20 + $0x8] sm:$0xff] %v1781_v47  ;;  %v5076_v53 = vld [vmem:[#allocation55_spill] sm:$0xff]  ;;  %v5077_v62 = vld [vmem:[#allocation56_spill] sm:$0xff] }
 0x723   : > { %v1782_v1 = vsel %vm1750_vm3, %v3484_v13, 0.0  ;;  %vm2350_vm5 = vmpackc.low %vm1750_vm3, %vm1748_vm1  ;;  %v1783_v2 = vsel %vm1751_vm4, %v3486_v43, 0.0 }
 0x724   : > { %1814 = vst [vmem:[%s4635_s20 + $0x10] sm:$0xff] %v1782_v1  ;;  %1815 = vst [vmem:[%s4635_s20 + $0x18] sm:$0xff] %v1783_v2 }
 0x725   : > { %vm2347_vm6 = vmpackc.low %vm1751_vm4, %vm1749_vm2 }
 0x726   : > { %2349 = vmatprep.mubr.msk.bf16.mxu1 %vm2347_vm6, %v2348_v39  ;;  %v5078_v39 = vld [vmem:[#allocation57_spill] sm:$0xff] }
 0x727   : > { %2352 = vmatmul.mubr.msk.bf16.vlgmr.msra.gmra.mrb[0].mxu1 %vm2350_vm5, %v2351_v15  ;;  %v1708_v29 = vpop.xlane.xlu0 %1707  ;;  %v5079_v15 = vld [vmem:[#allocation58_spill] sm:$0xff] }
 0x728   : > { %vm1752_vm7 = vcmp.ge.f32.partialorder %v3494_v35, %v1708_v29  ;;  %vm1753_vm8 = vcmp.ge.f32.partialorder %v3497_v10, %v1708_v29  ;;  %v2390_v29 = vpack.c.bf16 %v5079_v15, %v5077_v62 }
 0x729   : > { %v1784_v43 = vsel %vm1752_vm7, %v3494_v35, 0.0  ;;  %v1785_v46 = vsel %vm1753_vm8, %v3497_v10, 0.0  ;;  %v1711_v18 = vpop.xlane.xlu1 %1710  ;;  %v2360_v35 = vpack.c.bf16 %v3518_v0, %v3513_v32 }
 0x72a   : > { %1816 = vst [vmem:[%s4635_s20 + $0x20] sm:$0xff] %v1784_v43  ;;  %1817 = vst [vmem:[%s4635_s20 + $0x28] sm:$0xff] %v1785_v46  ;;  %vm1754_vm9 = vcmp.ge.f32.partialorder %v3500_v31, %v1711_v18  ;;  %vm1755_vm10 = vcmp.ge.f32.partialorder %v3502_v58, %v1711_v18  ;;  %v2393_v18 = vpack.c.bf16 %v5078_v39, %v5076_v53 }
 0x72b   : > { %v1786_v13 = vsel %vm1754_vm9, %v3500_v31, 0.0  ;;  %v1787_v60 = vsel %vm1755_vm10, %v3502_v58, 0.0  ;;  %vm2353_vm11 = vmpackc.low %vm1755_vm10, %vm1753_vm8 }
 0x72c   : > { %1818 = vst [vmem:[%s4635_s20 + $0x30] sm:$0xff] %v1786_v13  ;;  %1819 = vst [vmem:[%s4635_s20 + $0x38] sm:$0xff] %v1787_v60  ;;  %2355 = vmatprep.mubr.msk.bf16.mxu1 %vm2353_vm11, %v2354_v48 }
 0x72d   : > { %vm2356_vm12 = vmpackc.low %vm1754_vm9, %vm1752_vm7 }
 0x72f   : > { %2358 = vmatmul.mubr.msk.bf16.gmra.mrb[4].mxu1 %vm2356_vm12, %v2357_v16  ;;  %v1714_v10 = vpop.xlane.xlu0 %1713 }
 0x730   : > { %vm1756_vm13 = vcmp.ge.f32.partialorder %v3510_v52, %v1714_v10  ;;  %vm1757_vm14 = vcmp.ge.f32.partialorder %v3513_v32, %v1714_v10 }
 0x731   : > { %v1788_v58 = vsel %vm1756_vm13, %v3510_v52, 0.0  ;;  %v1789_v49 = vsel %vm1757_vm14, %v3513_v32, 0.0  ;;  %v1717_v37 = vpop.xlane.xlu1 %1716  ;;  %v2366_v52 = vpack.c.bf16 %v3534_v9, %v3529_v12 }
 0x732   : > { %1820 = vst [vmem:[%s4635_s20 + $0x40] sm:$0xff] %v1788_v58  ;;  %1821 = vst [vmem:[%s4635_s20 + $0x48] sm:$0xff] %v1789_v49  ;;  %vm1758_vm15 = vcmp.ge.f32.partialorder %v3516_v4, %v1717_v37  ;;  %vm1759_vm0 = vcmp.ge.f32.partialorder %v3518_v0, %v1717_v37 }
 0x733   : > { %v1790_v31 = vsel %vm1758_vm15, %v3516_v4, 0.0  ;;  %v1791_v11 = vsel %vm1759_vm0, %v3518_v0, 0.0  ;;  %vm2359_vm1 = vmpackc.low %vm1759_vm0, %vm1757_vm14 }
 0x734   : > { %1822 = vst [vmem:[%s4635_s20 + $0x50] sm:$0xff] %v1790_v31  ;;  %1823 = vst [vmem:[%s4635_s20 + $0x58] sm:$0xff] %v1791_v11  ;;  %2361 = vmatprep.mubr.msk.bf16.mxu1 %vm2359_vm1, %v2360_v35 }
 0x735   : > { %vm2362_vm2 = vmpackc.low %vm1758_vm15, %vm1756_vm13 }
 0x737   : > { %2364 = vmatmul.mubr.msk.bf16.gmra.mrb[8].mxu1 %vm2362_vm2, %v2363_v3  ;;  %v1720_v32 = vpop.xlane.xlu0 %1719 }
 0x738   : > { %vm1760_vm3 = vcmp.ge.f32.partialorder %v3526_v24, %v1720_v32  ;;  %vm1761_vm4 = vcmp.ge.f32.partialorder %v3529_v12, %v1720_v32 }
 0x739   : > { %v1792_v0 = vsel %vm1760_vm3, %v3526_v24, 0.0  ;;  %v1793_v63 = vsel %vm1761_vm4, %v3529_v12, 0.0  ;;  %v1723_v38 = vpop.xlane.xlu1 %1722  ;;  %v2372_v24 = vpack.c.bf16 %v3550_v42, %v3545_v17 }
 0x73a   : > { %1824 = vst [vmem:[%s4635_s20 + $0x60] sm:$0xff] %v1792_v0  ;;  %1825 = vst [vmem:[%s4635_s20 + $0x68] sm:$0xff] %v1793_v63  ;;  %vm1762_vm5 = vcmp.ge.f32.partialorder %v3532_v19, %v1723_v38  ;;  %vm1763_vm6 = vcmp.ge.f32.partialorder %v3534_v9, %v1723_v38 }
 0x73b   : > { %v1794_v4 = vsel %vm1762_vm5, %v3532_v19, 0.0  ;;  %v1795_v36 = vsel %vm1763_vm6, %v3534_v9, 0.0  ;;  %vm2365_vm7 = vmpackc.low %vm1763_vm6, %vm1761_vm4 }
 0x73c   : > { %1826 = vst [vmem:[%s4635_s20 + $0x70] sm:$0xff] %v1794_v4  ;;  %1827 = vst [vmem:[%s4635_s20 + $0x78] sm:$0xff] %v1795_v36  ;;  %2367 = vmatprep.mubr.msk.bf16.mxu1 %vm2365_vm7, %v2366_v52 }
 0x73d   : > { %vm2368_vm8 = vmpackc.low %vm1762_vm5, %vm1760_vm3 }
 0x73f   : > { %2370 = vmatmul.mubr.msk.bf16.gmra.mrb[12].mxu1 %vm2368_vm8, %v2369_v50  ;;  %v1726_v12 = vpop.xlane.xlu0 %1725 }
 0x740   : > { %vm1764_vm9 = vcmp.ge.f32.partialorder %v3542_v14, %v1726_v12  ;;  %vm1765_vm10 = vcmp.ge.f32.partialorder %v3545_v17, %v1726_v12 }
 0x741   : > { %v1796_v9 = vsel %vm1764_vm9, %v3542_v14, 0.0  ;;  %v1797_v8 = vsel %vm1765_vm10, %v3545_v17, 0.0  ;;  %v1729_v27 = vpop.xlane.xlu1 %1728  ;;  %v5071_v14 = vld [vmem:[#allocation50_spill] sm:$0xff] }
 0x742   : > { %1828 = vst [vmem:[%s4635_s20 + $0x80] sm:$0xff] %v1796_v9  ;;  %1829 = vst [vmem:[%s4635_s20 + $0x88] sm:$0xff] %v1797_v8  ;;  %vm1766_vm11 = vcmp.ge.f32.partialorder %v3548_v33, %v1729_v27  ;;  %vm1767_vm12 = vcmp.ge.f32.partialorder %v3550_v42, %v1729_v27 }
 0x743   : > { %v1798_v19 = vsel %vm1766_vm11, %v3548_v33, 0.0  ;;  %v1799_v55 = vsel %vm1767_vm12, %v3550_v42, 0.0  ;;  %vm2371_vm13 = vmpackc.low %vm1767_vm12, %vm1765_vm10  ;;  %v2378_v33 = vpack.c.bf16 %v5071_v14, %v5069_v30 }
 0x744   : > { %1830 = vst [vmem:[%s4635_s20 + $0x90] sm:$0xff] %v1798_v19  ;;  %1831 = vst [vmem:[%s4635_s20 + $0x98] sm:$0xff] %v1799_v55  ;;  %2373 = vmatprep.mubr.msk.bf16.mxu1 %vm2371_vm13, %v2372_v24 }
 0x745   : > { %vm2374_vm14 = vmpackc.low %vm1766_vm11, %vm1764_vm9 }
 0x747   : > { %2376 = vmatmul.mubr.msk.bf16.gmra.mrb[16].mxu1 %vm2374_vm14, %v2375_v44  ;;  %v1732_v17 = vpop.xlane.xlu0 %1731 }
 0x748   : > { %vm1768_vm15 = vcmp.ge.f32.partialorder %v5068_v28, %v1732_v17  ;;  %vm1769_vm0 = vcmp.ge.f32.partialorder %v5069_v30, %v1732_v17 }
 0x749   : > { %v1800_v42 = vsel %vm1768_vm15, %v5068_v28, 0.0  ;;  %v1801_v21 = vsel %vm1769_vm0, %v5069_v30, 0.0  ;;  %v1735_v57 = vpop.xlane.xlu1 %1734 }
 0x74a   : > { %1832 = vst [vmem:[%s4635_s20 + $0xa0] sm:$0xff] %v1800_v42  ;;  %1833 = vst [vmem:[%s4635_s20 + $0xa8] sm:$0xff] %v1801_v21  ;;  %vm1770_vm1 = vcmp.ge.f32.partialorder %v5070_v51, %v1735_v57  ;;  %vm1771_vm2 = vcmp.ge.f32.partialorder %v5071_v14, %v1735_v57 }
 0x74b   : > { %v1802_v26 = vsel %vm1770_vm1, %v5070_v51, 0.0  ;;  %v1803_v6 = vsel %vm1771_vm2, %v5071_v14, 0.0  ;;  %vm2377_vm3 = vmpackc.low %vm1771_vm2, %vm1769_vm0 }
 0x74c   : > { %1834 = vst [vmem:[%s4635_s20 + $0xb0] sm:$0xff] %v1802_v26  ;;  %1835 = vst [vmem:[%s4635_s20 + $0xb8] sm:$0xff] %v1803_v6  ;;  %2379 = vmatprep.mubr.msk.bf16.mxu1 %vm2377_vm3, %v2378_v33 }
 0x74d   : > { %vm2380_vm4 = vmpackc.low %vm1770_vm1, %vm1768_vm15 }
 0x74f   : > { %2382 = vmatmul.mubr.msk.bf16.gmra.mrb[20].mxu1 %vm2380_vm4, %v2381_v40  ;;  %v1738_v25 = vpop.xlane.xlu0 %1737 }
 0x750   : > { %vm1772_vm5 = vcmp.ge.f32.partialorder %v5072_v34, %v1738_v25  ;;  %vm1773_vm6 = vcmp.ge.f32.partialorder %v5073_v20, %v1738_v25 }
 0x751   : > { %v1804_v7 = vsel %vm1772_vm5, %v5072_v34, 0.0  ;;  %v1805_v56 = vsel %vm1773_vm6, %v5073_v20, 0.0  ;;  %v1741_v23 = vpop.xlane.xlu1 %1740 }
 0x752   : > { %1836 = vst [vmem:[%s4635_s20 + $0xc0] sm:$0xff] %v1804_v7  ;;  %1837 = vst [vmem:[%s4635_s20 + $0xc8] sm:$0xff] %v1805_v56  ;;  %vm1774_vm7 = vcmp.ge.f32.partialorder %v5074_v61, %v1741_v23  ;;  %vm1775_vm8 = vcmp.ge.f32.partialorder %v5075_v45, %v1741_v23 }
 0x753   : > { %v1806_v54 = vsel %vm1774_vm7, %v5074_v61, 0.0  ;;  %v1807_v22 = vsel %vm1775_vm8, %v5075_v45, 0.0  ;;  %vm2383_vm9 = vmpackc.low %vm1775_vm8, %vm1773_vm6 }
 0x754   : > { %1838 = vst [vmem:[%s4635_s20 + $0xd0] sm:$0xff] %v1806_v54  ;;  %1839 = vst [vmem:[%s4635_s20 + $0xd8] sm:$0xff] %v1807_v22  ;;  %2385 = vmatprep.mubr.msk.bf16.mxu1 %vm2383_vm9, %v2384_v5 }
 0x755   : > { %vm2386_vm10 = vmpackc.low %vm1774_vm7, %vm1772_vm5 }
 0x757   : > { %2388 = vmatmul.mubr.msk.bf16.gmra.mrb[24].mxu1 %vm2386_vm10, %v2387_v41  ;;  %v1744_v59 = vpop.xlane.xlu0 %1743 }
 0x758   : > { %vm1776_vm11 = vcmp.ge.f32.partialorder %v5076_v53, %v1744_v59  ;;  %vm1777_vm12 = vcmp.ge.f32.partialorder %v5077_v62, %v1744_v59 }
 0x759   : > { %v1808_v47 = vsel %vm1776_vm11, %v5076_v53, 0.0  ;;  %v1809_v1 = vsel %vm1777_vm12, %v5077_v62, 0.0  ;;  %v1747_v2 = vpop.xlane.xlu1 %1746 }
 0x75a   : > { %1840 = vst [vmem:[%s4635_s20 + $0xe0] sm:$0xff] %v1808_v47  ;;  %1841 = vst [vmem:[%s4635_s20 + $0xe8] sm:$0xff] %v1809_v1  ;;  %vm1778_vm13 = vcmp.ge.f32.partialorder %v5078_v39, %v1747_v2  ;;  %vm1779_vm14 = vcmp.ge.f32.partialorder %v5079_v15, %v1747_v2 }
 0x75b   : > { %v1810_v43 = vsel %vm1778_vm13, %v5078_v39, 0.0  ;;  %v1811_v46 = vsel %vm1779_vm14, %v5079_v15, 0.0  ;;  %vm2389_vm15 = vmpackc.low %vm1779_vm14, %vm1777_vm12 }
 0x75c   : > { %1842 = vst [vmem:[%s4635_s20 + $0xf0] sm:$0xff] %v1810_v43  ;;  %1843 = vst [vmem:[%s4635_s20 + $0xf8] sm:$0xff] %v1811_v46  ;;  %2391 = vmatprep.mubr.msk.bf16.mxu1 %vm2389_vm15, %v2390_v29 }
 0x75d   : > { %vm2392_vm0 = vmpackc.low %vm1778_vm13, %vm1776_vm11 }
 0x75f   : > { %2394 = vmatmul.mubr.msk.bf16.gmra.mrb[28].mxu1 %vm2392_vm0, %v2393_v18 }
 0x760   : > { %2756 = shalt.err (!%p2753_p1)
}
 0x761   : > { %s2757_s29 = scalar_lea.hbm %s4796_s15, 4096  ;;  %s2761_s17 = scalar_lea.hbm %s4954_s6, 8192 }
 0x762   : > { %p2758_p13 = scmp.ne.s32.totalorder %s4796_s15, %s2757_s29  ;;  %p2762_p4 = scmp.lt.u32.totalorder %s4796_s15, %s4954_s6 }
 0x763   : > { %p2763_p7 = scmp.lt.u32.totalorder %s2761_s17, %s2757_s29  ;;  %p2765_p11 = scmp.lt.u32.totalorder %s2757_s29, %s4796_s15 }
 0x764   : > { %p2759_p6 = pnand %p2758_p13, %p5080_p0 }
 0x765   : > { %p2764_p8 = por %p2763_p7, %p2762_p4 }
 0x766   : > { %p2760_p10 = pneg %p2759_p6 }
 0x767   : > { %p2766_p2 = por %p2765_p11, %p2764_p8 }
 0x769   : > { %p2767_p3 = pnand %p2766_p2, %p2760_p10 }
 0x76b   : > { %2770 = shalt.err (!%p2767_p3)
}
 0x76c   : > { %s2856_s7 = smov 256   ;;  %s2857_s18 = smov 16   ;;  %v4827_v13 = vld [vmem:[%s4951_s3] ss:$0 sm:$0xff]  ;;  %v5083_v0 = vld [vmem:[#allocation32_spill] sm:$0xff]  ;;  %v5084_v4 = vld [vmem:[#allocation17_spill] sm:$0xff] }
 0x76d   : > { %2483 = dma.vmem_to_hbm [thread:$0]  (%p5080_p0), %s4798_s26, 4096, %s4796_s15, %s2146_s10, %s2856_s7, %s2856_s7, %s2857_s18   ;;  %v5081_v35 = vld [vmem:[#allocation31_spill] sm:$0xff]  ;;  %v5085_v24 = vld [vmem:[#allocation33_spill] sm:$0xff]  ;;  %v5086_v44 = vld [vmem:[#allocation16_spill] sm:$0xff] }
 0x76e   : > { %v5082_v3 = vld [vmem:[#allocation15_spill] sm:$0xff]  ;;  %s4836_s26 = scalar_lea.vmem [#allocation8], %s2309_s16  ;;  %v5087_v28 = vld [vmem:[#allocation34_spill] sm:$0xff]  ;;  %v5091_v23 = vld [vmem:[#allocation36_spill] sm:$0xff]  ;;  %s2405_s16 = sshll.u32 %s2917_s25, 11 }
 0x76f   : > { %v5088_v57 = vld [vmem:[#allocation18_spill] sm:$0xff]  ;;  %v5089_v25 = vld [vmem:[#allocation35_spill] sm:$0xff]  ;;  %v5092_v54 = vld [vmem:[#allocation20_spill] sm:$0xff]  ;;  %s2159_s15 = sshll.u32 %s4836_s26, 4  ;;  %s4899_s19 = scalar_lea.hbm %s4953_s5, %s2405_s16  ;;  %s4901_s15 = int_to_ptr.vmem [resolvable:$true] %s2159_s15 }
 0x770   : > { %v5090_v7 = vld [vmem:[#allocation19_spill] sm:$0xff]  ;;  %v5093_v1 = vld [vmem:[#allocation38_spill] sm:$0xff]  ;;  %v5094_v15 = vld [vmem:[#allocation21_spill] sm:$0xff]  ;;  %s2141_s25 = scalar_lea.sflag [#allocation4], %s3074_s12  ;;  %s2771_s20 = scalar_lea.vmem %s4901_s15, 2048 }
 0x771   : > { %v5095_v43 = vld [vmem:[#allocation37_spill] sm:$0xff]  ;;  %p2772_p5 = scmp.ne.s32.totalorder %s4901_s15, %s2771_s20  ;;  %s2858_s17 = smov [#allocation8]  }
 0x772   : > { %s2775_s11 = sshll.u32 %s2858_s17, 4  ;;  %s2776_s11 = int_to_ptr.vmem [resolvable:$false] %s2775_s11 }
 0x773   : > { %p2773_p9 = pnand %p2772_p5, %p5080_p0  ;;  %s2777_s8 = scalar_lea.vmem %s2776_s11, 4096 }
 0x774   : > { %p2778_p1 = scmp.lt.s32.totalorder %s4901_s15, %s2776_s11  ;;  %p2779_p13 = scmp.lt.s32.totalorder %s2777_s8, %s2771_s20 }
 0x775   : > { %p2774_p12 = pneg %p2773_p9 }
 0x776   : > { %p2780_p6 = por %p2779_p13, %p2778_p1 }
 0x778   : > { %p2781_p10 = pnand %p2780_p6, %p2774_p12 }
 0x7fa   : > { %v2424_v48 = vpop.f32.mrb[0].mxu1 }
 0x7fb   : > { %v2425_v60 = vpop.f32.mrb[1].mxu1 }
 0x7fc   : > { %v2426_v16 = vadd.f32 %v2425_v60, %v2424_v48  ;;  %v2427_v10 = vpop.f32.mrb[2].mxu1  ;;  %v5096_v60 = vld [vmem:[#allocation22_spill] sm:$0xff] }
 0x7fd   : > { %v2428_v58 = vpop.f32.mrb[3].mxu1 }
 0x7fe   : > { %v2030_v49 = vadd.f32 %v2426_v16, %v4827_v13  ;;  %v2429_v37 = vadd.f32 %v2428_v58, %v2427_v10 }
 0x800   : > { %v2092_v31 = vmul.f32 %v2030_v49, %v5081_v35  ;;  %v2033_v11 = vadd.f32 %v2429_v37, %v4827_v13 }
 0x802   : > { %v2108_v32 = vadd.f32 %v2092_v31, %v5082_v3  ;;  %v2093_v63 = vmul.f32 %v2033_v11, %v5083_v0  ;;  %v2430_v38 = vpop.f32.mrb[4].mxu1  ;;  %v5097_v31 = vld [vmem:[#allocation40_spill] sm:$0xff] }
 0x803   : > { %v2431_v52 = vpop.f32.mrb[5].mxu1 }
 0x804   : > { %2124 = vst [vmem:[%s4836_s26] sm:$0xff] %v2108_v32  ;;  %v2109_v36 = vadd.f32 %v2093_v63, %v5084_v4  ;;  %v2432_v50 = vadd.f32 %v2431_v52, %v2430_v38  ;;  %v2433_v12 = vpop.f32.mrb[6].mxu1  ;;  %v5098_v32 = vld [vmem:[#allocation23_spill] sm:$0xff] }
 0x805   : > { %v2434_v9 = vpop.f32.mrb[7].mxu1  ;;  %v5099_v63 = vld [vmem:[#allocation39_spill] sm:$0xff] }
 0x806   : > { %2125 = vst [vmem:[%s4836_s26 + $0x8] sm:$0xff] %v2109_v36  ;;  %v2038_v8 = vadd.f32 %v2432_v50, %v4827_v13  ;;  %v2435_v27 = vadd.f32 %v2434_v9, %v2433_v12  ;;  %v5100_v36 = vld [vmem:[#allocation24_spill] sm:$0xff] }
 0x808   : > { %v2094_v19 = vmul.f32 %v2038_v8, %v5085_v24  ;;  %v2041_v55 = vadd.f32 %v2435_v27, %v4827_v13 }
 0x80a   : > { %v2110_v17 = vadd.f32 %v2094_v19, %v5086_v44  ;;  %v2095_v30 = vmul.f32 %v2041_v55, %v5087_v28  ;;  %v2436_v42 = vpop.f32.mrb[8].mxu1  ;;  %v5101_v19 = vld [vmem:[#allocation42_spill] sm:$0xff] }
 0x80b   : > { %v2437_v21 = vpop.f32.mrb[9].mxu1 }
 0x80c   : > { %2126 = vst [vmem:[%s4836_s26 + $0x10] sm:$0xff] %v2110_v17  ;;  %v2111_v51 = vadd.f32 %v2095_v30, %v5088_v57  ;;  %v2438_v14 = vadd.f32 %v2437_v21, %v2436_v42  ;;  %v2439_v33 = vpop.f32.mrb[10].mxu1  ;;  %v5102_v17 = vld [vmem:[#allocation25_spill] sm:$0xff] }
 0x80d   : > { %v2440_v26 = vpop.f32.mrb[11].mxu1  ;;  %v5103_v30 = vld [vmem:[#allocation41_spill] sm:$0xff] }
 0x80e   : > { %2127 = vst [vmem:[%s4836_s26 + $0x18] sm:$0xff] %v2111_v51  ;;  %v2046_v6 = vadd.f32 %v2438_v14, %v4827_v13  ;;  %v2441_v40 = vadd.f32 %v2440_v26, %v2439_v33  ;;  %v5104_v51 = vld [vmem:[#allocation26_spill] sm:$0xff] }
 0x810   : > { %v2096_v34 = vmul.f32 %v2046_v6, %v5089_v25  ;;  %v2049_v20 = vadd.f32 %v2441_v40, %v4827_v13 }
 0x812   : > { %v2112_v56 = vadd.f32 %v2096_v34, %v5090_v7  ;;  %v2097_v61 = vmul.f32 %v2049_v20, %v5091_v23  ;;  %v2442_v45 = vpop.f32.mrb[12].mxu1  ;;  %v5105_v34 = vld [vmem:[#allocation44_spill] sm:$0xff] }
 0x813   : > { %v2443_v5 = vpop.f32.mrb[13].mxu1 }
 0x814   : > { %2128 = vst [vmem:[%s4836_s26 + $0x20] sm:$0xff] %v2112_v56  ;;  %v2113_v22 = vadd.f32 %v2097_v61, %v5092_v54  ;;  %v2444_v41 = vadd.f32 %v2443_v5, %v2442_v45  ;;  %v2445_v59 = vpop.f32.mrb[14].mxu1  ;;  %v5106_v56 = vld [vmem:[#allocation27_spill] sm:$0xff] }
 0x815   : > { %v2446_v53 = vpop.f32.mrb[15].mxu1  ;;  %v5107_v61 = vld [vmem:[#allocation43_spill] sm:$0xff] }
 0x816   : > { %2129 = vst [vmem:[%s4836_s26 + $0x28] sm:$0xff] %v2113_v22  ;;  %v2054_v62 = vadd.f32 %v2444_v41, %v4827_v13  ;;  %v2447_v47 = vadd.f32 %v2446_v53, %v2445_v59  ;;  %v5108_v22 = vld [vmem:[#allocation28_spill] sm:$0xff] }
 0x818   : > { %v2098_v2 = vmul.f32 %v2054_v62, %v5093_v1  ;;  %v2057_v39 = vadd.f32 %v2447_v47, %v4827_v13 }
 0x81a   : > { %v2114_v29 = vadd.f32 %v2098_v2, %v5094_v15  ;;  %v2099_v46 = vmul.f32 %v2057_v39, %v5095_v43  ;;  %v2448_v18 = vpop.f32.mrb[16].mxu1  ;;  %v5109_v2 = vld [vmem:[#allocation46_spill] sm:$0xff] }
 0x81b   : > { %v2449_v48 = vpop.f32.mrb[17].mxu1 }
 0x81c   : > { %2130 = vst [vmem:[%s4836_s26 + $0x30] sm:$0xff] %v2114_v29  ;;  %v2115_v16 = vadd.f32 %v2099_v46, %v5096_v60  ;;  %v2450_v10 = vadd.f32 %v2449_v48, %v2448_v18  ;;  %v2451_v58 = vpop.f32.mrb[18].mxu1  ;;  %v5110_v29 = vld [vmem:[#allocation29_spill] sm:$0xff]  ;;  %v5112_v48 = vld [vmem:[#allocation30_spill] sm:$0xff] }
 0x81d   : > { %v2452_v49 = vpop.f32.mrb[19].mxu1  ;;  %v5111_v46 = vld [vmem:[#allocation45_spill] sm:$0xff] }
 0x81e   : > { %2131 = vst [vmem:[%s4836_s26 + $0x38] sm:$0xff] %v2115_v16  ;;  %v2062_v37 = vadd.f32 %v2450_v10, %v4827_v13  ;;  %v2453_v35 = vadd.f32 %v2452_v49, %v2451_v58 }
 0x820   : > { %v2100_v11 = vmul.f32 %v2062_v37, %v5097_v31  ;;  %v2065_v3 = vadd.f32 %v2453_v35, %v4827_v13 }
 0x822   : > { %v2116_v0 = vadd.f32 %v2100_v11, %v5098_v32  ;;  %v2101_v38 = vmul.f32 %v2065_v3, %v5099_v63  ;;  %v2454_v52 = vpop.f32.mrb[20].mxu1 }
 0x823   : > { %v2455_v4 = vpop.f32.mrb[21].mxu1 }
 0x824   : > { %2132 = vst [vmem:[%s4836_s26 + $0x40] sm:$0xff] %v2116_v0  ;;  %v2117_v50 = vadd.f32 %v2101_v38, %v5100_v36  ;;  %v2456_v12 = vadd.f32 %v2455_v4, %v2454_v52  ;;  %v2457_v9 = vpop.f32.mrb[22].mxu1 }
 0x825   : > { %v2458_v8 = vpop.f32.mrb[23].mxu1 }
 0x826   : > { %2133 = vst [vmem:[%s4836_s26 + $0x48] sm:$0xff] %v2117_v50  ;;  %v2070_v27 = vadd.f32 %v2456_v12, %v4827_v13  ;;  %v2459_v24 = vadd.f32 %v2458_v8, %v2457_v9 }
 0x828   : > { %v2102_v55 = vmul.f32 %v2070_v27, %v5101_v19  ;;  %v2073_v44 = vadd.f32 %v2459_v24, %v4827_v13 }
 0x82a   : > { %v2118_v28 = vadd.f32 %v2102_v55, %v5102_v17  ;;  %v2103_v42 = vmul.f32 %v2073_v44, %v5103_v30  ;;  %v2460_v21 = vpop.f32.mrb[24].mxu1 }
 0x82b   : > { %v2461_v57 = vpop.f32.mrb[25].mxu1 }
 0x82c   : > { %2134 = vst [vmem:[%s4836_s26 + $0x50] sm:$0xff] %v2118_v28  ;;  %v2119_v14 = vadd.f32 %v2103_v42, %v5104_v51  ;;  %v2462_v33 = vadd.f32 %v2461_v57, %v2460_v21  ;;  %v2463_v26 = vpop.f32.mrb[26].mxu1 }
 0x82d   : > { %v2464_v6 = vpop.f32.mrb[27].mxu1 }
 0x82e   : > { %2135 = vst [vmem:[%s4836_s26 + $0x58] sm:$0xff] %v2119_v14  ;;  %v2078_v40 = vadd.f32 %v2462_v33, %v4827_v13  ;;  %v2465_v25 = vadd.f32 %v2464_v6, %v2463_v26 }
 0x830   : > { %v2104_v20 = vmul.f32 %v2078_v40, %v5105_v34  ;;  %v2081_v7 = vadd.f32 %v2465_v25, %v4827_v13 }
 0x832   : > { %v2120_v23 = vadd.f32 %v2104_v20, %v5106_v56  ;;  %v2105_v45 = vmul.f32 %v2081_v7, %v5107_v61  ;;  %v2466_v5 = vpop.f32.mrb[28].mxu1 }
 0x833   : > { %v2467_v54 = vpop.f32.mrb[29].mxu1 }
 0x834   : > { %2136 = vst [vmem:[%s4836_s26 + $0x60] sm:$0xff] %v2120_v23  ;;  %v2121_v41 = vadd.f32 %v2105_v45, %v5108_v22  ;;  %v2468_v59 = vadd.f32 %v2467_v54, %v2466_v5  ;;  %v2469_v53 = vpop.f32.mrb[30].mxu1 }
 0x835   : > { %v2470_v62 = vpop.f32.mrb[31].mxu1 }
 0x836   : > { %2137 = vst [vmem:[%s4836_s26 + $0x68] sm:$0xff] %v2121_v41  ;;  %v2086_v47 = vadd.f32 %v2468_v59, %v4827_v13  ;;  %v2471_v1 = vadd.f32 %v2470_v62, %v2469_v53 }
 0x838   : > { %v2106_v39 = vmul.f32 %v2086_v47, %v5109_v2  ;;  %v2089_v15 = vadd.f32 %v2471_v1, %v4827_v13 }
 0x83a   : > { %v2122_v43 = vadd.f32 %v2106_v39, %v5110_v29  ;;  %v2107_v18 = vmul.f32 %v2089_v15, %v5111_v46 }
 0x83c   : > { %2138 = vst [vmem:[%s4836_s26 + $0x70] sm:$0xff] %v2122_v43  ;;  %v2123_v60 = vadd.f32 %v2107_v18, %v5112_v48 }
 0x83e   : > { %2139 = vst [vmem:[%s4836_s26 + $0x78] sm:$0xff] %v2123_v60 }
 0x83f   : > { %2784 = shalt.err (!%p2781_p10)
}
 0x840   : > { %s2785_s7 = scalar_lea.hbm %s4899_s19, 2048  ;;  %s2789_s27 = scalar_lea.hbm %s4953_s5, 4096 }
 0x841   : > { %p2786_p4 = scmp.ne.s32.totalorder %s4899_s19, %s2785_s7  ;;  %p2790_p11 = scmp.lt.u32.totalorder %s4899_s19, %s4953_s5 }
 0x842   : > { %p2791_p2 = scmp.lt.u32.totalorder %s2789_s27, %s2785_s7  ;;  %p2793_p5 = scmp.lt.u32.totalorder %s2785_s7, %s4899_s19 }
 0x843   : > { %p2787_p7 = pnand %p2786_p4, %p5080_p0 }
 0x844   : > { %p2792_p3 = por %p2791_p2, %p2790_p11 }
 0x845   : > { %p2788_p8 = pneg %p2787_p7 }
 0x846   : > { %p2794_p9 = por %p2793_p5, %p2792_p3 }
 0x848   : > { %p2795_p12 = pnand %p2794_p9, %p2788_p8 }
 0x84a   : > { %2798 = shalt.err (!%p2795_p12)
}
 0x84b   : > { %s2859_s10 = smov 128   ;;  %s2860_s29 = smov 8  }
 0x84c   : > { %2482 = dma.vmem_to_hbm [thread:$0]  (%p5080_p0), %s4901_s15, 2048, %s4899_s19, %s2141_s25, %s2859_s10, %s2859_s10, %s2860_s29  }
 0x84d PF: > { %s2191_s20 = sand.u32 1, %s2833_s21   ;;  %p5113_p1 = scmp.ne.s32.totalorder %s5015_s28, 0 }
 0x84e   : > { %p5114_p13 = scmp.ge.s32.totalorder %s2845_s24, 2  ;;  %s2192_s17 = scalar_lea.sflag [#allocation4], %s2191_s20 }
 0x850   : > { %p2498_p6 = pnand %p5114_p13, %p5113_p1 }
 0x852   : > { %2824 = dma.done.wait (!%p2498_p6), %s2192_s17, 2048  }
 0x853   : > { %2826 = vsyncadd (!%p2498_p6), %s2192_s17, 4294965248  ;;  %s2201_s11 = scalar_lea.sflag [#allocation10], %s2191_s20 }
 0x854   : > { %2828 = dma.done.wait (!%p2498_p6), %s2201_s11, 4096  }
 0x855   : > { %2830 = vsyncadd (!%p2498_p6), %s2201_s11, 4294963200  ;;  %p24_p0 = scmp.ge.s32.totalorder %s3009_s9, 4   ;;  %s5115_s21 = smov %s2837_s22 }
 0x856   : > { %s5116_s22 = smov %s2841_s23  ;;  %s5117_s23 = smov %s3018_s13 }
 0x857   : > { %s5118_s24 = smov %s3009_s9  ;;  %26 = sbr.rel (!%p24_p0) target bundleno = 8 (0x8), region = 110 }
 0x85e   :  { %2206 = vsyncpa [#allocation3], 1 }
 0x85f   :  { %2208 = vsyncpa [#allocation3 + $0x1], 1 }
 0x860   :  { %2209 = vsyncpa [#allocation6], 1 }
 0x861   :  { %2210 = vsyncpa [#allocation4], 1 }
 0x862   :  { %2212 = vsyncpa [#allocation4 + $0x1], 1 }
 0x863   :  { %2213 = vsyncpa [#allocation10], 1 }
 0x864   :  { %2215 = vsyncpa [#allocation10 + $0x1], 1 }

</bundles_post_ra>
